<compile_context>
chip_gen: v6e
topology: v6e:2x2x1
jax: 0.10.0
libtpu: 0.0.40
codegen_flags: <defaults>
</compile_context>

<pallas_src>
from functools import partial

import jax
import jax.numpy as jnp
from jax import lax
from jax.experimental import pallas as pl
from jax.experimental.pallas import tpu as pltpu

EPS = 1e-5
NEG_INF = -1e30  # finite "-inf": exp underflows to exactly 0, no NaNs in the online softmax


# --------------------------------------------------------------------------------------
# Pallas kernel: whole transformer block for one batch element
# --------------------------------------------------------------------------------------
def _block_kernel(x_ref, g1_ref, wq_ref, wk_ref, wv_ref, wo_ref,
                  g2_ref, w13_ref, w2_ref, cos_ref, sin_ref,
                  o_ref, q_scr, k_scr, v_scr, attn_scr, *, num_heads, tile):
    f32, bf16 = jnp.float32, jnp.bfloat16
    S, D = x_ref.shape
    H = num_heads
    Dh = D // H
    half = Dh // 2
    F = w13_ref.shape[1] // 2
    T = tile
    n_t = S // T

    cos = cos_ref[...]                                     # (S, half) f32, compact tables
    sin = sin_ref[...]

    # ---------------- phase 1: RMSNorm1 + QKV projections + RoPE (K -> V -> Q) -------------
    x = x_ref[...].astype(f32)                             # only needed for the norm
    hn = x * lax.rsqrt(jnp.mean(x * x, axis=-1, keepdims=True) + EPS)
    hn = (hn * g1_ref[...]).astype(bf16)                   # (S, D) bf16; x dropped, re-read later

    def _rope_to_scratch(proj, scr):
        # proj columns are head-contiguous [first-of-pair | second-of-pair] within each head.
        for h in range(H):
            c0 = h * Dh
            a = proj[:, c0:c0 + half]
            b = proj[:, c0 + half:c0 + Dh]
            scr[:, c0:c0 + half] = (a * cos - b * sin).astype(bf16)
            scr[:, c0 + half:c0 + Dh] = (a * sin + b * cos).astype(bf16)

    _rope_to_scratch(jnp.dot(hn, wk_ref[...], preferred_element_type=f32), k_scr)
    v_scr[...] = jnp.dot(hn, wv_ref[...], preferred_element_type=f32).astype(bf16)
    # 1/sqrt(Dh) is folded into wq at prepare time.
    _rope_to_scratch(jnp.dot(hn, wq_ref[...], preferred_element_type=f32), q_scr)

    # ---------------- phase 2: causal flash attention (Q tiles x heads) ---------------------
    tri = (lax.broadcasted_iota(jnp.int32, (T, T), 0) >=
           lax.broadcasted_iota(jnp.int32, (T, T), 1))     # within-tile causal mask (diag tile)
    dimnums = (((1,), (1,)), ((), ()))                     # q @ k.T without explicit transpose

    for qi in range(n_t):
        q0 = qi * T
        for h in range(H):
            h0 = h * Dh
            q_h = q_scr[q0:q0 + T, h0:h0 + Dh]             # (T, Dh) bf16, head-contiguous

            def kv_step(t, carry, h0=h0, q_h=q_h):
                m_i, l_i, acc = carry
                k0 = pl.multiple_of(t * T, T)
                k_t = k_scr[pl.ds(k0, T), h0:h0 + Dh]      # (T, Dh) bf16
                v_t = v_scr[pl.ds(k0, T), h0:h0 + Dh]
                s = lax.dot_general(q_h, k_t, dimnums, preferred_element_type=f32)  # (T, T)
                m_new = jnp.maximum(m_i, jnp.max(s, axis=-1, keepdims=True))
                alpha = jnp.exp(m_i - m_new)
                p = jnp.exp(s - m_new)
                l_new = alpha * l_i + jnp.sum(p, axis=-1, keepdims=True)
                acc_new = alpha * acc + jnp.dot(p.astype(bf16), v_t,
                                                preferred_element_type=f32)
                return m_new, l_new, acc_new

            init = (jnp.full((T, 1), NEG_INF, f32),
                    jnp.zeros((T, 1), f32),
                    jnp.zeros((T, Dh), f32))
            if qi > 0:
                # Fully-unmasked KV tiles strictly below the diagonal (causal skipping).
                m_i, l_i, acc = lax.fori_loop(0, qi, kv_step, init,
                                              unroll=2 if qi >= 2 else 1)
            else:
                m_i, l_i, acc = init

            # Diagonal tile: the only one that needs masking; every row has >=1 allowed column.
            k_t = k_scr[q0:q0 + T, h0:h0 + Dh]
            v_t = v_scr[q0:q0 + T, h0:h0 + Dh]
            s = lax.dot_general(q_h, k_t, dimnums, preferred_element_type=f32)
            s = jnp.where(tri, s, NEG_INF)
            m_new = jnp.maximum(m_i, jnp.max(s, axis=-1, keepdims=True))
            alpha = jnp.exp(m_i - m_new)
            p = jnp.exp(s - m_new)                         # masked entries underflow to 0
            l_f = alpha * l_i + jnp.sum(p, axis=-1, keepdims=True)
            acc_f = alpha * acc + jnp.dot(p.astype(bf16), v_t, preferred_element_type=f32)

            attn_scr[q0:q0 + T, h0:h0 + Dh] = (
                acc_f * pl.reciprocal(l_f, approx=True)).astype(bf16)

    # ---------------- phase 3: Wo + residual + RMSNorm2 + SwiGLU + residual (row-tiled) -----
    for r in range(n_t):
        r0 = r * T
        attn_rows = jnp.dot(attn_scr[r0:r0 + T, :], wo_ref[...],
                            preferred_element_type=f32)          # one dot, contraction K=D
        x1 = x_ref[r0:r0 + T, :].astype(f32) + attn_rows          # residual 1 (x re-read)
        h2 = x1 * lax.rsqrt(jnp.mean(x1 * x1, axis=-1, keepdims=True) + EPS)
        h2 = (h2 * g2_ref[...]).astype(bf16)
        ab = jnp.dot(h2, w13_ref[...], preferred_element_type=f32)  # (T, 2F) = [w1 out | w3 out]
        g = ab[:, :F]
        u = ab[:, F:]
        silu = g * pl.reciprocal(1.0 + jnp.exp(-g), approx=True)
        ffn = jnp.dot((silu * u).astype(bf16), w2_ref[...], preferred_element_type=f32)
        o_ref[r0:r0 + T, :] = (x1 + ffn).astype(o_ref.dtype)        # residual 2


# --------------------------------------------------------------------------------------
# One-time parameter preparation (hoisted out of the per-call path)
# --------------------------------------------------------------------------------------
def prepare_block_params(params, num_heads):
    D = params["wq"].shape[0]
    Dh = D // num_heads
    half = Dh // 2
    assert D % num_heads == 0 and Dh % 2 == 0, "d_model/num_heads must give an even head dim"

    # Per-head column layout: [first-of-pair (even cols) | second-of-pair (odd cols)].
    # Scores are invariant to this within-head permutation since Q and K share it.
    j = jnp.arange(half)
    perm = jnp.concatenate(
        [jnp.concatenate([h * Dh + 2 * j, h * Dh + 2 * j + 1]) for h in range(num_heads)])

    scale = 1.0 / (Dh ** 0.5)
    bf16 = jnp.bfloat16
    return {
        "g1": params["g1"].astype(jnp.float32),
        "g2": params["g2"].astype(jnp.float32),
        "wq": (params["wq"][:, perm] * scale).astype(bf16),   # 1/sqrt(Dh) folded in
        "wk": params["wk"][:, perm].astype(bf16),
        "wv": params["wv"].astype(bf16),
        "wo": params["wo"].astype(bf16),
        "w13": jnp.concatenate([params["w1"], params["w3"]], axis=1).astype(bf16),
        "w2": params["w2"].astype(bf16),
        "cos": params["cos"].astype(jnp.float32),             # (max_seq, Dh//2) compact
        "sin": params["sin"].astype(jnp.float32),
    }


# --------------------------------------------------------------------------------------
# Wrapper
# --------------------------------------------------------------------------------------
def _vmem_limit_bytes():
    # Per-generation VMEM budget: ~85% of physical capacity (headroom for compiler scratch).
    # The narrow guard below only affects this advisory limit; kernel build / lowering errors
    # are never swallowed.
    get_info = getattr(pltpu, "get_tpu_info", None)
    if get_info is not None:
        try:
            cap = getattr(get_info(), "vmem_capacity_bytes", None)
        except Exception:
            cap = None
        if cap:
            return int(cap * 0.85)
    return 100 * 1024 * 1024


def prenorm_xformer_block(x, kp, num_heads, tile=None):
    B, S, D = x.shape
    F2 = kp["w13"].shape[1]
    F = kp["w2"].shape[0]
    half = (D // num_heads) // 2
    if tile is None:
        tile = min(256, S)
    assert S % tile == 0 and D % num_heads == 0

    cos = kp["cos"][:S]
    sin = kp["sin"][:S]

    kernel = partial(_block_kernel, num_heads=num_heads, tile=tile)
    has_buffered = hasattr(pl, "Buffered")   # explicit capability check (no silent fallback)

    def const(shape):
        idx = lambda b, _n=len(shape): (0,) * _n
        if has_buffered:
            # Constant-index blocks (weights / gains / rope tables): never re-fetched across
            # the batch grid, so a single pipeline buffer halves their VMEM residency.
            return pl.BlockSpec(shape, idx, pipeline_mode=pl.Buffered(1))
        return pl.BlockSpec(shape, idx)

    return pl.pallas_call(
        kernel,
        out_shape=jax.ShapeDtypeStruct((B, S, D), x.dtype),
        grid=(B,),
        in_specs=[
            pl.BlockSpec((None, S, D), lambda b: (b, 0, 0)),   # x (batch dim squeezed)
            const((1, D)),        # g1
            const((D, D)),        # wq  (per-head rope-permuted, scaled, bf16)
            const((D, D)),        # wk  (per-head rope-permuted, bf16)
            const((D, D)),        # wv
            const((D, D)),        # wo
            const((1, D)),        # g2
            const((D, F2)),       # w13 = [w1 | w3]
            const((F, D)),        # w2
            const((S, half)),     # cos (compact)
            const((S, half)),     # sin (compact)
        ],
        out_specs=pl.BlockSpec((None, S, D), lambda b: (b, 0, 0)),
        scratch_shapes=[
            pltpu.VMEM((S, D), jnp.bfloat16),   # rotated Q (head-contiguous)
            pltpu.VMEM((S, D), jnp.bfloat16),   # rotated K (head-contiguous)
            pltpu.VMEM((S, D), jnp.bfloat16),   # V
            pltpu.VMEM((S, D), jnp.bfloat16),   # per-head attention outputs (head-major)
        ],
        compiler_params=pltpu.CompilerParams(
            dimension_semantics=("parallel",),
            vmem_limit_bytes=_vmem_limit_bytes()),
    )(x, kp["g1"], kp["wq"], kp["wk"], kp["wv"], kp["wo"],
      kp["g2"], kp["w13"], kp["w2"], cos, sin)


# --------------------------------------------------------------------------------------
# Pure-JAX f32 reference (interleaved RoPE, matching the PyTorch module semantics)
# --------------------------------------------------------------------------------------
def _rope_interleaved(x, cos, sin):
    x1 = x[..., 0::2]
    x2 = x[..., 1::2]
    r1 = x1 * cos - x2 * sin
    r2 = x1 * sin + x2 * cos
    return jnp.stack([r1, r2], axis=-1).reshape(x.shape)


def ref_block(x, p, num_heads):
    B, S, D = x.shape
    Dh = D // num_heads

    def rms(y, g):
        return y * lax.rsqrt(jnp.mean(y * y, axis=-1, keepdims=True) + EPS) * g

    h = rms(x, p["g1"])
    q, k, v = h @ p["wq"], h @ p["wk"], h @ p["wv"]
    split = lambda t: t.reshape(B, S, num_heads, Dh).transpose(0, 2, 1, 3)
    q, k, v = split(q), split(k), split(v)
    q = _rope_interleaved(q, p["cos"], p["sin"])
    k = _rope_interleaved(k, p["cos"], p["sin"])
    scores = jnp.einsum("bhqd,bhkd->bhqk", q, k) / jnp.sqrt(jnp.float32(Dh))
    mask = jnp.tril(jnp.ones((S, S), bool))
    scores = jnp.where(mask, scores, -jnp.inf)
    attn = jax.nn.softmax(scores, axis=-1)
    o = jnp.einsum("bhqk,bhkd->bhqd", attn, v).transpose(0, 2, 1, 3).reshape(B, S, D)
    x = x + o @ p["wo"]
    h2 = rms(x, p["g2"])
    ffn = (jax.nn.silu(h2 @ p["w1"]) * (h2 @ p["w3"])) @ p["w2"]
    return x + ffn


# --------------------------------------------------------------------------------------
if __name__ == "__main__":
    B, S = 2, 16
    d_model, num_heads, d_ff = 64, 4, 128
    theta = 10000.0
    Dh = d_model // num_heads

    key = jax.random.PRNGKey(0)
    ks = jax.random.split(key, 8)
    std = 1.0 / (d_model ** 0.5)
    params = {
        "g1": jnp.ones((1, d_model), jnp.float32),
        "g2": jnp.ones((1, d_model), jnp.float32),
        "wq": (std * jax.random.normal(ks[0], (d_model, d_model))).astype(jnp.float32),
        "wk": (std * jax.random.normal(ks[1], (d_model, d_model))).astype(jnp.float32),
        "wv": (std * jax.random.normal(ks[2], (d_model, d_model))).astype(jnp.float32),
        "wo": (std * jax.random.normal(ks[3], (d_model, d_model))).astype(jnp.float32),
        "w1": (std * jax.random.normal(ks[4], (d_model, d_ff))).astype(jnp.float32),
        "w3": (std * jax.random.normal(ks[5], (d_model, d_ff))).astype(jnp.float32),
        "w2": ((1.0 / (d_ff ** 0.5)) * jax.random.normal(ks[6], (d_ff, d_model))).astype(jnp.float32),
    }
    # RoPE tables (interleaved-pair convention)
    pos = jnp.arange(S, dtype=jnp.float32)[:, None]
    inv_freq = 1.0 / (theta ** (jnp.arange(0, Dh, 2, dtype=jnp.float32) / Dh))
    ang = pos * inv_freq[None, :]
    params["cos"] = jnp.cos(ang)
    params["sin"] = jnp.sin(ang)

    x = jax.random.normal(ks[7], (B, S, d_model), dtype=jnp.float32)

    kparams = prepare_block_params(params, num_heads)           # one-time prep (perm/fuse/casts)
    # tile=8 -> 2 query tiles: exercises the causal-skip fori_loop, diagonal tile and row tiling.
    out = prenorm_xformer_block(x, kparams, num_heads, tile=8)
    out = jax.block_until_ready(out)

    ref = jax.block_until_ready(ref_block(x, params, num_heads))

    assert out.shape == (B, S, d_model) and out.dtype == jnp.float32
    assert jnp.allclose(out, ref, atol=5e-2, rtol=5e-2), (
        f"max abs diff {jnp.max(jnp.abs(out - ref))}")

    print("KERNEL_OK")
</pallas_src>

<mosaic_0001>
module attributes {stable_mosaic.version = 11 : i64} {
  func.func @_block_kernel(%arg0: i32, %arg1: memref<1x16x64xf32, #tpu.memory_space<vmem>>, %arg2: memref<1x64xf32, #tpu.memory_space<vmem>>, %arg3: memref<64x64xbf16, #tpu.memory_space<vmem>>, %arg4: memref<64x64xbf16, #tpu.memory_space<vmem>>, %arg5: memref<64x64xbf16, #tpu.memory_space<vmem>>, %arg6: memref<64x64xbf16, #tpu.memory_space<vmem>>, %arg7: memref<1x64xf32, #tpu.memory_space<vmem>>, %arg8: memref<64x256xbf16, #tpu.memory_space<vmem>>, %arg9: memref<128x64xbf16, #tpu.memory_space<vmem>>, %arg10: memref<16x8xf32, #tpu.memory_space<vmem>>, %arg11: memref<16x8xf32, #tpu.memory_space<vmem>>, %arg12: memref<1x16x64xf32, #tpu.memory_space<vmem>>, %arg13: memref<16x64xbf16, #tpu.memory_space<vmem>>, %arg14: memref<16x64xbf16, #tpu.memory_space<vmem>>, %arg15: memref<16x64xbf16, #tpu.memory_space<vmem>>, %arg16: memref<16x64xbf16, #tpu.memory_space<vmem>>) attributes {dimension_semantics = [#tpu.dimension_semantics<parallel>], iteration_bounds = array<i64: 2>, scalar_prefetch = 0 : i64, scratch_operands = 4 : i64, tpu.core_type = #tpu.core_type<tc>, window_params = [{transform_indices = @transform_0, window_bounds = array<i64: 1, 16, 64>}, {pipeline_mode = #tpu.pipeline_mode<synchronous>, transform_indices = @transform_1, window_bounds = array<i64: 1, 64>}, {pipeline_mode = #tpu.pipeline_mode<synchronous>, transform_indices = @transform_2, window_bounds = array<i64: 64, 64>}, {pipeline_mode = #tpu.pipeline_mode<synchronous>, transform_indices = @transform_3, window_bounds = array<i64: 64, 64>}, {pipeline_mode = #tpu.pipeline_mode<synchronous>, transform_indices = @transform_4, window_bounds = array<i64: 64, 64>}, {pipeline_mode = #tpu.pipeline_mode<synchronous>, transform_indices = @transform_5, window_bounds = array<i64: 64, 64>}, {pipeline_mode = #tpu.pipeline_mode<synchronous>, transform_indices = @transform_6, window_bounds = array<i64: 1, 64>}, {pipeline_mode = #tpu.pipeline_mode<synchronous>, transform_indices = @transform_7, window_bounds = array<i64: 64, 256>}, {pipeline_mode = #tpu.pipeline_mode<synchronous>, transform_indices = @transform_8, window_bounds = array<i64: 128, 64>}, {pipeline_mode = #tpu.pipeline_mode<synchronous>, transform_indices = @transform_9, window_bounds = array<i64: 16, 8>}, {pipeline_mode = #tpu.pipeline_mode<synchronous>, transform_indices = @transform_10, window_bounds = array<i64: 16, 8>}, {transform_indices = @transform_11, window_bounds = array<i64: 1, 16, 64>}]} {
    %c0 = arith.constant 0 : index
    %c0_0 = arith.constant 0 : index
    %0 = vector.load %arg10[%c0, %c0_0] : memref<16x8xf32, #tpu.memory_space<vmem>>, vector<16x8xf32>
    %c0_1 = arith.constant 0 : index
    %c0_2 = arith.constant 0 : index
    %1 = vector.load %arg11[%c0_1, %c0_2] : memref<16x8xf32, #tpu.memory_space<vmem>>, vector<16x8xf32>
    %c0_3 = arith.constant 0 : index
    %c0_4 = arith.constant 0 : index
    %c0_5 = arith.constant 0 : index
    %2 = vector.load %arg1[%c0_3, %c0_4, %c0_5] : memref<1x16x64xf32, #tpu.memory_space<vmem>>, vector<1x16x64xf32>
    %3 = vector.shape_cast %2 : vector<1x16x64xf32> to vector<16x64xf32>
    %4 = arith.mulf %3, %3 : vector<16x64xf32>
    %cst = arith.constant dense<0.000000e+00> : vector<16xf32>
    %5 = vector.multi_reduction <add>, %4, %cst [1] : vector<16x64xf32> to vector<16xf32>
    %6 = vector.shape_cast %5 : vector<16xf32> to vector<16x1xf32>
    %cst_6 = arith.constant 6.400000e+01 : f32
    %7 = vector.broadcast %cst_6 : f32 to vector<16x1xf32>
    %8 = arith.divf %6, %7 : vector<16x1xf32>
    %cst_7 = arith.constant 9.99999974E-6 : f32
    %9 = vector.broadcast %cst_7 : f32 to vector<16x1xf32>
    %10 = arith.addf %8, %9 : vector<16x1xf32>
    %11 = math.rsqrt %10 : vector<16x1xf32>
    %12 = vector.broadcast %11 : vector<16x1xf32> to vector<16x64xf32>
    %13 = arith.mulf %3, %12 : vector<16x64xf32>
    %c0_8 = arith.constant 0 : index
    %c0_9 = arith.constant 0 : index
    %14 = vector.load %arg2[%c0_8, %c0_9] : memref<1x64xf32, #tpu.memory_space<vmem>>, vector<1x64xf32>
    %15 = vector.broadcast %14 : vector<1x64xf32> to vector<16x64xf32>
    %16 = arith.mulf %13, %15 : vector<16x64xf32>
    %17 = arith.truncf %16 : vector<16x64xf32> to vector<16x64xbf16>
    %c0_10 = arith.constant 0 : index
    %c0_11 = arith.constant 0 : index
    %18 = vector.load %arg4[%c0_10, %c0_11] : memref<64x64xbf16, #tpu.memory_space<vmem>>, vector<64x64xbf16>
    %cst_12 = arith.constant dense<0.000000e+00> : vector<16x64xf32>
    %19 = tpu.matmul %17, %18, %cst_12 {dimension_numbers = #tpu.dot_dimension_numbers<[1], [0], [0], [1], [0, 0, 1, 1], [], []>} : vector<16x64xbf16>, vector<64x64xbf16>, vector<16x64xf32> -> vector<16x64xf32>
    %20 = vector.extract_strided_slice %19 {offsets = [0, 0], sizes = [16, 8], strides = [1, 1]} : vector<16x64xf32> to vector<16x8xf32>
    %21 = vector.extract_strided_slice %19 {offsets = [0, 8], sizes = [16, 8], strides = [1, 1]} : vector<16x64xf32> to vector<16x8xf32>
    %22 = arith.mulf %20, %0 : vector<16x8xf32>
    %23 = arith.mulf %21, %1 : vector<16x8xf32>
    %24 = arith.subf %22, %23 : vector<16x8xf32>
    %25 = arith.truncf %24 : vector<16x8xf32> to vector<16x8xbf16>
    %c0_13 = arith.constant 0 : index
    %c0_14 = arith.constant 0 : index
    %26 = vector.load %arg14[%c0_13, %c0_14] : memref<16x64xbf16, #tpu.memory_space<vmem>>, vector<16x8xbf16>
    tpu.vector_store %arg14[%c0_13, %c0_14], %25 {strides = array<i32>} : memref<16x64xbf16, #tpu.memory_space<vmem>>, vector<16x8xbf16>,
    %27 = arith.mulf %20, %1 : vector<16x8xf32>
    %28 = arith.mulf %21, %0 : vector<16x8xf32>
    %29 = arith.addf %27, %28 : vector<16x8xf32>
    %30 = arith.truncf %29 : vector<16x8xf32> to vector<16x8xbf16>
    %c0_15 = arith.constant 0 : index
    %c8 = arith.constant 8 : index
    %31 = vector.load %arg14[%c0_15, %c8] : memref<16x64xbf16, #tpu.memory_space<vmem>>, vector<16x8xbf16>
    tpu.vector_store %arg14[%c0_15, %c8], %30 {strides = array<i32>} : memref<16x64xbf16, #tpu.memory_space<vmem>>, vector<16x8xbf16>,
    %32 = vector.extract_strided_slice %19 {offsets = [0, 16], sizes = [16, 8], strides = [1, 1]} : vector<16x64xf32> to vector<16x8xf32>
    %33 = vector.extract_strided_slice %19 {offsets = [0, 24], sizes = [16, 8], strides = [1, 1]} : vector<16x64xf32> to vector<16x8xf32>
    %34 = arith.mulf %32, %0 : vector<16x8xf32>
    %35 = arith.mulf %33, %1 : vector<16x8xf32>
    %36 = arith.subf %34, %35 : vector<16x8xf32>
    %37 = arith.truncf %36 : vector<16x8xf32> to vector<16x8xbf16>
    %c0_16 = arith.constant 0 : index
    %c16 = arith.constant 16 : index
    %38 = vector.load %arg14[%c0_16, %c16] : memref<16x64xbf16, #tpu.memory_space<vmem>>, vector<16x8xbf16>
    tpu.vector_store %arg14[%c0_16, %c16], %37 {strides = array<i32>} : memref<16x64xbf16, #tpu.memory_space<vmem>>, vector<16x8xbf16>,
    %39 = arith.mulf %32, %1 : vector<16x8xf32>
    %40 = arith.mulf %33, %0 : vector<16x8xf32>
    %41 = arith.addf %39, %40 : vector<16x8xf32>
    %42 = arith.truncf %41 : vector<16x8xf32> to vector<16x8xbf16>
    %c0_17 = arith.constant 0 : index
    %c24 = arith.constant 24 : index
    %43 = vector.load %arg14[%c0_17, %c24] : memref<16x64xbf16, #tpu.memory_space<vmem>>, vector<16x8xbf16>
    tpu.vector_store %arg14[%c0_17, %c24], %42 {strides = array<i32>} : memref<16x64xbf16, #tpu.memory_space<vmem>>, vector<16x8xbf16>,
    %44 = vector.extract_strided_slice %19 {offsets = [0, 32], sizes = [16, 8], strides = [1, 1]} : vector<16x64xf32> to vector<16x8xf32>
    %45 = vector.extract_strided_slice %19 {offsets = [0, 40], sizes = [16, 8], strides = [1, 1]} : vector<16x64xf32> to vector<16x8xf32>
    %46 = arith.mulf %44, %0 : vector<16x8xf32>
    %47 = arith.mulf %45, %1 : vector<16x8xf32>
    %48 = arith.subf %46, %47 : vector<16x8xf32>
    %49 = arith.truncf %48 : vector<16x8xf32> to vector<16x8xbf16>
    %c0_18 = arith.constant 0 : index
    %c32 = arith.constant 32 : index
    %50 = vector.load %arg14[%c0_18, %c32] : memref<16x64xbf16, #tpu.memory_space<vmem>>, vector<16x8xbf16>
    tpu.vector_store %arg14[%c0_18, %c32], %49 {strides = array<i32>} : memref<16x64xbf16, #tpu.memory_space<vmem>>, vector<16x8xbf16>,
    %51 = arith.mulf %44, %1 : vector<16x8xf32>
    %52 = arith.mulf %45, %0 : vector<16x8xf32>
    %53 = arith.addf %51, %52 : vector<16x8xf32>
    %54 = arith.truncf %53 : vector<16x8xf32> to vector<16x8xbf16>
    %c0_19 = arith.constant 0 : index
    %c40 = arith.constant 40 : index
    %55 = vector.load %arg14[%c0_19, %c40] : memref<16x64xbf16, #tpu.memory_space<vmem>>, vector<16x8xbf16>
    tpu.vector_store %arg14[%c0_19, %c40], %54 {strides = array<i32>} : memref<16x64xbf16, #tpu.memory_space<vmem>>, vector<16x8xbf16>,
    %56 = vector.extract_strided_slice %19 {offsets = [0, 48], sizes = [16, 8], strides = [1, 1]} : vector<16x64xf32> to vector<16x8xf32>
    %57 = vector.extract_strided_slice %19 {offsets = [0, 56], sizes = [16, 8], strides = [1, 1]} : vector<16x64xf32> to vector<16x8xf32>
    %58 = arith.mulf %56, %0 : vector<16x8xf32>
    %59 = arith.mulf %57, %1 : vector<16x8xf32>
    %60 = arith.subf %58, %59 : vector<16x8xf32>
    %61 = arith.truncf %60 : vector<16x8xf32> to vector<16x8xbf16>
    %c0_20 = arith.constant 0 : index
    %c48 = arith.constant 48 : index
    %62 = vector.load %arg14[%c0_20, %c48] : memref<16x64xbf16, #tpu.memory_space<vmem>>, vector<16x8xbf16>
    tpu.vector_store %arg14[%c0_20, %c48], %61 {strides = array<i32>} : memref<16x64xbf16, #tpu.memory_space<vmem>>, vector<16x8xbf16>,
    %63 = arith.mulf %56, %1 : vector<16x8xf32>
    %64 = arith.mulf %57, %0 : vector<16x8xf32>
    %65 = arith.addf %63, %64 : vector<16x8xf32>
    %66 = arith.truncf %65 : vector<16x8xf32> to vector<16x8xbf16>
    %c0_21 = arith.constant 0 : index
    %c56 = arith.constant 56 : index
    %67 = vector.load %arg14[%c0_21, %c56] : memref<16x64xbf16, #tpu.memory_space<vmem>>, vector<16x8xbf16>
    tpu.vector_store %arg14[%c0_21, %c56], %66 {strides = array<i32>} : memref<16x64xbf16, #tpu.memory_space<vmem>>, vector<16x8xbf16>,
    %c0_22 = arith.constant 0 : index
    %c0_23 = arith.constant 0 : index
    %68 = vector.load %arg5[%c0_22, %c0_23] : memref<64x64xbf16, #tpu.memory_space<vmem>>, vector<64x64xbf16>
    %cst_24 = arith.constant dense<0.000000e+00> : vector<16x64xf32>
    %69 = tpu.matmul %17, %68, %cst_24 {dimension_numbers = #tpu.dot_dimension_numbers<[1], [0], [0], [1], [0, 0, 1, 1], [], []>} : vector<16x64xbf16>, vector<64x64xbf16>, vector<16x64xf32> -> vector<16x64xf32>
    %70 = arith.truncf %69 : vector<16x64xf32> to vector<16x64xbf16>
    %c0_25 = arith.constant 0 : index
    %c0_26 = arith.constant 0 : index
    %71 = vector.load %arg15[%c0_25, %c0_26] : memref<16x64xbf16, #tpu.memory_space<vmem>>, vector<16x64xbf16>
    tpu.vector_store %arg15[%c0_25, %c0_26], %70 {strides = array<i32>} : memref<16x64xbf16, #tpu.memory_space<vmem>>, vector<16x64xbf16>,
    %c0_27 = arith.constant 0 : index
    %c0_28 = arith.constant 0 : index
    %72 = vector.load %arg3[%c0_27, %c0_28] : memref<64x64xbf16, #tpu.memory_space<vmem>>, vector<64x64xbf16>
    %cst_29 = arith.constant dense<0.000000e+00> : vector<16x64xf32>
    %73 = tpu.matmul %17, %72, %cst_29 {dimension_numbers = #tpu.dot_dimension_numbers<[1], [0], [0], [1], [0, 0, 1, 1], [], []>} : vector<16x64xbf16>, vector<64x64xbf16>, vector<16x64xf32> -> vector<16x64xf32>
    %74 = vector.extract_strided_slice %73 {offsets = [0, 0], sizes = [16, 8], strides = [1, 1]} : vector<16x64xf32> to vector<16x8xf32>
    %75 = vector.extract_strided_slice %73 {offsets = [0, 8], sizes = [16, 8], strides = [1, 1]} : vector<16x64xf32> to vector<16x8xf32>
    %76 = arith.mulf %74, %0 : vector<16x8xf32>
    %77 = arith.mulf %75, %1 : vector<16x8xf32>
    %78 = arith.subf %76, %77 : vector<16x8xf32>
    %79 = arith.truncf %78 : vector<16x8xf32> to vector<16x8xbf16>
    %c0_30 = arith.constant 0 : index
    %c0_31 = arith.constant 0 : index
    %80 = vector.load %arg13[%c0_30, %c0_31] : memref<16x64xbf16, #tpu.memory_space<vmem>>, vector<16x8xbf16>
    tpu.vector_store %arg13[%c0_30, %c0_31], %79 {strides = array<i32>} : memref<16x64xbf16, #tpu.memory_space<vmem>>, vector<16x8xbf16>,
    %81 = arith.mulf %74, %1 : vector<16x8xf32>
    %82 = arith.mulf %75, %0 : vector<16x8xf32>
    %83 = arith.addf %81, %82 : vector<16x8xf32>
    %84 = arith.truncf %83 : vector<16x8xf32> to vector<16x8xbf16>
    %c0_32 = arith.constant 0 : index
    %c8_33 = arith.constant 8 : index
    %85 = vector.load %arg13[%c0_32, %c8_33] : memref<16x64xbf16, #tpu.memory_space<vmem>>, vector<16x8xbf16>
    tpu.vector_store %arg13[%c0_32, %c8_33], %84 {strides = array<i32>} : memref<16x64xbf16, #tpu.memory_space<vmem>>, vector<16x8xbf16>,
    %86 = vector.extract_strided_slice %73 {offsets = [0, 16], sizes = [16, 8], strides = [1, 1]} : vector<16x64xf32> to vector<16x8xf32>
    %87 = vector.extract_strided_slice %73 {offsets = [0, 24], sizes = [16, 8], strides = [1, 1]} : vector<16x64xf32> to vector<16x8xf32>
    %88 = arith.mulf %86, %0 : vector<16x8xf32>
    %89 = arith.mulf %87, %1 : vector<16x8xf32>
    %90 = arith.subf %88, %89 : vector<16x8xf32>
    %91 = arith.truncf %90 : vector<16x8xf32> to vector<16x8xbf16>
    %c0_34 = arith.constant 0 : index
    %c16_35 = arith.constant 16 : index
    %92 = vector.load %arg13[%c0_34, %c16_35] : memref<16x64xbf16, #tpu.memory_space<vmem>>, vector<16x8xbf16>
    tpu.vector_store %arg13[%c0_34, %c16_35], %91 {strides = array<i32>} : memref<16x64xbf16, #tpu.memory_space<vmem>>, vector<16x8xbf16>,
    %93 = arith.mulf %86, %1 : vector<16x8xf32>
    %94 = arith.mulf %87, %0 : vector<16x8xf32>
    %95 = arith.addf %93, %94 : vector<16x8xf32>
    %96 = arith.truncf %95 : vector<16x8xf32> to vector<16x8xbf16>
    %c0_36 = arith.constant 0 : index
    %c24_37 = arith.constant 24 : index
    %97 = vector.load %arg13[%c0_36, %c24_37] : memref<16x64xbf16, #tpu.memory_space<vmem>>, vector<16x8xbf16>
    tpu.vector_store %arg13[%c0_36, %c24_37], %96 {strides = array<i32>} : memref<16x64xbf16, #tpu.memory_space<vmem>>, vector<16x8xbf16>,
    %98 = vector.extract_strided_slice %73 {offsets = [0, 32], sizes = [16, 8], strides = [1, 1]} : vector<16x64xf32> to vector<16x8xf32>
    %99 = vector.extract_strided_slice %73 {offsets = [0, 40], sizes = [16, 8], strides = [1, 1]} : vector<16x64xf32> to vector<16x8xf32>
    %100 = arith.mulf %98, %0 : vector<16x8xf32>
    %101 = arith.mulf %99, %1 : vector<16x8xf32>
    %102 = arith.subf %100, %101 : vector<16x8xf32>
    %103 = arith.truncf %102 : vector<16x8xf32> to vector<16x8xbf16>
    %c0_38 = arith.constant 0 : index
    %c32_39 = arith.constant 32 : index
    %104 = vector.load %arg13[%c0_38, %c32_39] : memref<16x64xbf16, #tpu.memory_space<vmem>>, vector<16x8xbf16>
    tpu.vector_store %arg13[%c0_38, %c32_39], %103 {strides = array<i32>} : memref<16x64xbf16, #tpu.memory_space<vmem>>, vector<16x8xbf16>,
    %105 = arith.mulf %98, %1 : vector<16x8xf32>
    %106 = arith.mulf %99, %0 : vector<16x8xf32>
    %107 = arith.addf %105, %106 : vector<16x8xf32>
    %108 = arith.truncf %107 : vector<16x8xf32> to vector<16x8xbf16>
    %c0_40 = arith.constant 0 : index
    %c40_41 = arith.constant 40 : index
    %109 = vector.load %arg13[%c0_40, %c40_41] : memref<16x64xbf16, #tpu.memory_space<vmem>>, vector<16x8xbf16>
    tpu.vector_store %arg13[%c0_40, %c40_41], %108 {strides = array<i32>} : memref<16x64xbf16, #tpu.memory_space<vmem>>, vector<16x8xbf16>,
    %110 = vector.extract_strided_slice %73 {offsets = [0, 48], sizes = [16, 8], strides = [1, 1]} : vector<16x64xf32> to vector<16x8xf32>
    %111 = vector.extract_strided_slice %73 {offsets = [0, 56], sizes = [16, 8], strides = [1, 1]} : vector<16x64xf32> to vector<16x8xf32>
    %112 = arith.mulf %110, %0 : vector<16x8xf32>
    %113 = arith.mulf %111, %1 : vector<16x8xf32>
    %114 = arith.subf %112, %113 : vector<16x8xf32>
    %115 = arith.truncf %114 : vector<16x8xf32> to vector<16x8xbf16>
    %c0_42 = arith.constant 0 : index
    %c48_43 = arith.constant 48 : index
    %116 = vector.load %arg13[%c0_42, %c48_43] : memref<16x64xbf16, #tpu.memory_space<vmem>>, vector<16x8xbf16>
    tpu.vector_store %arg13[%c0_42, %c48_43], %115 {strides = array<i32>} : memref<16x64xbf16, #tpu.memory_space<vmem>>, vector<16x8xbf16>,
    %117 = arith.mulf %110, %1 : vector<16x8xf32>
    %118 = arith.mulf %111, %0 : vector<16x8xf32>
    %119 = arith.addf %117, %118 : vector<16x8xf32>
    %120 = arith.truncf %119 : vector<16x8xf32> to vector<16x8xbf16>
    %c0_44 = arith.constant 0 : index
    %c56_45 = arith.constant 56 : index
    %121 = vector.load %arg13[%c0_44, %c56_45] : memref<16x64xbf16, #tpu.memory_space<vmem>>, vector<16x8xbf16>
    tpu.vector_store %arg13[%c0_44, %c56_45], %120 {strides = array<i32>} : memref<16x64xbf16, #tpu.memory_space<vmem>>, vector<16x8xbf16>,
    %122 = tpu.iota {dimensions = array<i32: 0>} : vector<8x8xi32>
    %123 = tpu.iota {dimensions = array<i32: 1>} : vector<8x8xi32>
    %124 = arith.cmpi sge, %122, %123 : vector<8x8xi32>
    %c0_46 = arith.constant 0 : index
    %c0_47 = arith.constant 0 : index
    %125 = vector.load %arg13[%c0_46, %c0_47] : memref<16x64xbf16, #tpu.memory_space<vmem>>, vector<8x16xbf16>
    %cst_48 = arith.constant -1.000000e+30 : f32
    %126 = vector.broadcast %cst_48 : f32 to vector<8x1xf32>
    %cst_49 = arith.constant 0.000000e+00 : f32
    %127 = vector.broadcast %cst_49 : f32 to vector<8x1xf32>
    %cst_50 = arith.constant 0.000000e+00 : f32
    %128 = vector.broadcast %cst_50 : f32 to vector<8x16xf32>
    %c0_51 = arith.constant 0 : index
    %c0_52 = arith.constant 0 : index
    %129 = vector.load %arg14[%c0_51, %c0_52] : memref<16x64xbf16, #tpu.memory_space<vmem>>, vector<8x16xbf16>
    %c0_53 = arith.constant 0 : index
    %c0_54 = arith.constant 0 : index
    %130 = vector.load %arg15[%c0_53, %c0_54] : memref<16x64xbf16, #tpu.memory_space<vmem>>, vector<8x16xbf16>
    %cst_55 = arith.constant dense<0.000000e+00> : vector<8x8xf32>
    %131 = tpu.matmul %125, %129, %cst_55 {dimension_numbers = #tpu.dot_dimension_numbers<[1], [1], [0], [0], [0, 0, 1, 0], [], []>} : vector<8x16xbf16>, vector<8x16xbf16>, vector<8x8xf32> -> vector<8x8xf32>
    %cst_56 = arith.constant -1.000000e+30 : f32
    %132 = vector.broadcast %cst_56 : f32 to vector<8x8xf32>
    %133 = arith.select %124, %131, %132 : vector<8x8xi1>, vector<8x8xf32>
    %cst_57 = arith.constant dense<0xFF800000> : vector<8xf32>
    %134 = vector.multi_reduction <maximumf>, %133, %cst_57 [1] : vector<8x8xf32> to vector<8xf32>
    %135 = vector.shape_cast %134 : vector<8xf32> to vector<8x1xf32>
    %136 = arith.maximumf %126, %135 : vector<8x1xf32>
    %137 = arith.subf %126, %136 : vector<8x1xf32>
    %138 = math.exp %137 : vector<8x1xf32>
    %139 = vector.broadcast %136 : vector<8x1xf32> to vector<8x8xf32>
    %140 = arith.subf %133, %139 : vector<8x8xf32>
    %141 = math.exp %140 : vector<8x8xf32>
    %142 = arith.mulf %138, %127 : vector<8x1xf32>
    %cst_58 = arith.constant dense<0.000000e+00> : vector<8xf32>
    %143 = vector.multi_reduction <add>, %141, %cst_58 [1] : vector<8x8xf32> to vector<8xf32>
    %144 = vector.shape_cast %143 : vector<8xf32> to vector<8x1xf32>
    %145 = arith.addf %142, %144 : vector<8x1xf32>
    %146 = vector.broadcast %138 : vector<8x1xf32> to vector<8x16xf32>
    %147 = arith.mulf %146, %128 : vector<8x16xf32>
    %148 = arith.truncf %141 : vector<8x8xf32> to vector<8x8xbf16>
    %cst_59 = arith.constant dense<0.000000e+00> : vector<8x16xf32>
    %149 = tpu.matmul %148, %130, %cst_59 {dimension_numbers = #tpu.dot_dimension_numbers<[1], [0], [0], [1], [0, 0, 1, 1], [], []>} : vector<8x8xbf16>, vector<8x16xbf16>, vector<8x16xf32> -> vector<8x16xf32>
    %150 = arith.addf %147, %149 : vector<8x16xf32>
    %151 = tpu.reciprocal %145 {approx = true} : vector<8x1xf32> -> vector<8x1xf32>
    %152 = vector.broadcast %151 : vector<8x1xf32> to vector<8x16xf32>
    %153 = arith.mulf %150, %152 : vector<8x16xf32>
    %154 = arith.truncf %153 : vector<8x16xf32> to vector<8x16xbf16>
    %c0_60 = arith.constant 0 : index
    %c0_61 = arith.constant 0 : index
    %155 = vector.load %arg16[%c0_60, %c0_61] : memref<16x64xbf16, #tpu.memory_space<vmem>>, vector<8x16xbf16>
    tpu.vector_store %arg16[%c0_60, %c0_61], %154 {strides = array<i32>} : memref<16x64xbf16, #tpu.memory_space<vmem>>, vector<8x16xbf16>,
    %c0_62 = arith.constant 0 : index
    %c16_63 = arith.constant 16 : index
    %156 = vector.load %arg13[%c0_62, %c16_63] : memref<16x64xbf16, #tpu.memory_space<vmem>>, vector<8x16xbf16>
    %cst_64 = arith.constant -1.000000e+30 : f32
    %157 = vector.broadcast %cst_64 : f32 to vector<8x1xf32>
    %cst_65 = arith.constant 0.000000e+00 : f32
    %158 = vector.broadcast %cst_65 : f32 to vector<8x1xf32>
    %cst_66 = arith.constant 0.000000e+00 : f32
    %159 = vector.broadcast %cst_66 : f32 to vector<8x16xf32>
    %c0_67 = arith.constant 0 : index
    %c16_68 = arith.constant 16 : index
    %160 = vector.load %arg14[%c0_67, %c16_68] : memref<16x64xbf16, #tpu.memory_space<vmem>>, vector<8x16xbf16>
    %c0_69 = arith.constant 0 : index
    %c16_70 = arith.constant 16 : index
    %161 = vector.load %arg15[%c0_69, %c16_70] : memref<16x64xbf16, #tpu.memory_space<vmem>>, vector<8x16xbf16>
    %cst_71 = arith.constant dense<0.000000e+00> : vector<8x8xf32>
    %162 = tpu.matmul %156, %160, %cst_71 {dimension_numbers = #tpu.dot_dimension_numbers<[1], [1], [0], [0], [0, 0, 1, 0], [], []>} : vector<8x16xbf16>, vector<8x16xbf16>, vector<8x8xf32> -> vector<8x8xf32>
    %cst_72 = arith.constant -1.000000e+30 : f32
    %163 = vector.broadcast %cst_72 : f32 to vector<8x8xf32>
    %164 = arith.select %124, %162, %163 : vector<8x8xi1>, vector<8x8xf32>
    %cst_73 = arith.constant dense<0xFF800000> : vector<8xf32>
    %165 = vector.multi_reduction <maximumf>, %164, %cst_73 [1] : vector<8x8xf32> to vector<8xf32>
    %166 = vector.shape_cast %165 : vector<8xf32> to vector<8x1xf32>
    %167 = arith.maximumf %157, %166 : vector<8x1xf32>
    %168 = arith.subf %157, %167 : vector<8x1xf32>
    %169 = math.exp %168 : vector<8x1xf32>
    %170 = vector.broadcast %167 : vector<8x1xf32> to vector<8x8xf32>
    %171 = arith.subf %164, %170 : vector<8x8xf32>
    %172 = math.exp %171 : vector<8x8xf32>
    %173 = arith.mulf %169, %158 : vector<8x1xf32>
    %cst_74 = arith.constant dense<0.000000e+00> : vector<8xf32>
    %174 = vector.multi_reduction <add>, %172, %cst_74 [1] : vector<8x8xf32> to vector<8xf32>
    %175 = vector.shape_cast %174 : vector<8xf32> to vector<8x1xf32>
    %176 = arith.addf %173, %175 : vector<8x1xf32>
    %177 = vector.broadcast %169 : vector<8x1xf32> to vector<8x16xf32>
    %178 = arith.mulf %177, %159 : vector<8x16xf32>
    %179 = arith.truncf %172 : vector<8x8xf32> to vector<8x8xbf16>
    %cst_75 = arith.constant dense<0.000000e+00> : vector<8x16xf32>
    %180 = tpu.matmul %179, %161, %cst_75 {dimension_numbers = #tpu.dot_dimension_numbers<[1], [0], [0], [1], [0, 0, 1, 1], [], []>} : vector<8x8xbf16>, vector<8x16xbf16>, vector<8x16xf32> -> vector<8x16xf32>
    %181 = arith.addf %178, %180 : vector<8x16xf32>
    %182 = tpu.reciprocal %176 {approx = true} : vector<8x1xf32> -> vector<8x1xf32>
    %183 = vector.broadcast %182 : vector<8x1xf32> to vector<8x16xf32>
    %184 = arith.mulf %181, %183 : vector<8x16xf32>
    %185 = arith.truncf %184 : vector<8x16xf32> to vector<8x16xbf16>
    %c0_76 = arith.constant 0 : index
    %c16_77 = arith.constant 16 : index
    %186 = vector.load %arg16[%c0_76, %c16_77] : memref<16x64xbf16, #tpu.memory_space<vmem>>, vector<8x16xbf16>
    tpu.vector_store %arg16[%c0_76, %c16_77], %185 {strides = array<i32>} : memref<16x64xbf16, #tpu.memory_space<vmem>>, vector<8x16xbf16>,
    %c0_78 = arith.constant 0 : index
    %c32_79 = arith.constant 32 : index
    %187 = vector.load %arg13[%c0_78, %c32_79] : memref<16x64xbf16, #tpu.memory_space<vmem>>, vector<8x16xbf16>
    %cst_80 = arith.constant -1.000000e+30 : f32
    %188 = vector.broadcast %cst_80 : f32 to vector<8x1xf32>
    %cst_81 = arith.constant 0.000000e+00 : f32
    %189 = vector.broadcast %cst_81 : f32 to vector<8x1xf32>
    %cst_82 = arith.constant 0.000000e+00 : f32
    %190 = vector.broadcast %cst_82 : f32 to vector<8x16xf32>
    %c0_83 = arith.constant 0 : index
    %c32_84 = arith.constant 32 : index
    %191 = vector.load %arg14[%c0_83, %c32_84] : memref<16x64xbf16, #tpu.memory_space<vmem>>, vector<8x16xbf16>
    %c0_85 = arith.constant 0 : index
    %c32_86 = arith.constant 32 : index
    %192 = vector.load %arg15[%c0_85, %c32_86] : memref<16x64xbf16, #tpu.memory_space<vmem>>, vector<8x16xbf16>
    %cst_87 = arith.constant dense<0.000000e+00> : vector<8x8xf32>
    %193 = tpu.matmul %187, %191, %cst_87 {dimension_numbers = #tpu.dot_dimension_numbers<[1], [1], [0], [0], [0, 0, 1, 0], [], []>} : vector<8x16xbf16>, vector<8x16xbf16>, vector<8x8xf32> -> vector<8x8xf32>
    %cst_88 = arith.constant -1.000000e+30 : f32
    %194 = vector.broadcast %cst_88 : f32 to vector<8x8xf32>
    %195 = arith.select %124, %193, %194 : vector<8x8xi1>, vector<8x8xf32>
    %cst_89 = arith.constant dense<0xFF800000> : vector<8xf32>
    %196 = vector.multi_reduction <maximumf>, %195, %cst_89 [1] : vector<8x8xf32> to vector<8xf32>
    %197 = vector.shape_cast %196 : vector<8xf32> to vector<8x1xf32>
    %198 = arith.maximumf %188, %197 : vector<8x1xf32>
    %199 = arith.subf %188, %198 : vector<8x1xf32>
    %200 = math.exp %199 : vector<8x1xf32>
    %201 = vector.broadcast %198 : vector<8x1xf32> to vector<8x8xf32>
    %202 = arith.subf %195, %201 : vector<8x8xf32>
    %203 = math.exp %202 : vector<8x8xf32>
    %204 = arith.mulf %200, %189 : vector<8x1xf32>
    %cst_90 = arith.constant dense<0.000000e+00> : vector<8xf32>
    %205 = vector.multi_reduction <add>, %203, %cst_90 [1] : vector<8x8xf32> to vector<8xf32>
    %206 = vector.shape_cast %205 : vector<8xf32> to vector<8x1xf32>
    %207 = arith.addf %204, %206 : vector<8x1xf32>
    %208 = vector.broadcast %200 : vector<8x1xf32> to vector<8x16xf32>
    %209 = arith.mulf %208, %190 : vector<8x16xf32>
    %210 = arith.truncf %203 : vector<8x8xf32> to vector<8x8xbf16>
    %cst_91 = arith.constant dense<0.000000e+00> : vector<8x16xf32>
    %211 = tpu.matmul %210, %192, %cst_91 {dimension_numbers = #tpu.dot_dimension_numbers<[1], [0], [0], [1], [0, 0, 1, 1], [], []>} : vector<8x8xbf16>, vector<8x16xbf16>, vector<8x16xf32> -> vector<8x16xf32>
    %212 = arith.addf %209, %211 : vector<8x16xf32>
    %213 = tpu.reciprocal %207 {approx = true} : vector<8x1xf32> -> vector<8x1xf32>
    %214 = vector.broadcast %213 : vector<8x1xf32> to vector<8x16xf32>
    %215 = arith.mulf %212, %214 : vector<8x16xf32>
    %216 = arith.truncf %215 : vector<8x16xf32> to vector<8x16xbf16>
    %c0_92 = arith.constant 0 : index
    %c32_93 = arith.constant 32 : index
    %217 = vector.load %arg16[%c0_92, %c32_93] : memref<16x64xbf16, #tpu.memory_space<vmem>>, vector<8x16xbf16>
    tpu.vector_store %arg16[%c0_92, %c32_93], %216 {strides = array<i32>} : memref<16x64xbf16, #tpu.memory_space<vmem>>, vector<8x16xbf16>,
    %c0_94 = arith.constant 0 : index
    %c48_95 = arith.constant 48 : index
    %218 = vector.load %arg13[%c0_94, %c48_95] : memref<16x64xbf16, #tpu.memory_space<vmem>>, vector<8x16xbf16>
    %cst_96 = arith.constant -1.000000e+30 : f32
    %219 = vector.broadcast %cst_96 : f32 to vector<8x1xf32>
    %cst_97 = arith.constant 0.000000e+00 : f32
    %220 = vector.broadcast %cst_97 : f32 to vector<8x1xf32>
    %cst_98 = arith.constant 0.000000e+00 : f32
    %221 = vector.broadcast %cst_98 : f32 to vector<8x16xf32>
    %c0_99 = arith.constant 0 : index
    %c48_100 = arith.constant 48 : index
    %222 = vector.load %arg14[%c0_99, %c48_100] : memref<16x64xbf16, #tpu.memory_space<vmem>>, vector<8x16xbf16>
    %c0_101 = arith.constant 0 : index
    %c48_102 = arith.constant 48 : index
    %223 = vector.load %arg15[%c0_101, %c48_102] : memref<16x64xbf16, #tpu.memory_space<vmem>>, vector<8x16xbf16>
    %cst_103 = arith.constant dense<0.000000e+00> : vector<8x8xf32>
    %224 = tpu.matmul %218, %222, %cst_103 {dimension_numbers = #tpu.dot_dimension_numbers<[1], [1], [0], [0], [0, 0, 1, 0], [], []>} : vector<8x16xbf16>, vector<8x16xbf16>, vector<8x8xf32> -> vector<8x8xf32>
    %cst_104 = arith.constant -1.000000e+30 : f32
    %225 = vector.broadcast %cst_104 : f32 to vector<8x8xf32>
    %226 = arith.select %124, %224, %225 : vector<8x8xi1>, vector<8x8xf32>
    %cst_105 = arith.constant dense<0xFF800000> : vector<8xf32>
    %227 = vector.multi_reduction <maximumf>, %226, %cst_105 [1] : vector<8x8xf32> to vector<8xf32>
    %228 = vector.shape_cast %227 : vector<8xf32> to vector<8x1xf32>
    %229 = arith.maximumf %219, %228 : vector<8x1xf32>
    %230 = arith.subf %219, %229 : vector<8x1xf32>
    %231 = math.exp %230 : vector<8x1xf32>
    %232 = vector.broadcast %229 : vector<8x1xf32> to vector<8x8xf32>
    %233 = arith.subf %226, %232 : vector<8x8xf32>
    %234 = math.exp %233 : vector<8x8xf32>
    %235 = arith.mulf %231, %220 : vector<8x1xf32>
    %cst_106 = arith.constant dense<0.000000e+00> : vector<8xf32>
    %236 = vector.multi_reduction <add>, %234, %cst_106 [1] : vector<8x8xf32> to vector<8xf32>
    %237 = vector.shape_cast %236 : vector<8xf32> to vector<8x1xf32>
    %238 = arith.addf %235, %237 : vector<8x1xf32>
    %239 = vector.broadcast %231 : vector<8x1xf32> to vector<8x16xf32>
    %240 = arith.mulf %239, %221 : vector<8x16xf32>
    %241 = arith.truncf %234 : vector<8x8xf32> to vector<8x8xbf16>
    %cst_107 = arith.constant dense<0.000000e+00> : vector<8x16xf32>
    %242 = tpu.matmul %241, %223, %cst_107 {dimension_numbers = #tpu.dot_dimension_numbers<[1], [0], [0], [1], [0, 0, 1, 1], [], []>} : vector<8x8xbf16>, vector<8x16xbf16>, vector<8x16xf32> -> vector<8x16xf32>
    %243 = arith.addf %240, %242 : vector<8x16xf32>
    %244 = tpu.reciprocal %238 {approx = true} : vector<8x1xf32> -> vector<8x1xf32>
    %245 = vector.broadcast %244 : vector<8x1xf32> to vector<8x16xf32>
    %246 = arith.mulf %243, %245 : vector<8x16xf32>
    %247 = arith.truncf %246 : vector<8x16xf32> to vector<8x16xbf16>
    %c0_108 = arith.constant 0 : index
    %c48_109 = arith.constant 48 : index
    %248 = vector.load %arg16[%c0_108, %c48_109] : memref<16x64xbf16, #tpu.memory_space<vmem>>, vector<8x16xbf16>
    tpu.vector_store %arg16[%c0_108, %c48_109], %247 {strides = array<i32>} : memref<16x64xbf16, #tpu.memory_space<vmem>>, vector<8x16xbf16>,
    %c8_110 = arith.constant 8 : index
    %c0_111 = arith.constant 0 : index
    %249 = vector.load %arg13[%c8_110, %c0_111] : memref<16x64xbf16, #tpu.memory_space<vmem>>, vector<8x16xbf16>
    %cst_112 = arith.constant -1.000000e+30 : f32
    %250 = vector.broadcast %cst_112 : f32 to vector<8x1xf32>
    %cst_113 = arith.constant 0.000000e+00 : f32
    %251 = vector.broadcast %cst_113 : f32 to vector<8x1xf32>
    %cst_114 = arith.constant 0.000000e+00 : f32
    %252 = vector.broadcast %cst_114 : f32 to vector<8x16xf32>
    %c0_i32 = arith.constant 0 : i32
    %c8_i32 = arith.constant 8 : i32
    %253 = arith.muli %c0_i32, %c8_i32 : i32
    %254 = tpu.assume_multiple %253, 8 : i32
    %255 = arith.index_cast %254 : i32 to index
    %c0_115 = arith.constant 0 : index
    %256 = vector.load %arg14[%255, %c0_115] : memref<16x64xbf16, #tpu.memory_space<vmem>>, vector<8x16xbf16>
    %257 = arith.index_cast %254 : i32 to index
    %c0_116 = arith.constant 0 : index
    %258 = vector.load %arg15[%257, %c0_116] : memref<16x64xbf16, #tpu.memory_space<vmem>>, vector<8x16xbf16>
    %cst_117 = arith.constant dense<0.000000e+00> : vector<8x8xf32>
    %259 = tpu.matmul %249, %256, %cst_117 {dimension_numbers = #tpu.dot_dimension_numbers<[1], [1], [0], [0], [0, 0, 1, 0], [], []>} : vector<8x16xbf16>, vector<8x16xbf16>, vector<8x8xf32> -> vector<8x8xf32>
    %cst_118 = arith.constant dense<0xFF800000> : vector<8xf32>
    %260 = vector.multi_reduction <maximumf>, %259, %cst_118 [1] : vector<8x8xf32> to vector<8xf32>
    %261 = vector.shape_cast %260 : vector<8xf32> to vector<8x1xf32>
    %262 = arith.maximumf %250, %261 : vector<8x1xf32>
    %263 = arith.subf %250, %262 : vector<8x1xf32>
    %264 = math.exp %263 : vector<8x1xf32>
    %265 = vector.broadcast %262 : vector<8x1xf32> to vector<8x8xf32>
    %266 = arith.subf %259, %265 : vector<8x8xf32>
    %267 = math.exp %266 : vector<8x8xf32>
    %268 = arith.mulf %264, %251 : vector<8x1xf32>
    %cst_119 = arith.constant dense<0.000000e+00> : vector<8xf32>
    %269 = vector.multi_reduction <add>, %267, %cst_119 [1] : vector<8x8xf32> to vector<8xf32>
    %270 = vector.shape_cast %269 : vector<8xf32> to vector<8x1xf32>
    %271 = arith.addf %268, %270 : vector<8x1xf32>
    %272 = vector.broadcast %264 : vector<8x1xf32> to vector<8x16xf32>
    %273 = arith.mulf %272, %252 : vector<8x16xf32>
    %274 = arith.truncf %267 : vector<8x8xf32> to vector<8x8xbf16>
    %cst_120 = arith.constant dense<0.000000e+00> : vector<8x16xf32>
    %275 = tpu.matmul %274, %258, %cst_120 {dimension_numbers = #tpu.dot_dimension_numbers<[1], [0], [0], [1], [0, 0, 1, 1], [], []>} : vector<8x8xbf16>, vector<8x16xbf16>, vector<8x16xf32> -> vector<8x16xf32>
    %276 = arith.addf %273, %275 : vector<8x16xf32>
    %c1_i32 = arith.constant 1 : i32
    %c8_121 = arith.constant 8 : index
    %c0_122 = arith.constant 0 : index
    %277 = vector.load %arg14[%c8_121, %c0_122] : memref<16x64xbf16, #tpu.memory_space<vmem>>, vector<8x16xbf16>
    %c8_123 = arith.constant 8 : index
    %c0_124 = arith.constant 0 : index
    %278 = vector.load %arg15[%c8_123, %c0_124] : memref<16x64xbf16, #tpu.memory_space<vmem>>, vector<8x16xbf16>
    %cst_125 = arith.constant dense<0.000000e+00> : vector<8x8xf32>
    %279 = tpu.matmul %249, %277, %cst_125 {dimension_numbers = #tpu.dot_dimension_numbers<[1], [1], [0], [0], [0, 0, 1, 0], [], []>} : vector<8x16xbf16>, vector<8x16xbf16>, vector<8x8xf32> -> vector<8x8xf32>
    %cst_126 = arith.constant -1.000000e+30 : f32
    %280 = vector.broadcast %cst_126 : f32 to vector<8x8xf32>
    %281 = arith.select %124, %279, %280 : vector<8x8xi1>, vector<8x8xf32>
    %cst_127 = arith.constant dense<0xFF800000> : vector<8xf32>
    %282 = vector.multi_reduction <maximumf>, %281, %cst_127 [1] : vector<8x8xf32> to vector<8xf32>
    %283 = vector.shape_cast %282 : vector<8xf32> to vector<8x1xf32>
    %284 = arith.maximumf %262, %283 : vector<8x1xf32>
    %285 = arith.subf %262, %284 : vector<8x1xf32>
    %286 = math.exp %285 : vector<8x1xf32>
    %287 = vector.broadcast %284 : vector<8x1xf32> to vector<8x8xf32>
    %288 = arith.subf %281, %287 : vector<8x8xf32>
    %289 = math.exp %288 : vector<8x8xf32>
    %290 = arith.mulf %286, %271 : vector<8x1xf32>
    %cst_128 = arith.constant dense<0.000000e+00> : vector<8xf32>
    %291 = vector.multi_reduction <add>, %289, %cst_128 [1] : vector<8x8xf32> to vector<8xf32>
    %292 = vector.shape_cast %291 : vector<8xf32> to vector<8x1xf32>
    %293 = arith.addf %290, %292 : vector<8x1xf32>
    %294 = vector.broadcast %286 : vector<8x1xf32> to vector<8x16xf32>
    %295 = arith.mulf %294, %276 : vector<8x16xf32>
    %296 = arith.truncf %289 : vector<8x8xf32> to vector<8x8xbf16>
    %cst_129 = arith.constant dense<0.000000e+00> : vector<8x16xf32>
    %297 = tpu.matmul %296, %278, %cst_129 {dimension_numbers = #tpu.dot_dimension_numbers<[1], [0], [0], [1], [0, 0, 1, 1], [], []>} : vector<8x8xbf16>, vector<8x16xbf16>, vector<8x16xf32> -> vector<8x16xf32>
    %298 = arith.addf %295, %297 : vector<8x16xf32>
    %299 = tpu.reciprocal %293 {approx = true} : vector<8x1xf32> -> vector<8x1xf32>
    %300 = vector.broadcast %299 : vector<8x1xf32> to vector<8x16xf32>
    %301 = arith.mulf %298, %300 : vector<8x16xf32>
    %302 = arith.truncf %301 : vector<8x16xf32> to vector<8x16xbf16>
    %c8_130 = arith.constant 8 : index
    %c0_131 = arith.constant 0 : index
    %303 = vector.load %arg16[%c8_130, %c0_131] : memref<16x64xbf16, #tpu.memory_space<vmem>>, vector<8x16xbf16>
    tpu.vector_store %arg16[%c8_130, %c0_131], %302 {strides = array<i32>} : memref<16x64xbf16, #tpu.memory_space<vmem>>, vector<8x16xbf16>,
    %c8_132 = arith.constant 8 : index
    %c16_133 = arith.constant 16 : index
    %304 = vector.load %arg13[%c8_132, %c16_133] : memref<16x64xbf16, #tpu.memory_space<vmem>>, vector<8x16xbf16>
    %cst_134 = arith.constant -1.000000e+30 : f32
    %305 = vector.broadcast %cst_134 : f32 to vector<8x1xf32>
    %cst_135 = arith.constant 0.000000e+00 : f32
    %306 = vector.broadcast %cst_135 : f32 to vector<8x1xf32>
    %cst_136 = arith.constant 0.000000e+00 : f32
    %307 = vector.broadcast %cst_136 : f32 to vector<8x16xf32>
    %c0_i32_137 = arith.constant 0 : i32
    %c8_i32_138 = arith.constant 8 : i32
    %308 = arith.muli %c0_i32_137, %c8_i32_138 : i32
    %309 = tpu.assume_multiple %308, 8 : i32
    %310 = arith.index_cast %309 : i32 to index
    %c16_139 = arith.constant 16 : index
    %311 = vector.load %arg14[%310, %c16_139] : memref<16x64xbf16, #tpu.memory_space<vmem>>, vector<8x16xbf16>
    %312 = arith.index_cast %309 : i32 to index
    %c16_140 = arith.constant 16 : index
    %313 = vector.load %arg15[%312, %c16_140] : memref<16x64xbf16, #tpu.memory_space<vmem>>, vector<8x16xbf16>
    %cst_141 = arith.constant dense<0.000000e+00> : vector<8x8xf32>
    %314 = tpu.matmul %304, %311, %cst_141 {dimension_numbers = #tpu.dot_dimension_numbers<[1], [1], [0], [0], [0, 0, 1, 0], [], []>} : vector<8x16xbf16>, vector<8x16xbf16>, vector<8x8xf32> -> vector<8x8xf32>
    %cst_142 = arith.constant dense<0xFF800000> : vector<8xf32>
    %315 = vector.multi_reduction <maximumf>, %314, %cst_142 [1] : vector<8x8xf32> to vector<8xf32>
    %316 = vector.shape_cast %315 : vector<8xf32> to vector<8x1xf32>
    %317 = arith.maximumf %305, %316 : vector<8x1xf32>
    %318 = arith.subf %305, %317 : vector<8x1xf32>
    %319 = math.exp %318 : vector<8x1xf32>
    %320 = vector.broadcast %317 : vector<8x1xf32> to vector<8x8xf32>
    %321 = arith.subf %314, %320 : vector<8x8xf32>
    %322 = math.exp %321 : vector<8x8xf32>
    %323 = arith.mulf %319, %306 : vector<8x1xf32>
    %cst_143 = arith.constant dense<0.000000e+00> : vector<8xf32>
    %324 = vector.multi_reduction <add>, %322, %cst_143 [1] : vector<8x8xf32> to vector<8xf32>
    %325 = vector.shape_cast %324 : vector<8xf32> to vector<8x1xf32>
    %326 = arith.addf %323, %325 : vector<8x1xf32>
    %327 = vector.broadcast %319 : vector<8x1xf32> to vector<8x16xf32>
    %328 = arith.mulf %327, %307 : vector<8x16xf32>
    %329 = arith.truncf %322 : vector<8x8xf32> to vector<8x8xbf16>
    %cst_144 = arith.constant dense<0.000000e+00> : vector<8x16xf32>
    %330 = tpu.matmul %329, %313, %cst_144 {dimension_numbers = #tpu.dot_dimension_numbers<[1], [0], [0], [1], [0, 0, 1, 1], [], []>} : vector<8x8xbf16>, vector<8x16xbf16>, vector<8x16xf32> -> vector<8x16xf32>
    %331 = arith.addf %328, %330 : vector<8x16xf32>
    %c1_i32_145 = arith.constant 1 : i32
    %c8_146 = arith.constant 8 : index
    %c16_147 = arith.constant 16 : index
    %332 = vector.load %arg14[%c8_146, %c16_147] : memref<16x64xbf16, #tpu.memory_space<vmem>>, vector<8x16xbf16>
    %c8_148 = arith.constant 8 : index
    %c16_149 = arith.constant 16 : index
    %333 = vector.load %arg15[%c8_148, %c16_149] : memref<16x64xbf16, #tpu.memory_space<vmem>>, vector<8x16xbf16>
    %cst_150 = arith.constant dense<0.000000e+00> : vector<8x8xf32>
    %334 = tpu.matmul %304, %332, %cst_150 {dimension_numbers = #tpu.dot_dimension_numbers<[1], [1], [0], [0], [0, 0, 1, 0], [], []>} : vector<8x16xbf16>, vector<8x16xbf16>, vector<8x8xf32> -> vector<8x8xf32>
    %cst_151 = arith.constant -1.000000e+30 : f32
    %335 = vector.broadcast %cst_151 : f32 to vector<8x8xf32>
    %336 = arith.select %124, %334, %335 : vector<8x8xi1>, vector<8x8xf32>
    %cst_152 = arith.constant dense<0xFF800000> : vector<8xf32>
    %337 = vector.multi_reduction <maximumf>, %336, %cst_152 [1] : vector<8x8xf32> to vector<8xf32>
    %338 = vector.shape_cast %337 : vector<8xf32> to vector<8x1xf32>
    %339 = arith.maximumf %317, %338 : vector<8x1xf32>
    %340 = arith.subf %317, %339 : vector<8x1xf32>
    %341 = math.exp %340 : vector<8x1xf32>
    %342 = vector.broadcast %339 : vector<8x1xf32> to vector<8x8xf32>
    %343 = arith.subf %336, %342 : vector<8x8xf32>
    %344 = math.exp %343 : vector<8x8xf32>
    %345 = arith.mulf %341, %326 : vector<8x1xf32>
    %cst_153 = arith.constant dense<0.000000e+00> : vector<8xf32>
    %346 = vector.multi_reduction <add>, %344, %cst_153 [1] : vector<8x8xf32> to vector<8xf32>
    %347 = vector.shape_cast %346 : vector<8xf32> to vector<8x1xf32>
    %348 = arith.addf %345, %347 : vector<8x1xf32>
    %349 = vector.broadcast %341 : vector<8x1xf32> to vector<8x16xf32>
    %350 = arith.mulf %349, %331 : vector<8x16xf32>
    %351 = arith.truncf %344 : vector<8x8xf32> to vector<8x8xbf16>
    %cst_154 = arith.constant dense<0.000000e+00> : vector<8x16xf32>
    %352 = tpu.matmul %351, %333, %cst_154 {dimension_numbers = #tpu.dot_dimension_numbers<[1], [0], [0], [1], [0, 0, 1, 1], [], []>} : vector<8x8xbf16>, vector<8x16xbf16>, vector<8x16xf32> -> vector<8x16xf32>
    %353 = arith.addf %350, %352 : vector<8x16xf32>
    %354 = tpu.reciprocal %348 {approx = true} : vector<8x1xf32> -> vector<8x1xf32>
    %355 = vector.broadcast %354 : vector<8x1xf32> to vector<8x16xf32>
    %356 = arith.mulf %353, %355 : vector<8x16xf32>
    %357 = arith.truncf %356 : vector<8x16xf32> to vector<8x16xbf16>
    %c8_155 = arith.constant 8 : index
    %c16_156 = arith.constant 16 : index
    %358 = vector.load %arg16[%c8_155, %c16_156] : memref<16x64xbf16, #tpu.memory_space<vmem>>, vector<8x16xbf16>
    tpu.vector_store %arg16[%c8_155, %c16_156], %357 {strides = array<i32>} : memref<16x64xbf16, #tpu.memory_space<vmem>>, vector<8x16xbf16>,
    %c8_157 = arith.constant 8 : index
    %c32_158 = arith.constant 32 : index
    %359 = vector.load %arg13[%c8_157, %c32_158] : memref<16x64xbf16, #tpu.memory_space<vmem>>, vector<8x16xbf16>
    %cst_159 = arith.constant -1.000000e+30 : f32
    %360 = vector.broadcast %cst_159 : f32 to vector<8x1xf32>
    %cst_160 = arith.constant 0.000000e+00 : f32
    %361 = vector.broadcast %cst_160 : f32 to vector<8x1xf32>
    %cst_161 = arith.constant 0.000000e+00 : f32
    %362 = vector.broadcast %cst_161 : f32 to vector<8x16xf32>
    %c0_i32_162 = arith.constant 0 : i32
    %c8_i32_163 = arith.constant 8 : i32
    %363 = arith.muli %c0_i32_162, %c8_i32_163 : i32
    %364 = tpu.assume_multiple %363, 8 : i32
    %365 = arith.index_cast %364 : i32 to index
    %c32_164 = arith.constant 32 : index
    %366 = vector.load %arg14[%365, %c32_164] : memref<16x64xbf16, #tpu.memory_space<vmem>>, vector<8x16xbf16>
    %367 = arith.index_cast %364 : i32 to index
    %c32_165 = arith.constant 32 : index
    %368 = vector.load %arg15[%367, %c32_165] : memref<16x64xbf16, #tpu.memory_space<vmem>>, vector<8x16xbf16>
    %cst_166 = arith.constant dense<0.000000e+00> : vector<8x8xf32>
    %369 = tpu.matmul %359, %366, %cst_166 {dimension_numbers = #tpu.dot_dimension_numbers<[1], [1], [0], [0], [0, 0, 1, 0], [], []>} : vector<8x16xbf16>, vector<8x16xbf16>, vector<8x8xf32> -> vector<8x8xf32>
    %cst_167 = arith.constant dense<0xFF800000> : vector<8xf32>
    %370 = vector.multi_reduction <maximumf>, %369, %cst_167 [1] : vector<8x8xf32> to vector<8xf32>
    %371 = vector.shape_cast %370 : vector<8xf32> to vector<8x1xf32>
    %372 = arith.maximumf %360, %371 : vector<8x1xf32>
    %373 = arith.subf %360, %372 : vector<8x1xf32>
    %374 = math.exp %373 : vector<8x1xf32>
    %375 = vector.broadcast %372 : vector<8x1xf32> to vector<8x8xf32>
    %376 = arith.subf %369, %375 : vector<8x8xf32>
    %377 = math.exp %376 : vector<8x8xf32>
    %378 = arith.mulf %374, %361 : vector<8x1xf32>
    %cst_168 = arith.constant dense<0.000000e+00> : vector<8xf32>
    %379 = vector.multi_reduction <add>, %377, %cst_168 [1] : vector<8x8xf32> to vector<8xf32>
    %380 = vector.shape_cast %379 : vector<8xf32> to vector<8x1xf32>
    %381 = arith.addf %378, %380 : vector<8x1xf32>
    %382 = vector.broadcast %374 : vector<8x1xf32> to vector<8x16xf32>
    %383 = arith.mulf %382, %362 : vector<8x16xf32>
    %384 = arith.truncf %377 : vector<8x8xf32> to vector<8x8xbf16>
    %cst_169 = arith.constant dense<0.000000e+00> : vector<8x16xf32>
    %385 = tpu.matmul %384, %368, %cst_169 {dimension_numbers = #tpu.dot_dimension_numbers<[1], [0], [0], [1], [0, 0, 1, 1], [], []>} : vector<8x8xbf16>, vector<8x16xbf16>, vector<8x16xf32> -> vector<8x16xf32>
    %386 = arith.addf %383, %385 : vector<8x16xf32>
    %c1_i32_170 = arith.constant 1 : i32
    %c8_171 = arith.constant 8 : index
    %c32_172 = arith.constant 32 : index
    %387 = vector.load %arg14[%c8_171, %c32_172] : memref<16x64xbf16, #tpu.memory_space<vmem>>, vector<8x16xbf16>
    %c8_173 = arith.constant 8 : index
    %c32_174 = arith.constant 32 : index
    %388 = vector.load %arg15[%c8_173, %c32_174] : memref<16x64xbf16, #tpu.memory_space<vmem>>, vector<8x16xbf16>
    %cst_175 = arith.constant dense<0.000000e+00> : vector<8x8xf32>
    %389 = tpu.matmul %359, %387, %cst_175 {dimension_numbers = #tpu.dot_dimension_numbers<[1], [1], [0], [0], [0, 0, 1, 0], [], []>} : vector<8x16xbf16>, vector<8x16xbf16>, vector<8x8xf32> -> vector<8x8xf32>
    %cst_176 = arith.constant -1.000000e+30 : f32
    %390 = vector.broadcast %cst_176 : f32 to vector<8x8xf32>
    %391 = arith.select %124, %389, %390 : vector<8x8xi1>, vector<8x8xf32>
    %cst_177 = arith.constant dense<0xFF800000> : vector<8xf32>
    %392 = vector.multi_reduction <maximumf>, %391, %cst_177 [1] : vector<8x8xf32> to vector<8xf32>
    %393 = vector.shape_cast %392 : vector<8xf32> to vector<8x1xf32>
    %394 = arith.maximumf %372, %393 : vector<8x1xf32>
    %395 = arith.subf %372, %394 : vector<8x1xf32>
    %396 = math.exp %395 : vector<8x1xf32>
    %397 = vector.broadcast %394 : vector<8x1xf32> to vector<8x8xf32>
    %398 = arith.subf %391, %397 : vector<8x8xf32>
    %399 = math.exp %398 : vector<8x8xf32>
    %400 = arith.mulf %396, %381 : vector<8x1xf32>
    %cst_178 = arith.constant dense<0.000000e+00> : vector<8xf32>
    %401 = vector.multi_reduction <add>, %399, %cst_178 [1] : vector<8x8xf32> to vector<8xf32>
    %402 = vector.shape_cast %401 : vector<8xf32> to vector<8x1xf32>
    %403 = arith.addf %400, %402 : vector<8x1xf32>
    %404 = vector.broadcast %396 : vector<8x1xf32> to vector<8x16xf32>
    %405 = arith.mulf %404, %386 : vector<8x16xf32>
    %406 = arith.truncf %399 : vector<8x8xf32> to vector<8x8xbf16>
    %cst_179 = arith.constant dense<0.000000e+00> : vector<8x16xf32>
    %407 = tpu.matmul %406, %388, %cst_179 {dimension_numbers = #tpu.dot_dimension_numbers<[1], [0], [0], [1], [0, 0, 1, 1], [], []>} : vector<8x8xbf16>, vector<8x16xbf16>, vector<8x16xf32> -> vector<8x16xf32>
    %408 = arith.addf %405, %407 : vector<8x16xf32>
    %409 = tpu.reciprocal %403 {approx = true} : vector<8x1xf32> -> vector<8x1xf32>
    %410 = vector.broadcast %409 : vector<8x1xf32> to vector<8x16xf32>
    %411 = arith.mulf %408, %410 : vector<8x16xf32>
    %412 = arith.truncf %411 : vector<8x16xf32> to vector<8x16xbf16>
    %c8_180 = arith.constant 8 : index
    %c32_181 = arith.constant 32 : index
    %413 = vector.load %arg16[%c8_180, %c32_181] : memref<16x64xbf16, #tpu.memory_space<vmem>>, vector<8x16xbf16>
    tpu.vector_store %arg16[%c8_180, %c32_181], %412 {strides = array<i32>} : memref<16x64xbf16, #tpu.memory_space<vmem>>, vector<8x16xbf16>,
    %c8_182 = arith.constant 8 : index
    %c48_183 = arith.constant 48 : index
    %414 = vector.load %arg13[%c8_182, %c48_183] : memref<16x64xbf16, #tpu.memory_space<vmem>>, vector<8x16xbf16>
    %cst_184 = arith.constant -1.000000e+30 : f32
    %415 = vector.broadcast %cst_184 : f32 to vector<8x1xf32>
    %cst_185 = arith.constant 0.000000e+00 : f32
    %416 = vector.broadcast %cst_185 : f32 to vector<8x1xf32>
    %cst_186 = arith.constant 0.000000e+00 : f32
    %417 = vector.broadcast %cst_186 : f32 to vector<8x16xf32>
    %c0_i32_187 = arith.constant 0 : i32
    %c8_i32_188 = arith.constant 8 : i32
    %418 = arith.muli %c0_i32_187, %c8_i32_188 : i32
    %419 = tpu.assume_multiple %418, 8 : i32
    %420 = arith.index_cast %419 : i32 to index
    %c48_189 = arith.constant 48 : index
    %421 = vector.load %arg14[%420, %c48_189] : memref<16x64xbf16, #tpu.memory_space<vmem>>, vector<8x16xbf16>
    %422 = arith.index_cast %419 : i32 to index
    %c48_190 = arith.constant 48 : index
    %423 = vector.load %arg15[%422, %c48_190] : memref<16x64xbf16, #tpu.memory_space<vmem>>, vector<8x16xbf16>
    %cst_191 = arith.constant dense<0.000000e+00> : vector<8x8xf32>
    %424 = tpu.matmul %414, %421, %cst_191 {dimension_numbers = #tpu.dot_dimension_numbers<[1], [1], [0], [0], [0, 0, 1, 0], [], []>} : vector<8x16xbf16>, vector<8x16xbf16>, vector<8x8xf32> -> vector<8x8xf32>
    %cst_192 = arith.constant dense<0xFF800000> : vector<8xf32>
    %425 = vector.multi_reduction <maximumf>, %424, %cst_192 [1] : vector<8x8xf32> to vector<8xf32>
    %426 = vector.shape_cast %425 : vector<8xf32> to vector<8x1xf32>
    %427 = arith.maximumf %415, %426 : vector<8x1xf32>
    %428 = arith.subf %415, %427 : vector<8x1xf32>
    %429 = math.exp %428 : vector<8x1xf32>
    %430 = vector.broadcast %427 : vector<8x1xf32> to vector<8x8xf32>
    %431 = arith.subf %424, %430 : vector<8x8xf32>
    %432 = math.exp %431 : vector<8x8xf32>
    %433 = arith.mulf %429, %416 : vector<8x1xf32>
    %cst_193 = arith.constant dense<0.000000e+00> : vector<8xf32>
    %434 = vector.multi_reduction <add>, %432, %cst_193 [1] : vector<8x8xf32> to vector<8xf32>
    %435 = vector.shape_cast %434 : vector<8xf32> to vector<8x1xf32>
    %436 = arith.addf %433, %435 : vector<8x1xf32>
    %437 = vector.broadcast %429 : vector<8x1xf32> to vector<8x16xf32>
    %438 = arith.mulf %437, %417 : vector<8x16xf32>
    %439 = arith.truncf %432 : vector<8x8xf32> to vector<8x8xbf16>
    %cst_194 = arith.constant dense<0.000000e+00> : vector<8x16xf32>
    %440 = tpu.matmul %439, %423, %cst_194 {dimension_numbers = #tpu.dot_dimension_numbers<[1], [0], [0], [1], [0, 0, 1, 1], [], []>} : vector<8x8xbf16>, vector<8x16xbf16>, vector<8x16xf32> -> vector<8x16xf32>
    %441 = arith.addf %438, %440 : vector<8x16xf32>
    %c1_i32_195 = arith.constant 1 : i32
    %c8_196 = arith.constant 8 : index
    %c48_197 = arith.constant 48 : index
    %442 = vector.load %arg14[%c8_196, %c48_197] : memref<16x64xbf16, #tpu.memory_space<vmem>>, vector<8x16xbf16>
    %c8_198 = arith.constant 8 : index
    %c48_199 = arith.constant 48 : index
    %443 = vector.load %arg15[%c8_198, %c48_199] : memref<16x64xbf16, #tpu.memory_space<vmem>>, vector<8x16xbf16>
    %cst_200 = arith.constant dense<0.000000e+00> : vector<8x8xf32>
    %444 = tpu.matmul %414, %442, %cst_200 {dimension_numbers = #tpu.dot_dimension_numbers<[1], [1], [0], [0], [0, 0, 1, 0], [], []>} : vector<8x16xbf16>, vector<8x16xbf16>, vector<8x8xf32> -> vector<8x8xf32>
    %cst_201 = arith.constant -1.000000e+30 : f32
    %445 = vector.broadcast %cst_201 : f32 to vector<8x8xf32>
    %446 = arith.select %124, %444, %445 : vector<8x8xi1>, vector<8x8xf32>
    %cst_202 = arith.constant dense<0xFF800000> : vector<8xf32>
    %447 = vector.multi_reduction <maximumf>, %446, %cst_202 [1] : vector<8x8xf32> to vector<8xf32>
    %448 = vector.shape_cast %447 : vector<8xf32> to vector<8x1xf32>
    %449 = arith.maximumf %427, %448 : vector<8x1xf32>
    %450 = arith.subf %427, %449 : vector<8x1xf32>
    %451 = math.exp %450 : vector<8x1xf32>
    %452 = vector.broadcast %449 : vector<8x1xf32> to vector<8x8xf32>
    %453 = arith.subf %446, %452 : vector<8x8xf32>
    %454 = math.exp %453 : vector<8x8xf32>
    %455 = arith.mulf %451, %436 : vector<8x1xf32>
    %cst_203 = arith.constant dense<0.000000e+00> : vector<8xf32>
    %456 = vector.multi_reduction <add>, %454, %cst_203 [1] : vector<8x8xf32> to vector<8xf32>
    %457 = vector.shape_cast %456 : vector<8xf32> to vector<8x1xf32>
    %458 = arith.addf %455, %457 : vector<8x1xf32>
    %459 = vector.broadcast %451 : vector<8x1xf32> to vector<8x16xf32>
    %460 = arith.mulf %459, %441 : vector<8x16xf32>
    %461 = arith.truncf %454 : vector<8x8xf32> to vector<8x8xbf16>
    %cst_204 = arith.constant dense<0.000000e+00> : vector<8x16xf32>
    %462 = tpu.matmul %461, %443, %cst_204 {dimension_numbers = #tpu.dot_dimension_numbers<[1], [0], [0], [1], [0, 0, 1, 1], [], []>} : vector<8x8xbf16>, vector<8x16xbf16>, vector<8x16xf32> -> vector<8x16xf32>
    %463 = arith.addf %460, %462 : vector<8x16xf32>
    %464 = tpu.reciprocal %458 {approx = true} : vector<8x1xf32> -> vector<8x1xf32>
    %465 = vector.broadcast %464 : vector<8x1xf32> to vector<8x16xf32>
    %466 = arith.mulf %463, %465 : vector<8x16xf32>
    %467 = arith.truncf %466 : vector<8x16xf32> to vector<8x16xbf16>
    %c8_205 = arith.constant 8 : index
    %c48_206 = arith.constant 48 : index
    %468 = vector.load %arg16[%c8_205, %c48_206] : memref<16x64xbf16, #tpu.memory_space<vmem>>, vector<8x16xbf16>
    tpu.vector_store %arg16[%c8_205, %c48_206], %467 {strides = array<i32>} : memref<16x64xbf16, #tpu.memory_space<vmem>>, vector<8x16xbf16>,
    %c0_207 = arith.constant 0 : index
    %c0_208 = arith.constant 0 : index
    %469 = vector.load %arg16[%c0_207, %c0_208] : memref<16x64xbf16, #tpu.memory_space<vmem>>, vector<8x64xbf16>
    %c0_209 = arith.constant 0 : index
    %c0_210 = arith.constant 0 : index
    %470 = vector.load %arg6[%c0_209, %c0_210] : memref<64x64xbf16, #tpu.memory_space<vmem>>, vector<64x64xbf16>
    %cst_211 = arith.constant dense<0.000000e+00> : vector<8x64xf32>
    %471 = tpu.matmul %469, %470, %cst_211 {dimension_numbers = #tpu.dot_dimension_numbers<[1], [0], [0], [1], [0, 0, 1, 1], [], []>} : vector<8x64xbf16>, vector<64x64xbf16>, vector<8x64xf32> -> vector<8x64xf32>
    %c0_212 = arith.constant 0 : index
    %c0_213 = arith.constant 0 : index
    %c0_214 = arith.constant 0 : index
    %472 = vector.load %arg1[%c0_212, %c0_213, %c0_214] : memref<1x16x64xf32, #tpu.memory_space<vmem>>, vector<1x8x64xf32>
    %473 = vector.shape_cast %472 : vector<1x8x64xf32> to vector<8x64xf32>
    %474 = arith.addf %473, %471 : vector<8x64xf32>
    %475 = arith.mulf %474, %474 : vector<8x64xf32>
    %cst_215 = arith.constant dense<0.000000e+00> : vector<8xf32>
    %476 = vector.multi_reduction <add>, %475, %cst_215 [1] : vector<8x64xf32> to vector<8xf32>
    %477 = vector.shape_cast %476 : vector<8xf32> to vector<8x1xf32>
    %cst_216 = arith.constant 6.400000e+01 : f32
    %478 = vector.broadcast %cst_216 : f32 to vector<8x1xf32>
    %479 = arith.divf %477, %478 : vector<8x1xf32>
    %cst_217 = arith.constant 9.99999974E-6 : f32
    %480 = vector.broadcast %cst_217 : f32 to vector<8x1xf32>
    %481 = arith.addf %479, %480 : vector<8x1xf32>
    %482 = math.rsqrt %481 : vector<8x1xf32>
    %483 = vector.broadcast %482 : vector<8x1xf32> to vector<8x64xf32>
    %484 = arith.mulf %474, %483 : vector<8x64xf32>
    %c0_218 = arith.constant 0 : index
    %c0_219 = arith.constant 0 : index
    %485 = vector.load %arg7[%c0_218, %c0_219] : memref<1x64xf32, #tpu.memory_space<vmem>>, vector<1x64xf32>
    %486 = vector.broadcast %485 : vector<1x64xf32> to vector<8x64xf32>
    %487 = arith.mulf %484, %486 : vector<8x64xf32>
    %488 = arith.truncf %487 : vector<8x64xf32> to vector<8x64xbf16>
    %c0_220 = arith.constant 0 : index
    %c0_221 = arith.constant 0 : index
    %489 = vector.load %arg8[%c0_220, %c0_221] : memref<64x256xbf16, #tpu.memory_space<vmem>>, vector<64x256xbf16>
    %cst_222 = arith.constant dense<0.000000e+00> : vector<8x256xf32>
    %490 = tpu.matmul %488, %489, %cst_222 {dimension_numbers = #tpu.dot_dimension_numbers<[1], [0], [0], [1], [0, 0, 1, 1], [], []>} : vector<8x64xbf16>, vector<64x256xbf16>, vector<8x256xf32> -> vector<8x256xf32>
    %491 = vector.extract_strided_slice %490 {offsets = [0, 0], sizes = [8, 128], strides = [1, 1]} : vector<8x256xf32> to vector<8x128xf32>
    %492 = vector.extract_strided_slice %490 {offsets = [0, 128], sizes = [8, 128], strides = [1, 1]} : vector<8x256xf32> to vector<8x128xf32>
    %cst_223 = arith.constant 0.000000e+00 : f32
    %493 = vector.broadcast %cst_223 : f32 to vector<8x128xf32>
    %494 = arith.subf %493, %491 : vector<8x128xf32>
    %495 = math.exp %494 : vector<8x128xf32>
    %cst_224 = arith.constant 1.000000e+00 : f32
    %496 = vector.broadcast %cst_224 : f32 to vector<8x128xf32>
    %497 = arith.addf %496, %495 : vector<8x128xf32>
    %498 = tpu.reciprocal %497 {approx = true} : vector<8x128xf32> -> vector<8x128xf32>
    %499 = arith.mulf %491, %498 : vector<8x128xf32>
    %500 = arith.mulf %499, %492 : vector<8x128xf32>
    %501 = arith.truncf %500 : vector<8x128xf32> to vector<8x128xbf16>
    %c0_225 = arith.constant 0 : index
    %c0_226 = arith.constant 0 : index
    %502 = vector.load %arg9[%c0_225, %c0_226] : memref<128x64xbf16, #tpu.memory_space<vmem>>, vector<128x64xbf16>
    %cst_227 = arith.constant dense<0.000000e+00> : vector<8x64xf32>
    %503 = tpu.matmul %501, %502, %cst_227 {dimension_numbers = #tpu.dot_dimension_numbers<[1], [0], [0], [1], [0, 0, 1, 1], [], []>} : vector<8x128xbf16>, vector<128x64xbf16>, vector<8x64xf32> -> vector<8x64xf32>
    %504 = arith.addf %474, %503 : vector<8x64xf32>
    %c0_228 = arith.constant 0 : index
    %c0_229 = arith.constant 0 : index
    %c0_230 = arith.constant 0 : index
    %505 = vector.load %arg12[%c0_228, %c0_229, %c0_230] : memref<1x16x64xf32, #tpu.memory_space<vmem>>, vector<1x8x64xf32>
    %506 = vector.shape_cast %505 : vector<1x8x64xf32> to vector<8x64xf32>
    %507 = vector.shape_cast %504 : vector<8x64xf32> to vector<1x8x64xf32>
    tpu.vector_store %arg12[%c0_228, %c0_229, %c0_230], %507 {strides = array<i32>} : memref<1x16x64xf32, #tpu.memory_space<vmem>>, vector<1x8x64xf32>,
    %c8_231 = arith.constant 8 : index
    %c0_232 = arith.constant 0 : index
    %508 = vector.load %arg16[%c8_231, %c0_232] : memref<16x64xbf16, #tpu.memory_space<vmem>>, vector<8x64xbf16>
    %c0_233 = arith.constant 0 : index
    %c0_234 = arith.constant 0 : index
    %509 = vector.load %arg6[%c0_233, %c0_234] : memref<64x64xbf16, #tpu.memory_space<vmem>>, vector<64x64xbf16>
    %cst_235 = arith.constant dense<0.000000e+00> : vector<8x64xf32>
    %510 = tpu.matmul %508, %509, %cst_235 {dimension_numbers = #tpu.dot_dimension_numbers<[1], [0], [0], [1], [0, 0, 1, 1], [], []>} : vector<8x64xbf16>, vector<64x64xbf16>, vector<8x64xf32> -> vector<8x64xf32>
    %c0_236 = arith.constant 0 : index
    %c8_237 = arith.constant 8 : index
    %c0_238 = arith.constant 0 : index
    %511 = vector.load %arg1[%c0_236, %c8_237, %c0_238] : memref<1x16x64xf32, #tpu.memory_space<vmem>>, vector<1x8x64xf32>
    %512 = vector.shape_cast %511 : vector<1x8x64xf32> to vector<8x64xf32>
    %513 = arith.addf %512, %510 : vector<8x64xf32>
    %514 = arith.mulf %513, %513 : vector<8x64xf32>
    %cst_239 = arith.constant dense<0.000000e+00> : vector<8xf32>
    %515 = vector.multi_reduction <add>, %514, %cst_239 [1] : vector<8x64xf32> to vector<8xf32>
    %516 = vector.shape_cast %515 : vector<8xf32> to vector<8x1xf32>
    %cst_240 = arith.constant 6.400000e+01 : f32
    %517 = vector.broadcast %cst_240 : f32 to vector<8x1xf32>
    %518 = arith.divf %516, %517 : vector<8x1xf32>
    %cst_241 = arith.constant 9.99999974E-6 : f32
    %519 = vector.broadcast %cst_241 : f32 to vector<8x1xf32>
    %520 = arith.addf %518, %519 : vector<8x1xf32>
    %521 = math.rsqrt %520 : vector<8x1xf32>
    %522 = vector.broadcast %521 : vector<8x1xf32> to vector<8x64xf32>
    %523 = arith.mulf %513, %522 : vector<8x64xf32>
    %c0_242 = arith.constant 0 : index
    %c0_243 = arith.constant 0 : index
    %524 = vector.load %arg7[%c0_242, %c0_243] : memref<1x64xf32, #tpu.memory_space<vmem>>, vector<1x64xf32>
    %525 = vector.broadcast %524 : vector<1x64xf32> to vector<8x64xf32>
    %526 = arith.mulf %523, %525 : vector<8x64xf32>
    %527 = arith.truncf %526 : vector<8x64xf32> to vector<8x64xbf16>
    %c0_244 = arith.constant 0 : index
    %c0_245 = arith.constant 0 : index
    %528 = vector.load %arg8[%c0_244, %c0_245] : memref<64x256xbf16, #tpu.memory_space<vmem>>, vector<64x256xbf16>
    %cst_246 = arith.constant dense<0.000000e+00> : vector<8x256xf32>
    %529 = tpu.matmul %527, %528, %cst_246 {dimension_numbers = #tpu.dot_dimension_numbers<[1], [0], [0], [1], [0, 0, 1, 1], [], []>} : vector<8x64xbf16>, vector<64x256xbf16>, vector<8x256xf32> -> vector<8x256xf32>
    %530 = vector.extract_strided_slice %529 {offsets = [0, 0], sizes = [8, 128], strides = [1, 1]} : vector<8x256xf32> to vector<8x128xf32>
    %531 = vector.extract_strided_slice %529 {offsets = [0, 128], sizes = [8, 128], strides = [1, 1]} : vector<8x256xf32> to vector<8x128xf32>
    %cst_247 = arith.constant 0.000000e+00 : f32
    %532 = vector.broadcast %cst_247 : f32 to vector<8x128xf32>
    %533 = arith.subf %532, %530 : vector<8x128xf32>
    %534 = math.exp %533 : vector<8x128xf32>
    %cst_248 = arith.constant 1.000000e+00 : f32
    %535 = vector.broadcast %cst_248 : f32 to vector<8x128xf32>
    %536 = arith.addf %535, %534 : vector<8x128xf32>
    %537 = tpu.reciprocal %536 {approx = true} : vector<8x128xf32> -> vector<8x128xf32>
    %538 = arith.mulf %530, %537 : vector<8x128xf32>
    %539 = arith.mulf %538, %531 : vector<8x128xf32>
    %540 = arith.truncf %539 : vector<8x128xf32> to vector<8x128xbf16>
    %c0_249 = arith.constant 0 : index
    %c0_250 = arith.constant 0 : index
    %541 = vector.load %arg9[%c0_249, %c0_250] : memref<128x64xbf16, #tpu.memory_space<vmem>>, vector<128x64xbf16>
    %cst_251 = arith.constant dense<0.000000e+00> : vector<8x64xf32>
    %542 = tpu.matmul %540, %541, %cst_251 {dimension_numbers = #tpu.dot_dimension_numbers<[1], [0], [0], [1], [0, 0, 1, 1], [], []>} : vector<8x128xbf16>, vector<128x64xbf16>, vector<8x64xf32> -> vector<8x64xf32>
    %543 = arith.addf %513, %542 : vector<8x64xf32>
    %c0_252 = arith.constant 0 : index
    %c8_253 = arith.constant 8 : index
    %c0_254 = arith.constant 0 : index
    %544 = vector.load %arg12[%c0_252, %c8_253, %c0_254] : memref<1x16x64xf32, #tpu.memory_space<vmem>>, vector<1x8x64xf32>
    %545 = vector.shape_cast %544 : vector<1x8x64xf32> to vector<8x64xf32>
    %546 = vector.shape_cast %543 : vector<8x64xf32> to vector<1x8x64xf32>
    tpu.vector_store %arg12[%c0_252, %c8_253, %c0_254], %546 {strides = array<i32>} : memref<1x16x64xf32, #tpu.memory_space<vmem>>, vector<1x8x64xf32>,
    return
  }
  func.func @transform_0(%arg0: i32) -> (i32, i32, i32) {
    %c0_i32 = arith.constant 0 : i32
    %c0_i32_0 = arith.constant 0 : i32
    %c0_i32_1 = arith.constant 0 : i32
    return %arg0, %c0_i32, %c0_i32_0 : i32, i32, i32
  }
  func.func @transform_1(%arg0: i32) -> (i32, i32) {
    %c0_i32 = arith.constant 0 : i32
    %c0_i32_0 = arith.constant 0 : i32
    %c0_i32_1 = arith.constant 0 : i32
    return %c0_i32, %c0_i32_0 : i32, i32
  }
  func.func @transform_2(%arg0: i32) -> (i32, i32) {
    %c0_i32 = arith.constant 0 : i32
    %c0_i32_0 = arith.constant 0 : i32
    %c0_i32_1 = arith.constant 0 : i32
    return %c0_i32, %c0_i32_0 : i32, i32
  }
  func.func @transform_3(%arg0: i32) -> (i32, i32) {
    %c0_i32 = arith.constant 0 : i32
    %c0_i32_0 = arith.constant 0 : i32
    %c0_i32_1 = arith.constant 0 : i32
    return %c0_i32, %c0_i32_0 : i32, i32
  }
  func.func @transform_4(%arg0: i32) -> (i32, i32) {
    %c0_i32 = arith.constant 0 : i32
    %c0_i32_0 = arith.constant 0 : i32
    %c0_i32_1 = arith.constant 0 : i32
    return %c0_i32, %c0_i32_0 : i32, i32
  }
  func.func @transform_5(%arg0: i32) -> (i32, i32) {
    %c0_i32 = arith.constant 0 : i32
    %c0_i32_0 = arith.constant 0 : i32
    %c0_i32_1 = arith.constant 0 : i32
    return %c0_i32, %c0_i32_0 : i32, i32
  }
  func.func @transform_6(%arg0: i32) -> (i32, i32) {
    %c0_i32 = arith.constant 0 : i32
    %c0_i32_0 = arith.constant 0 : i32
    %c0_i32_1 = arith.constant 0 : i32
    return %c0_i32, %c0_i32_0 : i32, i32
  }
  func.func @transform_7(%arg0: i32) -> (i32, i32) {
    %c0_i32 = arith.constant 0 : i32
    %c0_i32_0 = arith.constant 0 : i32
    %c0_i32_1 = arith.constant 0 : i32
    return %c0_i32, %c0_i32_0 : i32, i32
  }
  func.func @transform_8(%arg0: i32) -> (i32, i32) {
    %c0_i32 = arith.constant 0 : i32
    %c0_i32_0 = arith.constant 0 : i32
    %c0_i32_1 = arith.constant 0 : i32
    return %c0_i32, %c0_i32_0 : i32, i32
  }
  func.func @transform_9(%arg0: i32) -> (i32, i32) {
    %c0_i32 = arith.constant 0 : i32
    %c0_i32_0 = arith.constant 0 : i32
    %c0_i32_1 = arith.constant 0 : i32
    return %c0_i32, %c0_i32_0 : i32, i32
  }
  func.func @transform_10(%arg0: i32) -> (i32, i32) {
    %c0_i32 = arith.constant 0 : i32
    %c0_i32_0 = arith.constant 0 : i32
    %c0_i32_1 = arith.constant 0 : i32
    return %c0_i32, %c0_i32_0 : i32, i32
  }
  func.func @transform_11(%arg0: i32) -> (i32, i32, i32) {
    %c0_i32 = arith.constant 0 : i32
    %c0_i32_0 = arith.constant 0 : i32
    %c0_i32_1 = arith.constant 0 : i32
    return %arg0, %c0_i32, %c0_i32_0 : i32, i32, i32
  }
}

</mosaic_0001>

<bundles_post_ra>
// kernel: tpu_custom_call.1
= control target key start
LH: loop header
LB: loop body
LE: loop exit
PB: predicated region body
PF: predicated region fallthrough
CT: control target
= control target key end

     0   :  { %16 = vsyncpa [#allocation7], 0  ;;  %s5461_s0 = inlined_call_operand.vmem [shape: f32[2,16,64], index: 0, kind: input, shape index: {}]   ;;  %s5462_s1 = inlined_call_operand.vmem [shape: f32[1,64], index: 1, kind: input, shape index: {}]   ;;  %s5463_s2 = inlined_call_operand.vmem [shape: bf16[64,64], index: 2, kind: input, shape index: {}]   ;;  %s5464_s3 = inlined_call_operand.hbm [shape: bf16[64,64], index: 3, kind: input, shape index: {}]   ;;  %s5465_s4 = inlined_call_operand.hbm [shape: bf16[64,64], index: 4, kind: input, shape index: {}]   ;;  %s5466_s5 = inlined_call_operand.hbm [shape: bf16[64,64], index: 5, kind: input, shape index: {}]   ;;  %s5467_s6 = inlined_call_operand.vmem [shape: f32[1,64], index: 6, kind: input, shape index: {}]   ;;  %s5468_s7 = inlined_call_operand.vmem [shape: bf16[64,256], index: 7, kind: input, shape index: {}]   ;;  %s5469_s8 = inlined_call_operand.vmem [shape: bf16[128,64], index: 8, kind: input, shape index: {}]   ;;  %s5470_s9 = inlined_call_operand.vmem [shape: f32[16,8], index: 9, kind: input, shape index: {}]   ;;  %s5471_s10 = inlined_call_operand.vmem [shape: f32[16,8], index: 10, kind: input, shape index: {}]   ;;  %s5472_s11 = inlined_call_operand.hbm [shape: f32[2,16,64], index: 11, kind: output, shape index: {}]  }
   0x1   :  { %17 = vsyncpa [#allocation10], 0 }
   0x2   :  { %18 = vsyncpa [#allocation8], 0 }
   0x3   :  { %20 = vsyncpa [#allocation8 + $0x1], 0  ;;  %s4471_s17 = smov 0   ;;  %s4473_s18 = smov 0  }
   0x4   :  { %s4475_s19 = smov 0   ;;  %s4477_s20 = smov 0  }
   0x5 LB: > { %5481 = sst [smem:[#allocation16_spill]] %s4384_s19  ;;  %s4492_s21 = sadd.s32 4294967295, %s4388_s20   ;;  %s4388_s20 = sphi %s4477_s20, %s5502_s20   ;;  %s4384_s19 = sphi %s4475_s19, %s5499_s19   ;;  %s4380_s18 = sphi %s4473_s18, %s5501_s18   ;;  %s4376_s17 = sphi %s4471_s17, %s5500_s17  }
   0x6   : > { %s3458_s22 = sadd.s32 4294967294, %s4388_s20   ;;  %s4496_s23 = sadd.s32 1, %s4388_s20  }
   0x7   : > { %s269_s24 = sadd.s32 1, %s4384_s19  ;;  %s266_s25 = ssub.s32 %s4388_s20, %s4496_s23 }
   0x8   : > { %p279_p0 = scmp.ne.s32.totalorder %s4384_s19, %s4380_s18  ;;  %p267_p1 = scmp.eq.s32.totalorder %s266_s25, 0 }
   0x9   : > { %p280_p2 = scmp.eq.s32.totalorder %s4492_s21, 1  ;;  %p285_p3 = scmp.ne.s32.totalorder %s4380_s18, %s4376_s17 }
   0xa   : > { %p286_p4 = scmp.eq.s32.totalorder %s3458_s22, 1  ;;  %p3459_p7 = scmp.ge.s32.totalorder %s4388_s20, 1 }
   0xb   : > { %s4507_s26 = scalar_select %p267_p1, %s4384_s19, %s269_s24  }
   0xc   : > { %p4509_p5 = por %p280_p2, %p279_p0  ;;  %p4513_p6 = por %p286_p4, %p285_p3 }
   0xd   : > { %5482 = sst [smem:[#allocation17_spill]] %s4507_s26  ;;  %p293_p8 = scmp.lt.s32.totalorder %s4388_s20, 3 }
   0xe   : > { %s5483_s27 = scalar_select %p4509_p5, 1, 0 }
   0xf   : > { %s5484_s28 = scalar_select %p4513_p6, 1, 0 }
  0x10   : > { %p5473_p9 = scmp.eq.s32.totalorder %s4492_s21, 0  ;;  %p4520_p10 = pnand %p3459_p7, %p293_p8 }
  0x11   : > { %s4390_s30 = smov [#allocation9]   ;;  %s4391_s14 = smov [#allocation6]  }
  0x12   : > { %p4017_p11 = pneg %p4520_p10  ;;  %s324_s12 = sshll.u32 %s4390_s30, 4  ;;  %s325_s12 = int_to_ptr.vmem [resolvable:$true] %s324_s12 }
  0x13   : > { %s311_s15 = sshll.u32 %s4391_s14, 4  ;;  %s4392_s16 = smov [#allocation11]   ;;  %s312_s15 = int_to_ptr.vmem [resolvable:$true] %s311_s15 }
  0x14   : > { %p4528_p12 = pnand %p5473_p9, %p4017_p11  ;;  %s337_s22 = sshll.u32 %s4392_s16, 4  ;;  %s338_s22 = int_to_ptr.vmem [resolvable:$true] %s337_s22 }
  0x15   : > { %s4253_s24 = scalar_lea.vmem %s325_s12, 512  ;;  %p4261_p3 = scmp.lt.s32.totalorder %s325_s12, %s325_s12 }
  0x16   : > { %p4244_p13 = pneg %p4528_p12  ;;  %p4254_p0 = scmp.ne.s32.totalorder %s325_s12, %s4253_s24 }
  0x17   : > { %p4262_p4 = scmp.lt.s32.totalorder %s4253_s24, %s4253_s24 }
  0x18   : > { %p4256_p1 = pnand %p4254_p0, %p4244_p13 }
  0x19   : > { %p4263_p7 = por %p4262_p4, %p4261_p3 }
  0x1a   : > { %p4257_p2 = pneg %p4256_p1 }
  0x1c   : > { %p4264_p8 = pnand %p4263_p7, %p4257_p2 }
  0x1e   : > { %4267 = shalt.err (!%p4264_p8)
}
  0x1f   : > { %s4393_s25 = smov 64   ;;  %s4394_s30 = smov 4  }
  0x20   : > { %4023 = dma.hbm_to_vmem [thread:$0]  (!%p4528_p12), %s5465_s4, 512, %s325_s12, [#allocation10], %s4393_s25, %s4393_s25, %s4394_s30  }
  0x21   : > { %s4279_s26 = scalar_lea.vmem %s312_s15, 512  ;;  %p4287_p9 = scmp.lt.s32.totalorder %s312_s15, %s312_s15 }
  0x22   : > { %p4280_p11 = scmp.ne.s32.totalorder %s312_s15, %s4279_s26  ;;  %p4288_p6 = scmp.lt.s32.totalorder %s4279_s26, %s4279_s26 }
  0x24   : > { %p4282_p0 = pnand %p4280_p11, %p4244_p13  ;;  %p4289_p3 = por %p4288_p6, %p4287_p9 }
  0x26   : > { %p4283_p1 = pneg %p4282_p0 }
  0x28   : > { %p4290_p2 = pnand %p4289_p3, %p4283_p1 }
  0x2a   : > { %4293 = shalt.err (!%p4290_p2)
}
  0x2b   : > { %4020 = dma.hbm_to_vmem [thread:$0]  (!%p4528_p12), %s5464_s3, 512, %s312_s15, [#allocation7], %s4393_s25, %s4393_s25, %s4394_s30  }
  0x2c   : > { %s4305_s12 = scalar_lea.vmem %s338_s22, 512  ;;  %p4313_p11 = scmp.lt.s32.totalorder %s338_s22, %s338_s22 }
  0x2d   : > { %p4306_p4 = scmp.ne.s32.totalorder %s338_s22, %s4305_s12  ;;  %p4314_p0 = scmp.lt.s32.totalorder %s4305_s12, %s4305_s12 }
  0x2f   : > { %p4308_p7 = pnand %p4306_p4, %p4244_p13  ;;  %p4315_p5 = por %p4314_p0, %p4313_p11 }
  0x31   : > { %p4309_p8 = pneg %p4308_p7 }
  0x33   : > { %p4316_p6 = pnand %p4315_p5, %p4309_p8 }
  0x35   : > { %4319 = shalt.err (!%p4316_p6)
}
  0x36   : > { %4026 = dma.hbm_to_vmem [thread:$0]  (!%p4528_p12), %s5466_s5, 512, %s338_s22, [#allocation10], %s4393_s25, %s4393_s25, %s4394_s30  }
  0x37   : > { %376 = sbr.rel (%p4520_p10) target bundleno = 2882 (0xb42), region = 64  ;;  %p5487_p9 = scmp.eq.s32.totalorder (!%p4520_p10), %s4492_s21, 0 }
  0x3c   : > { %4363 = dma.done.wait (%p5487_p9), [#allocation7], 512   ;;  %p5488_p13 = pmov %p5487_p9 }
  0x3d   : > { %p5489_p1 = pmov %p5487_p9 }
  0x3e   : > { %4365 = vsyncadd (%p5488_p13), [#allocation7], 4294966784 }
  0x3f   : > { %4367 = dma.done.wait (%p5489_p1), [#allocation10], 1024   ;;  %p5490_p5 = pmov %p5489_p1 }
  0x40   : > { %p424_p3 = scmp.lt.s32.totalorder %s4492_s21, 1  ;;  %vm438_vm0 = vcmask 523264   ;;  %v4090_v6 = vld [vmem:[#allocation6 + $0x18] sm:$0xff]   ;;  %v4395_v8 = vmov 0.0   ;;  %v4092_v9 = vld [vmem:[#allocation6 + $0x10] sm:$0xff]   ;;  %v4094_v11 = vld [vmem:[#allocation6 + $0x8] sm:$0xff]  }
  0x41   : > { %4369 = vsyncadd (%p5490_p5), [#allocation10], 4294966272  ;;  %v4091_v7 = vld [vmem:[%s5463_s2 + $0x18] sm:$0xff]   ;;  %3759 = vmatprep.subr.bf16.mxu1 %v4395_v8  ;;  %3783 = vmatprep.subr.bf16.mxu0 %v4395_v8  ;;  %v4093_v10 = vld [vmem:[%s5463_s2 + $0x10] sm:$0xff]   ;;  %vm4396_vm1 = vmmov 0   ;;  %s5480_s29 = smov 8  }
  0x42   : > { %s425_s19 = scalar_select %p424_p3, %s4492_s21, 1  ;;  %3760 = vmatpush3.bf16.msra.mxu1 %v4090_v6  ;;  %3784 = vmatpush3.bf16.msra.mxu0 %v4091_v7  ;;  %v4095_v12 = vld [vmem:[%s5463_s2 + $0x8] sm:$0xff]   ;;  %v4096_v13 = vld [vmem:[#allocation6] sm:$0xff]   ;;  %v4098_v30 = vld [vmem:[#allocation9 + $0x18] sm:$0xff]   ;;  %vm925_vm2 = vcmask 519168   ;;  %vm570_vm3 = vcmask 60416  }
  0x43   : > { %3761 = vmatprep.subr.bf16.mxu1 %v4395_v8  ;;  %3785 = vmatprep.subr.bf16.mxu0 %v4395_v8  ;;  %v4097_v14 = vld [vmem:[%s5463_s2] sm:$0xff]   ;;  %s4398_s25 = smov 40   ;;  %s4399_s30 = smov 24   ;;  %v4099_v32 = vld [vmem:[#allocation9 + $0x10] sm:$0xff]   ;;  %v4100_v33 = vld [vmem:[#allocation9 + $0x8] sm:$0xff]   ;;  %vm607_vm4 = vcmask 126016  }
  0x44   : > { %s3626_s13 = sshll.u32 %s425_s19, 4  ;;  %3767 = vmatprep.mubr.msk.bf16.mxu1 %vm4396_vm1, %v4395_v8  ;;  %3791 = vmatprep.mubr.msk.bf16.mxu0 %vm4396_vm1, %v4395_v8  ;;  %v4616_v15 = vld [vmem:[%s5470_s9] sm:$0xff]  ;;  %s4400_s12 = smov 56   ;;  %vm644_vm5 = vcmask 191616   ;;  %vm685_vm6 = vcmask 257216   ;;  %vm722_vm7 = vcmask 322816  }
  0x45   : > { %s4573_s22 = scalar_lea.vmem %s5461_s0, %s3626_s13  ;;  %577 = vrot.lane.b32.xlu1 %v4616_v15, %s5480_s29  ;;  %v4627_v16 = vld [vmem:[%s5471_s10] sm:$0xff]  ;;  %s4401_s26 = smov 16   ;;  %vm763_vm8 = vcmask 388416   ;;  %vm800_vm9 = vcmask 454016   ;;  %vm841_vm10 = vcmask 519616   ;;  %vm1217_vm11 = vcmask 130048  }
  0x46   : > { %v4576_v0 = vld [vmem:[%s4573_s22] sm:$0xff]  ;;  %v4579_v1 = vld [vmem:[%s4573_s22 + $0x8] sm:$0xff]  ;;  %3762 = vmatpush3.bf16.msra.mxu1 %v4092_v9  ;;  %3786 = vmatpush3.bf16.msra.mxu0 %v4093_v10  ;;  %s4402_s14 = smov 32   ;;  %s5476_s15 = smov 120   ;;  %vm1285_vm12 = vcmask 1043456   ;;  %vm1265_vm14 = vcmask 64512  }
  0x47   : > { %v436_v2 = vmul.f32 %v4576_v0, %v4576_v0  ;;  %v437_v3 = vmul.f32 %v4579_v1, %v4579_v1  ;;  %3763 = vmatprep.subr.bf16.mxu1 %v4395_v8  ;;  %3787 = vmatprep.subr.bf16.mxu0 %v4395_v8  ;;  %v3471_v26 = vld [vmem:[%s5462_s1] ss:$0 sm:$0xff]  ;;  %s5478_s16 = smov 48   ;;  %s4405_s24 = smov 112   ;;  %vm1333_vm15 = vcmask 125952  }
  0x48   : > { %v4101_v34 = vld [vmem:[#allocation9] sm:$0xff]   ;;  %s4406_s19 = smov 96   ;;  %s4407_s13 = smov 80  }
  0x49   : > { %v439_v4 = vsel %vm438_vm0, %v436_v2, 0.0  ;;  %v442_v5 = vsel %vm438_vm0, %v437_v3, 0.0  ;;  %655 = vrot.lane.b32.xlu1 %v4616_v15, %s4399_s30  ;;  %p5495_p12 = scmp.ne.s32.totalorder %s5483_s27, 0 }
  0x4a   : > { %440 = vadd.xlane.f32.xlu0 %v439_v4  ;;  %3764 = vmatpush3.bf16.msra.mxu1 %v4094_v11 }
  0x4b   : > { %3788 = vmatpush3.bf16.msra.mxu0 %v4095_v12  ;;  %3765 = vmatprep.subr.bf16.mxu1 %v4395_v8 }
  0x4c   : > { %3789 = vmatprep.subr.bf16.mxu0 %v4395_v8 }
  0x4d   : > { %811 = vrot.lane.b32.xlu1 %v4616_v15, %s4400_s12 }
  0x4e   : > { %443 = vadd.xlane.f32.xlu0 %v442_v5  ;;  %3766 = vmatpush3.bf16.msra.mxu1 %v4096_v13 }
  0x4f   : > { %3790 = vmatpush3.bf16.msra.mxu0 %v4097_v14  ;;  %3771 = vmatprep.subr.bf16.mxu1 %v4395_v8 }
  0x50   : > { %3807 = vmatprep.subr.bf16.mxu0 %v4395_v8 }
  0x51   : > { %544 = vrot.lane.b32.xlu1 %v4627_v16, %s5480_s29 }
  0x55   : > { %618 = vrot.lane.b32.xlu1 %v4627_v16, %s4399_s30 }
  0x59   : > { %647 = vrot.lane.b32.xlu1 %v4627_v16, %s4401_s26 }
  0x5d   : > { %696 = vrot.lane.b32.xlu1 %v4627_v16, %s4398_s25 }
  0x61   : > { %725 = vrot.lane.b32.xlu1 %v4627_v16, %s4402_s14 }
  0x64   : > { %733 = vrot.lane.b32.xlu0 %v4616_v15, %s4398_s25 }
  0x68   : > { %774 = vrot.lane.b32.xlu0 %v4627_v16, %s4400_s12 }
  0xb7   : > { %v578_v35 = vpop.permute.xlu1 %577 }
  0xbb   : > { %v656_v36 = vpop.permute.xlu1 %655 }
  0xbf   : > { %v812_v39 = vpop.permute.xlu1 %811 }
  0xc3   : > { %v545_v50 = vpop.permute.xlu1 %544 }
  0xc7   : > { %v619_v53 = vpop.permute.xlu1 %618 }
  0xcb   : > { %v648_v61 = vpop.permute.xlu1 %647 }
  0xcf   : > { %v697_v2 = vpop.permute.xlu1 %696 }
  0xd3   : > { %v441_v17 = vpop.xlane.xlu0 %440  ;;  %v726_v11 = vpop.permute.xlu1 %725 }
  0xd4   : > { %v446_v18 = vmul.f32 0.015625, %v441_v17 }
  0xd6   : > { %v448_v19 = vadd.f32 1e-05, %v446_v18 }
  0xd7   : > { %v444_v20 = vpop.xlane.xlu0 %443 }
  0xd8   : > { %4162 = vrsqrt.f32 %v448_v19  ;;  %v447_v21 = vmul.f32 0.015625, %v444_v20 }
  0xda   : > { %v449_v22 = vadd.f32 1e-05, %v447_v21 }
  0xdb   : > { %v734_v46 = vpop.permute.xlu0 %733 }
  0xdc   : > { %4164 = vrsqrt.f32 %v449_v22 }
  0xdf   : > { %v775_v4 = vpop.permute.xlu0 %774 }
  0xe5   : > { %v4163_v23 = vpop.eup %4162 }
  0xe6   : > { %v452_v24 = vmul.f32 %v4163_v23, %v4576_v0 }
  0xe8   : > { %v461_v28 = vmul.f32 %v3471_v26, %v452_v24 }
  0xe9   : > { %v4165_v25 = vpop.eup %4164 }
  0xea   : > { %v453_v27 = vmul.f32 %v4165_v25, %v4579_v1 }
  0xec   : > { %v462_v29 = vmul.f32 %v3471_v26, %v453_v27 }
  0xee   : > { %v463_v31 = vpack.c.bf16 %v462_v29, %v461_v28 }
  0xf0   : > { %3768 = vmatmul.mubr.msk.bf16.vlgmr.msra.gmra.mxu1 %vm438_vm0, %v463_v31  ;;  %3792 = vmatmul.mubr.msk.bf16.vlgmr.msra.gmra.mxu0 %vm438_vm0, %v463_v31 }
  0xf1   : > { %3772 = vmatpush3.bf16.msra.mxu1 %v4098_v30  ;;  %3779 = vmatprep.mubr.msk.bf16.mxu1 %vm4396_vm1, %v4395_v8 }
  0xf2   : > { %3773 = vmatprep.subr.bf16.mxu1 %v4395_v8  ;;  %3809 = vmatprep.mubr.msk.bf16.mxu0 %vm4396_vm1, %v4395_v8 }
  0xf5   : > { %3774 = vmatpush3.bf16.msra.mxu1 %v4099_v32 }
  0xf6   : > { %3775 = vmatprep.subr.bf16.mxu1 %v4395_v8 }
  0xf9   : > { %3776 = vmatpush3.bf16.msra.mxu1 %v4100_v33 }
  0xfa   : > { %3777 = vmatprep.subr.bf16.mxu1 %v4395_v8 }
  0xfd   : > { %3778 = vmatpush3.bf16.msra.mxu1 %v4101_v34 }
  0xfe   : > { %3795 = vmatprep.subr.bf16.mxu1 %v4395_v8 }
 0x100   : > { %3780 = vmatmul.mubr.msk.bf16.vlgmr.msra.gmra.mxu1 %vm438_vm0, %v463_v31 }
 0x101   : > { %3797 = vmatprep.mubr.msk.bf16.mxu1 %vm4396_vm1, %v4395_v8 }
 0x1b0   : > { %v4661_v37 = vpop.f32.mrf.mxu1  ;;  %v4663_v38 = vpop.f32.mrf.mxu0 }
 0x1b1   : > { %v583_v42 = vmul.f32 %v578_v35, %v4661_v37  ;;  %v661_v43 = vmul.f32 %v656_v36, %v4661_v37  ;;  %v739_v49 = vmul.f32 %v734_v46, %v4661_v37  ;;  %v1027_v51 = vmul.f32 %v4663_v38, %v578_v35 }
 0x1b2   : > { %v3769_v40 = vpop.f32.mrf.mxu1  ;;  %v3793_v41 = vpop.f32.mrf.mxu0  ;;  %v817_v52 = vmul.f32 %v812_v39, %v4661_v37  ;;  %v1131_v54 = vmul.f32 %v4663_v38, %v734_v46  ;;  %v1079_v55 = vmul.f32 %v4663_v38, %v656_v36  ;;  %v1183_v59 = vmul.f32 %v4663_v38, %v812_v39 }
 0x1b3   : > { %587 = vrot.lane.b32.xlu1 %v583_v42, %s5476_s15  ;;  %665 = vrot.lane.b32.xlu0 %v661_v43, %s5476_s15  ;;  %v550_v60 = vmul.f32 %v545_v50, %v4661_v37  ;;  %v624_v1 = vmul.f32 %v619_v53, %v4661_v37  ;;  %v702_v3 = vmul.f32 %v697_v2, %v4661_v37 }
 0x1b4   : > { %v4669_v44 = vpop.f32.mrf.mxu1  ;;  %v4671_v45 = vpop.f32.mrf.mxu0  ;;  %v780_v5 = vmul.f32 %v775_v4, %v4661_v37  ;;  %v1003_v6 = vmul.f32 %v4663_v38, %v545_v50  ;;  %v1055_v7 = vmul.f32 %v4663_v38, %v619_v53  ;;  %v1107_v9 = vmul.f32 %v4663_v38, %v697_v2 }
 0x1b5   : > { %v1159_v10 = vmul.f32 %v4663_v38, %v775_v4  ;;  %v573_v12 = vmul.f32 %v4661_v37, %v4627_v16  ;;  %v653_v17 = vmul.f32 %v648_v61, %v4661_v37  ;;  %v731_v23 = vmul.f32 %v726_v11, %v4661_v37 }
 0x1b6   : > { %v3770_v47 = vpop.f32.mrf.mxu1  ;;  %v3794_v48 = vpop.f32.mrf.mxu0  ;;  %v1129_v29 = vmul.f32 %v4663_v38, %v726_v11  ;;  %v1025_v34 = vmul.f32 %v4663_v38, %v4627_v16  ;;  %v540_v41 = vmul.f32 %v4661_v37, %v4616_v15  ;;  %v1077_v46 = vmul.f32 %v4663_v38, %v648_v61 }
 0x1b7   : > { %743 = vrot.lane.b32.xlu1 %v739_v49, %s5476_s15  ;;  %803 = vrot.lane.b32.xlu0 %v4627_v16, %s5478_s16 }
 0x1bb   : > { %1031 = vrot.lane.b32.xlu0 %v1027_v51, %s5476_s15  ;;  %821 = vrot.lane.b32.xlu1 %v817_v52, %s5476_s15 }
 0x1bf   : > { %1135 = vrot.lane.b32.xlu0 %v1131_v54, %s5476_s15  ;;  %1083 = vrot.lane.b32.xlu1 %v1079_v55, %s5476_s15 }
 0x1c0   : > { %v910_v56 = vpop.f32.mrf.mxu1 }
 0x1c1   : > { %v3643_v57 = vpack.c.bf16 %v910_v56, %v910_v56 }
 0x1c2   : > { %v3781_v58 = vpop.f32.mrf.mxu1 }
 0x1c3   : > { %926 = vst.msk [vmem:[#allocation4] sm:$0xf] %vm925_vm2, %v3643_v57  ;;  %1187 = vrot.lane.b32.xlu1 %v1183_v59, %s5476_s15  ;;  %554 = vrot.lane.b32.xlu0 %v550_v60, %s5476_s15  ;;  %v1001_v58 = vmul.f32 %v4663_v38, %v4616_v15 }
 0x1c4   : > { %v913_v62 = vpop.f32.mrf.mxu1 }
 0x1c5   : > { %v3644_v63 = vpack.c.bf16 %v913_v62, %v913_v62 }
 0x1c6   : > { %v3782_v0 = vpop.f32.mrf.mxu1 }
 0x1c7   : > { %927 = vst.msk [vmem:[#allocation4 + $0x4] sm:$0xf] %vm925_vm2, %v3644_v63  ;;  %610 = vrot.lane.b32.xlu1 %v4616_v15, %s4401_s26  ;;  %628 = vrot.lane.b32.xlu0 %v624_v1, %s5476_s15  ;;  %vm1472_vm2 = vcmask 257152  }
 0x1cb   : > { %688 = vrot.lane.b32.xlu1 %v4616_v15, %s4402_s14  ;;  %706 = vrot.lane.b32.xlu0 %v702_v3, %s5476_s15 }
 0x1cf   : > { %766 = vrot.lane.b32.xlu1 %v4616_v15, %s5478_s16 }
 0x1d3   : > { %784 = vrot.lane.b32.xlu1 %v780_v5, %s5476_s15 }
 0x1d7   : > { %1007 = vrot.lane.b32.xlu1 %v1003_v6, %s5476_s15 }
 0x1db   : > { %1059 = vrot.lane.b32.xlu1 %v1055_v7, %s5476_s15 }
 0x1df   : > { %1111 = vrot.lane.b32.xlu1 %v1107_v9, %s5476_s15 }
 0x1e3   : > { %1163 = vrot.lane.b32.xlu1 %v1159_v10, %s5476_s15  ;;  %s5491_s15 = smov 48  }
 0x225   : > { %v666_v13 = vpop.permute.xlu0 %665  ;;  %v588_v14 = vpop.permute.xlu1 %587 }
 0x226   : > { %v593_v18 = vadd.f32 %v588_v14, %v573_v12  ;;  %v671_v19 = vadd.f32 %v666_v13, %v653_v17 }
 0x228   : > { %v3629_v20 = vpack.c.bf16 %v593_v18, %v593_v18  ;;  %v3633_v24 = vpack.c.bf16 %v671_v19, %v671_v19 }
 0x229   : > { %v804_v21 = vpop.permute.xlu0 %803  ;;  %v744_v22 = vpop.permute.xlu1 %743 }
 0x22a   : > { %601 = vrot.lane.b32.xlu0 %v3629_v20, %s5480_s29  ;;  %v749_v25 = vadd.f32 %v744_v22, %v731_v23  ;;  %v809_v28 = vmul.f32 %v804_v21, %v4661_v37  ;;  %v1181_v51 = vmul.f32 %v4663_v38, %v804_v21 }
 0x22c   : > { %v3637_v30 = vpack.c.bf16 %v749_v25, %v749_v25 }
 0x22d   : > { %v1032_v26 = vpop.permute.xlu0 %1031  ;;  %v822_v27 = vpop.permute.xlu1 %821 }
 0x22e   : > { %679 = vrot.lane.b32.xlu0 %v3633_v24, %s5480_s29  ;;  %v827_v31 = vadd.f32 %v822_v27, %v809_v28  ;;  %v1037_v36 = vadd.f32 %v1032_v26, %v1025_v34  ;;  %v1216_v34 = vld [vmem:[#allocation4] sm:$0xf] }
 0x230   : > { %v3641_v39 = vpack.c.bf16 %v827_v31, %v827_v31  ;;  %v3647_v16 = vpack.c.bf16 %v1037_v36, %v1037_v36 }
 0x231   : > { %v1136_v32 = vpop.permute.xlu0 %1135  ;;  %v1084_v33 = vpop.permute.xlu1 %1083 }
 0x232   : > { %v1141_v35 = vadd.f32 %v1136_v32, %v1129_v29  ;;  %757 = vrot.lane.b32.xlu0 %v3637_v30, %s5480_s29  ;;  %v1089_v48 = vadd.f32 %v1084_v33, %v1077_v46 }
 0x234   : > { %v3655_v40 = vpack.c.bf16 %v1141_v35, %v1141_v35  ;;  %v3651_v52 = vpack.c.bf16 %v1089_v48, %v1089_v48 }
 0x235   : > { %v555_v42 = vpop.permute.xlu0 %554  ;;  %v1188_v43 = vpop.permute.xlu1 %1187 }
 0x236   : > { %v560_v47 = vsub.f32 %v540_v41, %v555_v42  ;;  %1149 = vrot.lane.b32.xlu1 %v3655_v40, %s5480_s29  ;;  %835 = vrot.lane.b32.xlu0 %v3641_v39, %s5480_s29  ;;  %v1193_v53 = vadd.f32 %v1188_v43, %v1181_v51  ;;  %v1287_v39 = vsel %vm1285_vm12, %v1216_v34, 0  ;;  %v4764_v40 = vld [vmem:[%s5470_s9 + $0x8] sm:$0xff] }
 0x237   : > { %v4778_v43 = vld [vmem:[%s5471_s10 + $0x8] sm:$0xff] }
 0x238   : > { %v3627_v49 = vpack.c.bf16 %v560_v47, %v560_v47  ;;  %v3659_v55 = vpack.c.bf16 %v1193_v53, %v1193_v53 }
 0x239   : > { %v611_v50 = vpop.permute.xlu1 %610  ;;  %v629_v62 = vpop.permute.xlu0 %628 }
 0x23a   : > { %571 = vst.msk [vmem:[#allocation3] sm:$0xf] %vm570_vm3, %v3627_v49  ;;  %1045 = vrot.lane.b32.xlu0 %v3647_v16, %s5480_s29  ;;  %v616_v63 = vmul.f32 %v611_v50, %v4661_v37 }
 0x23c   : > { %v634_v0 = vsub.f32 %v616_v63, %v629_v62 }
 0x23d   : > { %v689_v54 = vpop.permute.xlu1 %688  ;;  %v707_v1 = vpop.permute.xlu0 %706 }
 0x23e   : > { %1097 = vrot.lane.b32.xlu0 %v3651_v52, %s5480_s29  ;;  %v694_v2 = vmul.f32 %v689_v54, %v4661_v37  ;;  %v3631_v3 = vpack.c.bf16 %v634_v0, %v634_v0  ;;  %v1105_v18 = vmul.f32 %v4663_v38, %v689_v54 }
 0x240   : > { %v712_v4 = vsub.f32 %v694_v2, %v707_v1 }
 0x241   : > { %v767_v56 = vpop.permute.xlu1 %766 }
 0x242   : > { %1201 = vrot.lane.b32.xlu0 %v3659_v55, %s5480_s29  ;;  %v772_v15 = vmul.f32 %v767_v56, %v4661_v37  ;;  %v3635_v7 = vpack.c.bf16 %v712_v4, %v712_v4  ;;  %v1053_v37 = vmul.f32 %v4663_v38, %v611_v50  ;;  %v1157_v22 = vmul.f32 %v4663_v38, %v767_v56 }
 0x245   : > { %v785_v57 = vpop.permute.xlu1 %784 }
 0x246   : > { %v790_v9 = vsub.f32 %v772_v15, %v785_v57 }
 0x248   : > { %v3639_v11 = vpack.c.bf16 %v790_v9, %v790_v9 }
 0x249   : > { %v1008_v59 = vpop.permute.xlu1 %1007 }
 0x24a   : > { %v1013_v60 = vsub.f32 %v1001_v58, %v1008_v59 }
 0x24c   : > { %v3645_v61 = vpack.c.bf16 %v1013_v60, %v1013_v60 }
 0x24d   : > { %v1060_v6 = vpop.permute.xlu1 %1059 }
 0x24e   : > { %1023 = vst.msk [vmem:[#allocation2] sm:$0xf] %vm570_vm3, %v3645_v61  ;;  %v1065_v14 = vsub.f32 %v1053_v37, %v1060_v6 }
 0x250   : > { %v3649_v20 = vpack.c.bf16 %v1065_v14, %v1065_v14 }
 0x251   : > { %v1112_v13 = vpop.permute.xlu1 %1111 }
 0x252   : > { %v1117_v21 = vsub.f32 %v1105_v18, %v1112_v13 }
 0x254   : > { %v3653_v25 = vpack.c.bf16 %v1117_v21, %v1117_v21 }
 0x255   : > { %v1164_v19 = vpop.permute.xlu1 %1163 }
 0x256   : > { %v1169_v24 = vsub.f32 %v1157_v22, %v1164_v19 }
 0x258   : > { %v3657_v30 = vpack.c.bf16 %v1169_v24, %v1169_v24  ;;  %v1026_v24 = vmul.f32 %v4671_v45, %v4778_v43 }
 0x29c   : > { %v602_v5 = vpop.permute.xlu0 %601 }
 0x29d   : > { %608 = vst.msk [vmem:[#allocation3] sm:$0xf] %vm607_vm4, %v602_v5 }
 0x29e   : > { %645 = vst.msk [vmem:[#allocation3] sm:$0xf] %vm644_vm5, %v3631_v3 }
 0x2a0   : > { %v680_v10 = vpop.permute.xlu0 %679 }
 0x2a1   : > { %686 = vst.msk [vmem:[#allocation3] sm:$0xf] %vm685_vm6, %v680_v10 }
 0x2a2   : > { %723 = vst.msk [vmem:[#allocation3] sm:$0xf] %vm722_vm7, %v3635_v7 }
 0x2a4   : > { %v758_v12 = vpop.permute.xlu0 %757 }
 0x2a5   : > { %764 = vst.msk [vmem:[#allocation3] sm:$0xf] %vm763_vm8, %v758_v12 }
 0x2a6   : > { %801 = vst.msk [vmem:[#allocation3] sm:$0xf] %vm800_vm9, %v3639_v11 }
 0x2a8   : > { %v836_v17 = vpop.permute.xlu0 %835  ;;  %v1150_v31 = vpop.permute.xlu1 %1149 }
 0x2a9   : > { %842 = vst.msk [vmem:[#allocation3] sm:$0xf] %vm841_vm10, %v836_v17 }
 0x2ac   : > { %v1046_v23 = vpop.permute.xlu0 %1045 }
 0x2ad   : > { %1051 = vst.msk [vmem:[#allocation2] sm:$0xf] %vm607_vm4, %v1046_v23 }
 0x2ae   : > { %1075 = vst.msk [vmem:[#allocation2] sm:$0xf] %vm644_vm5, %v3649_v20  ;;  %v574_v20 = vmul.f32 %v4669_v44, %v4778_v43 }
 0x2b0   : > { %v1098_v26 = vpop.permute.xlu0 %1097  ;;  %v1215_v27 = vld [vmem:[#allocation3] sm:$0xf] }
 0x2b1   : > { %v4102_v28 = vld [vmem:[#allocation3] ss:$0 sps:$4 sm:$0xff]   ;;  %1103 = vst.msk [vmem:[#allocation2] sm:$0xf] %vm685_vm6, %v1098_v26  ;;  %v1222_v29 = vsel %vm1217_vm11, %v1215_v27, 0 }
 0x2b2   : > { %1127 = vst.msk [vmem:[#allocation2] sm:$0xf] %vm722_vm7, %v3653_v25  ;;  %3796 = vmatpush3.bf16.xpose.msra.mxu1 %v1222_v29  ;;  %1346 = vrot.lane.b32.xlu1 %v4102_v28, %s4405_s24  ;;  %v4103_v32 = vld [vmem:[#allocation3] ss:$0 sps:$4 sm:$0xff]  }
 0x2b3   : > { %1155 = vst.msk [vmem:[#allocation2] sm:$0xf] %vm763_vm8, %v1150_v31  ;;  %3801 = vmatprep.subr.bf16.mxu1 %v4395_v8  ;;  %v4104_v33 = vld [vmem:[#allocation3] ss:$0 sps:$4 sm:$0xff]  }
 0x2b4   : > { %1179 = vst.msk [vmem:[#allocation2] sm:$0xf] %vm800_vm9, %v3657_v30  ;;  %v1202_v38 = vpop.permute.xlu0 %1201  ;;  %v1753_v60 = vld [vmem:[#allocation3] sm:$0xf] }
 0x2b5   : > { %1207 = vst.msk [vmem:[#allocation2] sm:$0xf] %vm841_vm10, %v1202_v38  ;;  %v1759_v0 = vsel %vm1217_vm11, %v1753_v60, 0 }
 0x2b6   : > { %1485 = vrot.lane.b32.xlu1 %v4103_v32, %s4406_s19 }
 0x2ba   : > { %1624 = vrot.lane.b32.xlu1 %v4104_v33, %s4407_s13 }
 0x2bc   : > { %v1214_v35 = vld [vmem:[#allocation2] sm:$0xf] }
 0x2bd   : > { %v4105_v36 = vld [vmem:[#allocation2] ss:$0 sps:$4 sm:$0xff]   ;;  %3798 = vmatmul.mubr.msk.bf16.vlgmr.msra.gmra.mxu1 %vm1217_vm11, %v1214_v35 }
 0x2be   : > { %3802 = vmatpush3.bf16.msra.mxu1 %v1287_v39  ;;  %1341 = vrot.lane.b32.xlu0 %v4105_v36, %s4405_s24  ;;  %v4106_v41 = vld [vmem:[#allocation2] ss:$0 sps:$4 sm:$0xff]  }
 0x2bf   : > { %579 = vrot.lane.b32.xlu1 %v4764_v40, %s5480_s29  ;;  %3803 = vmatprep.mubr.msk.bf16.mxu1 %vm4396_vm1, %v4395_v8  ;;  %v4107_v42 = vld [vmem:[#allocation2] ss:$0 sps:$4 sm:$0xff]  }
 0x2c0   : > { %3813 = vmatprep.subr.bf16.mxu1 %v4395_v8 }
 0x2c2   : > { %1480 = vrot.lane.b32.xlu0 %v4106_v41, %s4406_s19 }
 0x2c3   : > { %735 = vrot.lane.b32.xlu1 %v4764_v40, %s4398_s25 }
 0x2c6   : > { %1619 = vrot.lane.b32.xlu0 %v4107_v42, %s4407_s13 }
 0x2c7   : > { %546 = vrot.lane.b32.xlu1 %v4778_v43, %s5480_s29 }
 0x2ca   : > { %657 = vrot.lane.b32.xlu0 %v4764_v40, %s4399_s30 }
 0x2ce   : > { %813 = vrot.lane.b32.xlu0 %v4764_v40, %s4400_s12 }
 0x2d2   : > { %620 = vrot.lane.b32.xlu0 %v4778_v43, %s4399_s30 }
 0x2d6   : > { %649 = vrot.lane.b32.xlu0 %v4778_v43, %s4401_s26 }
 0x2da   : > { %698 = vrot.lane.b32.xlu0 %v4778_v43, %s4398_s25  ;;  %s5492_s25 = smov 120  }
 0x2de   : > { %727 = vrot.lane.b32.xlu0 %v4778_v43, %s4402_s14 }
 0x2e2   : > { %776 = vrot.lane.b32.xlu0 %v4778_v43, %s4400_s12 }
 0x2e6   : > { %805 = vrot.lane.b32.xlu0 %v4778_v43, %s5491_s15 }
 0x324   : > { %v1347_v46 = vpop.permute.xlu1 %1346 }
 0x325   : > { %v1352_v47 = vsel %vm1217_vm11, %v1347_v46, 0  ;;  %v541_v46 = vmul.f32 %v4669_v44, %v4764_v40 }
 0x326   : > { %3808 = vmatpush3.bf16.xpose.msra.mxu0 %v1352_v47 }
 0x327   : > { %3819 = vmatprep.subr.bf16.mxu0 %v4395_v8 }
 0x328   : > { %v1486_v16 = vpop.permute.xlu1 %1485 }
 0x329   : > { %v1491_v50 = vsel %vm1217_vm11, %v1486_v16, 0 }
 0x32c   : > { %v1625_v48 = vpop.permute.xlu1 %1624 }
 0x32d   : > { %v1630_v56 = vsel %vm1217_vm11, %v1625_v48, 0 }
 0x330   : > { %v1342_v49 = vpop.permute.xlu0 %1341 }
 0x331   : > { %v580_v51 = vpop.permute.xlu1 %579  ;;  %3810 = vmatmul.mubr.msk.bf16.vlgmr.msra.gmra.mxu0 %vm1217_vm11, %v1342_v49 }
 0x332   : > { %v584_v52 = vmul.f32 %v580_v51, %v4669_v44  ;;  %3820 = vmatpush3.bf16.xpose.msra.mxu0 %v1491_v50  ;;  %3821 = vmatprep.mubr.msk.bf16.mxu0 %vm4396_vm1, %v4395_v8  ;;  %v1028_v54 = vmul.f32 %v4671_v45, %v580_v51  ;;  %v1002_v51 = vmul.f32 %v4671_v45, %v4764_v40 }
 0x333   : > { %3831 = vmatprep.subr.bf16.mxu0 %v4395_v8 }
 0x334   : > { %589 = vrot.lane.b32.xlu1 %v584_v52, %s5492_s25  ;;  %v1481_v53 = vpop.permute.xlu0 %1480 }
 0x335   : > { %v736_v57 = vpop.permute.xlu1 %735 }
 0x336   : > { %v740_v3 = vmul.f32 %v736_v57, %v4669_v44  ;;  %v1132_v15 = vmul.f32 %v4671_v45, %v736_v57 }
 0x338   : > { %1033 = vrot.lane.b32.xlu1 %v1028_v54, %s5492_s25  ;;  %v1620_v55 = vpop.permute.xlu0 %1619 }
 0x339   : > { %3822 = vmatmul.mubr.msk.bf16.vlgmr.msra.gmra.mxu0 %vm1217_vm11, %v1481_v53  ;;  %v547_v1 = vpop.permute.xlu1 %546 }
 0x33a   : > { %3832 = vmatpush3.bf16.xpose.msra.mxu0 %v1630_v56  ;;  %3833 = vmatprep.mubr.msk.bf16.mxu0 %vm4396_vm1, %v4395_v8  ;;  %v551_v4 = vmul.f32 %v547_v1, %v4669_v44  ;;  %v1004_v6 = vmul.f32 %v4671_v45, %v547_v1 }
 0x33b   : > { %3843 = vmatprep.subr.bf16.mxu0 %v4395_v8 }
 0x33c   : > { %v658_v58 = vpop.permute.xlu0 %657 }
 0x33d   : > { %v662_v59 = vmul.f32 %v658_v58, %v4669_v44  ;;  %v1080_v62 = vmul.f32 %v4671_v45, %v658_v58 }
 0x33f   : > { %667 = vrot.lane.b32.xlu1 %v662_v59, %s5492_s25 }
 0x340   : > { %v814_v61 = vpop.permute.xlu0 %813 }
 0x341   : > { %v818_v63 = vmul.f32 %v814_v61, %v4669_v44  ;;  %3834 = vmatmul.mubr.msk.bf16.vlgmr.msra.gmra.mxu0 %vm1217_vm11, %v1620_v55  ;;  %v1184_v7 = vmul.f32 %v4671_v45, %v814_v61 }
 0x342   : > { %3844 = vmatpush3.bf16.xpose.msra.mxu0 %v1759_v0  ;;  %3845 = vmatprep.mubr.msk.bf16.mxu0 %vm4396_vm1, %v4395_v8 }
 0x343   : > { %823 = vrot.lane.b32.xlu0 %v818_v63, %s5492_s25  ;;  %1085 = vrot.lane.b32.xlu1 %v1080_v62, %s5492_s25 }
 0x344   : > { %v621_v2 = vpop.permute.xlu0 %620  ;;  %3855 = vmatprep.subr.bf16.mxu0 %v4395_v8 }
 0x345   : > { %v625_v11 = vmul.f32 %v621_v2, %v4669_v44  ;;  %v1056_v13 = vmul.f32 %v4671_v45, %v621_v2  ;;  %v4108_v2 = vld [vmem:[#allocation4] ss:$0 sps:$4 sm:$0xff]  }
 0x347   : > { %745 = vrot.lane.b32.xlu1 %v740_v3, %s5492_s25  ;;  %556 = vrot.lane.b32.xlu0 %v551_v4, %s5492_s25  ;;  %v4109_v3 = vld [vmem:[#allocation3] ss:$0 sps:$4 sm:$0xff]   ;;  %v1209_v4 = vlaneseq }
 0x348   : > { %v650_v5 = vpop.permute.xlu0 %649 }
 0x349   : > { %v654_v30 = vmul.f32 %v650_v5, %v4669_v44  ;;  %v1078_v34 = vmul.f32 %v4671_v45, %v650_v5  ;;  %v1210_v5 = vshrl.u32 %v1209_v4, 7 }
 0x34b   : > { %1137 = vrot.lane.b32.xlu1 %v1132_v15, %s5492_s25  ;;  %1009 = vrot.lane.b32.xlu0 %v1004_v6, %s5492_s25  ;;  %v1212_v15 = vand.u32 127, %v1209_v4  ;;  %v4125_v6 = vld [vmem:[#allocation4 + $0x4] ss:$0 sps:$4 sm:$0xff]  }
 0x34c   : > { %v699_v9 = vpop.permute.xlu0 %698 }
 0x34d   : > { %v703_v10 = vmul.f32 %v699_v9, %v4669_v44  ;;  %v1108_v12 = vmul.f32 %v4671_v45, %v699_v9  ;;  %vm4881_vm13 = vcmp.ge.s32.totalorder %v1210_v5, %v1212_v15  ;;  %v4112_v15 = vld [vmem:[#allocation3] ss:$0 sps:$4 sm:$0xff]  }
 0x34f   : > { %1189 = vrot.lane.b32.xlu1 %v1184_v7, %s5492_s25  ;;  %690 = vrot.lane.b32.xlu0 %v4764_v40, %s4402_s14 }
 0x350   : > { %v728_v19 = vpop.permute.xlu0 %727 }
 0x351   : > { %v732_v42 = vmul.f32 %v728_v19, %v4669_v44  ;;  %v1130_v52 = vmul.f32 %v4671_v45, %v728_v19 }
 0x353   : > { %612 = vrot.lane.b32.xlu1 %v4764_v40, %s4401_s26  ;;  %708 = vrot.lane.b32.xlu0 %v703_v10, %s5492_s25 }
 0x354   : > { %v777_v25 = vpop.permute.xlu0 %776 }
 0x355   : > { %v781_v28 = vmul.f32 %v777_v25, %v4669_v44  ;;  %v1160_v31 = vmul.f32 %v4671_v45, %v777_v25 }
 0x357   : > { %630 = vrot.lane.b32.xlu1 %v625_v11, %s5492_s25  ;;  %1113 = vrot.lane.b32.xlu0 %v1108_v12, %s5492_s25 }
 0x358   : > { %v806_v38 = vpop.permute.xlu0 %805 }
 0x359   : > { %v810_v48 = vmul.f32 %v806_v38, %v4669_v44  ;;  %v1182_v60 = vmul.f32 %v4671_v45, %v806_v38 }
 0x35b   : > { %1061 = vrot.lane.b32.xlu1 %v1056_v13, %s5492_s25 }
 0x35f   : > { %768 = vrot.lane.b32.xlu1 %v4764_v40, %s5491_s15 }
 0x37d   : > { %v4849_v37 = vpop.f32.mrf.mxu1 }
 0x37e   : > { %v1264_v4 = vsel %vm4881_vm13, %v4849_v37, -1e+30 }
 0x37f   : > { %v3799_v14 = vpop.f32.mrf.mxu1  ;;  %v1266_v5 = vsel %vm1265_vm14, %v1264_v4, -inf }
 0x381   : > { %v1261_v17 = vpop.f32.mrf.mxu1 }
 0x383   : > { %v3800_v18 = vpop.f32.mrf.mxu1 }
 0x3a6   : > { %v590_v21 = vpop.permute.xlu1 %589 }
 0x3a7   : > { %v594_v22 = vadd.f32 %v590_v21, %v574_v20 }
 0x3a9   : > { %v3630_v23 = vpack.c.bf16 %v594_v22, %v594_v22 }
 0x3aa   : > { %v1034_v26 = vpop.permute.xlu1 %1033 }
 0x3ab   : > { %v1038_v27 = vadd.f32 %v1034_v26, %v1026_v24  ;;  %603 = vrot.lane.b32.xlu1 %v3630_v23, %s5480_s29 }
 0x3ad   : > { %v3648_v29 = vpack.c.bf16 %v1038_v27, %v1038_v27 }
 0x3af   : > { %786 = vrot.lane.b32.xlu1 %v781_v28, %s5492_s25  ;;  %1047 = vrot.lane.b32.xlu0 %v3648_v29, %s5480_s29 }
 0x3b1   : > { %v668_v32 = vpop.permute.xlu1 %667 }
 0x3b2   : > { %v672_v33 = vadd.f32 %v668_v32, %v654_v30 }
 0x3b3   : > { %1165 = vrot.lane.b32.xlu0 %v1160_v31, %s5492_s25 }
 0x3b4   : > { %v3634_v35 = vpack.c.bf16 %v672_v33, %v672_v33 }
 0x3b5   : > { %v824_v36 = vpop.permute.xlu0 %823  ;;  %v1086_v39 = vpop.permute.xlu1 %1085 }
 0x3b6   : > { %v1090_v41 = vadd.f32 %v1086_v39, %v1078_v34  ;;  %681 = vrot.lane.b32.xlu1 %v3634_v35, %s5480_s29  ;;  %v828_v53 = vadd.f32 %v824_v36, %v810_v48 }
 0x3b8   : > { %v3652_v43 = vpack.c.bf16 %v1090_v41, %v1090_v41  ;;  %v3642_v61 = vpack.c.bf16 %v828_v53, %v828_v53 }
 0x3b9   : > { %v557_v47 = vpop.permute.xlu0 %556  ;;  %v746_v16 = vpop.permute.xlu1 %745 }
 0x3ba   : > { %v561_v49 = vsub.f32 %v541_v46, %v557_v47  ;;  %v750_v50 = vadd.f32 %v746_v16, %v732_v42  ;;  %1099 = vrot.lane.b32.xlu0 %v3652_v43, %s5480_s29 }
 0x3bc   : > { %v3628_v54 = vpack.c.bf16 %v561_v49, %v561_v49  ;;  %v3638_v55 = vpack.c.bf16 %v750_v50, %v750_v50 }
 0x3bd   : > { %v1010_v56 = vpop.permute.xlu0 %1009  ;;  %v1138_v57 = vpop.permute.xlu1 %1137 }
 0x3be   : > { %572 = vst.msk [vmem:[#allocation3 + $0x4] sm:$0xf] %vm570_vm3, %v3628_v54  ;;  %v1014_v58 = vsub.f32 %v1002_v51, %v1010_v56  ;;  %v1142_v59 = vadd.f32 %v1138_v57, %v1130_v52  ;;  %759 = vrot.lane.b32.xlu1 %v3638_v55, %s5480_s29 }
 0x3c0   : > { %v3646_v62 = vpack.c.bf16 %v1014_v58, %v1014_v58  ;;  %v3656_v63 = vpack.c.bf16 %v1142_v59, %v1142_v59 }
 0x3c1   : > { %v1190_v0 = vpop.permute.xlu1 %1189  ;;  %v691_v26 = vpop.permute.xlu0 %690 }
 0x3c2   : > { %1024 = vst.msk [vmem:[#allocation2 + $0x4] sm:$0xf] %vm570_vm3, %v3646_v62  ;;  %v1194_v40 = vadd.f32 %v1190_v0, %v1182_v60  ;;  %837 = vrot.lane.b32.xlu1 %v3642_v61, %s5480_s29  ;;  %1151 = vrot.lane.b32.xlu0 %v3656_v63, %s5480_s29  ;;  %v695_v41 = vmul.f32 %v691_v26, %v4669_v44  ;;  %vm1611_vm3 = vcmask 388352  }
 0x3c3   : > { %v1106_v46 = vmul.f32 %v4671_v45, %v691_v26 }
 0x3c4   : > { %v3660_v1 = vpack.c.bf16 %v1194_v40, %v1194_v40 }
 0x3c5   : > { %v613_v23 = vpop.permute.xlu1 %612  ;;  %v709_v28 = vpop.permute.xlu0 %708 }
 0x3c6   : > { %1414 = vrot.lane.b32.xlu1 %v4108_v2, %s4405_s24  ;;  %1203 = vrot.lane.b32.xlu0 %v3660_v1, %s5480_s29  ;;  %v617_v29 = vmul.f32 %v613_v23, %v4669_v44  ;;  %v1054_v38 = vmul.f32 %v4671_v45, %v613_v23  ;;  %v713_v42 = vsub.f32 %v695_v41, %v709_v28 }
 0x3c8   : > { %v3636_v47 = vpack.c.bf16 %v713_v42, %v713_v42 }
 0x3c9   : > { %v631_v25 = vpop.permute.xlu1 %630  ;;  %v1114_v32 = vpop.permute.xlu0 %1113 }
 0x3ca   : > { %1989 = vrot.lane.b32.xlu0 %v4109_v3, %s4405_s24  ;;  %v635_v30 = vsub.f32 %v617_v29, %v631_v25  ;;  %v1118_v16 = vsub.f32 %v1106_v46, %v1114_v32 }
 0x3cc   : > { %v3632_v33 = vpack.c.bf16 %v635_v30, %v635_v30  ;;  %v3654_v51 = vpack.c.bf16 %v1118_v16, %v1118_v16 }
 0x3cd   : > { %v1062_v27 = vpop.permute.xlu1 %1061 }
 0x3ce   : > { %v1066_v34 = vsub.f32 %v1054_v38, %v1062_v27 }
 0x3d0   : > { %v3650_v36 = vpack.c.bf16 %v1066_v34, %v1066_v34 }
 0x3d1   : > { %v769_v31 = vpop.permute.xlu1 %768 }
 0x3d2   : > { %v773_v50 = vmul.f32 %v769_v31, %v4669_v44  ;;  %v1158_v54 = vmul.f32 %v4671_v45, %v769_v31 }
 0x3f1   : > { %v1388_v7 = vpop.f32.mrf.mxu0 }
 0x3f2   : > { %v4887_v9 = vsel %vm4881_vm13, %v1388_v7, -1e+30 }
 0x3f3   : > { %v3811_v10 = vpop.f32.mrf.mxu0  ;;  %v1395_v11 = vsel %vm1265_vm14, %v4887_v9, -inf }
 0x3f4   : > { %1396 = vmax.xlane.f32.xlu0 %v1395_v11  ;;  %v4114_v10 = vld [vmem:[#allocation4] ss:$0 sps:$4 sm:$0xff]   ;;  %v4115_v11 = vld [vmem:[#allocation3] ss:$0 sps:$4 sm:$0xff]  }
 0x3f5   : > { %v1391_v12 = vpop.f32.mrf.mxu0 }
 0x3f6   : > { %v4116_v12 = vld [vmem:[#allocation4] ss:$0 sps:$4 sm:$0xff]  }
 0x3f7   : > { %v3812_v13 = vpop.f32.mrf.mxu0 }
 0x3f9   : > { %v4891_v14 = vpop.f32.mrf.mxu0 }
 0x3fa   : > { %v1533_v2 = vsel %vm4881_vm13, %v4891_v14, -1e+30 }
 0x3fb   : > { %v3823_v17 = vpop.f32.mrf.mxu0  ;;  %v1534_v3 = vsel %vm1265_vm14, %v1533_v2, -inf }
 0x3fd   : > { %v1530_v18 = vpop.f32.mrf.mxu0 }
 0x3ff   : > { %v3824_v19 = vpop.f32.mrf.mxu0 }
 0x401   : > { %v4893_v20 = vpop.f32.mrf.mxu0 }
 0x402   : > { %v4944_v37 = vsel %vm4881_vm13, %v4893_v20, -1e+30 }
 0x403   : > { %v3835_v21 = vpop.f32.mrf.mxu0  ;;  %v1673_v14 = vsel %vm1265_vm14, %v4944_v37, -inf }
 0x405   : > { %v1669_v22 = vpop.f32.mrf.mxu0 }
 0x407   : > { %v3836_v24 = vpop.f32.mrf.mxu0 }
 0x41d   : > { %v604_v35 = vpop.permute.xlu1 %603 }
 0x41e   : > { %609 = vst.msk [vmem:[#allocation3 + $0x4] sm:$0xf] %vm607_vm4, %v604_v35 }
 0x41f   : > { %646 = vst.msk [vmem:[#allocation3 + $0x4] sm:$0xf] %vm644_vm5, %v3632_v33 }
 0x421   : > { %v1048_v39 = vpop.permute.xlu0 %1047  ;;  %v787_v43 = vpop.permute.xlu1 %786 }
 0x422   : > { %1052 = vst.msk [vmem:[#allocation2 + $0x4] sm:$0xf] %vm607_vm4, %v1048_v39  ;;  %v791_v52 = vsub.f32 %v773_v50, %v787_v43  ;;  %vm1750_vm4 = vcmask 519552  }
 0x423   : > { %1076 = vst.msk [vmem:[#allocation2 + $0x4] sm:$0xf] %vm644_vm5, %v3650_v36 }
 0x424   : > { %v3640_v55 = vpack.c.bf16 %v791_v52, %v791_v52 }
 0x425   : > { %v1166_v48 = vpop.permute.xlu0 %1165 }
 0x426   : > { %v1170_v56 = vsub.f32 %v1158_v54, %v1166_v48 }
 0x428   : > { %v682_v49 = vpop.permute.xlu1 %681  ;;  %v3658_v58 = vpack.c.bf16 %v1170_v56, %v1170_v56 }
 0x429   : > { %687 = vst.msk [vmem:[#allocation3 + $0x4] sm:$0xf] %vm685_vm6, %v682_v49 }
 0x42a   : > { %724 = vst.msk [vmem:[#allocation3 + $0x4] sm:$0xf] %vm722_vm7, %v3636_v47 }
 0x42c   : > { %v1100_v53 = vpop.permute.xlu0 %1099 }
 0x42d   : > { %1104 = vst.msk [vmem:[#allocation2 + $0x4] sm:$0xf] %vm685_vm6, %v1100_v53 }
 0x42e   : > { %1128 = vst.msk [vmem:[#allocation2 + $0x4] sm:$0xf] %vm722_vm7, %v3654_v51 }
 0x430   : > { %v760_v57 = vpop.permute.xlu1 %759 }
 0x431   : > { %765 = vst.msk [vmem:[#allocation3 + $0x4] sm:$0xf] %vm763_vm8, %v760_v57 }
 0x432   : > { %802 = vst.msk [vmem:[#allocation3 + $0x4] sm:$0xf] %vm800_vm9, %v3640_v55 }
 0x434   : > { %v1152_v44 = vpop.permute.xlu0 %1151  ;;  %v838_v59 = vpop.permute.xlu1 %837 }
 0x435   : > { %1156 = vst.msk [vmem:[#allocation2 + $0x4] sm:$0xf] %vm763_vm8, %v1152_v44 }
 0x436   : > { %843 = vst.msk [vmem:[#allocation3 + $0x4] sm:$0xf] %vm841_vm10, %v838_v59 }
 0x437   : > { %1180 = vst.msk [vmem:[#allocation2 + $0x4] sm:$0xf] %vm800_vm9, %v3658_v58 }
 0x438   : > { %v1204_v60 = vpop.permute.xlu0 %1203  ;;  %v1415_v19 = vpop.permute.xlu1 %1414 }
 0x439   : > { %1208 = vst.msk [vmem:[#allocation2 + $0x4] sm:$0xf] %vm841_vm10, %v1204_v60  ;;  %v1420_v50 = vsel %vm1285_vm12, %v1415_v19, 0 }
 0x43c   : > { %v1990_v40 = vpop.permute.xlu0 %1989 }
 0x43d   : > { %v4110_v45 = vld [vmem:[#allocation3 + $0x4] ss:$0 sps:$4 sm:$0xff]   ;;  %v1995_v1 = vsel %vm1217_vm11, %v1990_v40, 0 }
 0x43e   : > { %2110 = vrot.lane.b32.xlu0 %v4110_v45, %s4405_s24  ;;  %v1864_v61 = vld [vmem:[#allocation3 + $0x4] sm:$0xf] }
 0x43f   : > { %v1867_v0 = vsel %vm1217_vm11, %v1864_v61, 0  ;;  %v4117_v13 = vld [vmem:[#allocation3 + $0x4] ss:$0 sps:$4 sm:$0xff]  }
 0x440   : > { %v1752_v62 = vld [vmem:[#allocation2 + $0x4] sm:$0xf]  ;;  %v4118_v18 = vld [vmem:[#allocation3 + $0x4] ss:$0 sps:$4 sm:$0xff]  }
 0x441   : > { %v4111_v63 = vld [vmem:[#allocation2 + $0x4] ss:$0 sps:$4 sm:$0xff]   ;;  %3846 = vmatmul.mubr.msk.bf16.vlgmr.msra.gmra.mxu0 %vm1217_vm11, %v1752_v62 }
 0x442   : > { %3856 = vmatpush3.bf16.xpose.msra.mxu0 %v1867_v0  ;;  %1984 = vrot.lane.b32.xlu1 %v4111_v63, %s4405_s24  ;;  %v4113_v7 = vld [vmem:[#allocation2 + $0x4] ss:$0 sps:$4 sm:$0xff]  }
 0x443   : > { %3857 = vmatprep.mubr.msk.bf16.mxu0 %vm4396_vm1, %v4395_v8  ;;  %3867 = vmatprep.subr.bf16.mxu0 %v4395_v8  ;;  %v4119_v22 = vld [vmem:[#allocation2 + $0x4] ss:$0 sps:$4 sm:$0xff]  }
 0x449   : > { %3858 = vmatmul.mubr.msk.bf16.vlgmr.msra.gmra.mxu0 %vm1217_vm11, %v1752_v62 }
 0x44a   : > { %3868 = vmatpush3.bf16.xpose.msra.mxu0 %v1995_v1  ;;  %3869 = vmatprep.mubr.msk.bf16.mxu0 %vm4396_vm1, %v4395_v8 }
 0x44b   : > { %3879 = vmatprep.subr.bf16.mxu0 %v4395_v8 }
 0x45d   : > { %1535 = vmax.xlane.f32.xlu0 %v1534_v3 }
 0x466   : > { %1267 = vmax.xlane.f32.xlu1 %v1266_v5 }
 0x473   : > { %2246 = vrot.lane.b32.xlu0 %v4112_v15, %s4406_s19 }
 0x477   : > { %2241 = vrot.lane.b32.xlu0 %v4113_v7, %s4406_s19  ;;  %1553 = vrot.lane.b32.xlu1 %v4114_v10, %s4406_s19 }
 0x47b   : > { %2503 = vrot.lane.b32.xlu0 %v4115_v11, %s4407_s13  ;;  %1692 = vrot.lane.b32.xlu1 %v4116_v12, %s4407_s13  ;;  %v1754_v11 = vld [vmem:[#allocation4] sm:$0xf] }
 0x47d   : > { %v4948_v17 = vpop.xlane.xlu0 %1396 }
 0x47e   : > { %v1398_v20 = vmax.f32 %v4948_v17, -1e+30 }
 0x47f   : > { %2624 = vrot.lane.b32.xlu0 %v4117_v13, %s4407_s13 }
 0x480   : > { %v1402_v25 = vsub.f32 %v4887_v9, %v1398_v20 }
 0x482   : > { %v1403_v26 = vmul.f32 1.442695, %v1402_v25 }
 0x484   : > { %4166 = vpow2.f32 %v1403_v26 }
 0x491   : > { %v4167_v27 = vpop.eup %4166 }
 0x492   : > { %v1406_v28 = vsel %vm1265_vm14, %v4167_v27, 0.0  ;;  %v1410_v58 = vpack.c.bf16 %v4167_v27, %v4167_v27 }
 0x49f   : > { %1674 = vmax.xlane.f32.xlu1 %v1673_v14 }
 0x4b0   : > { %2367 = vrot.lane.b32.xlu1 %v4118_v18, %s4406_s19  ;;  %v2111_v21 = vpop.permute.xlu0 %2110 }
 0x4b1   : > { %v2113_v24 = vsel %vm1217_vm11, %v2111_v21, 0 }
 0x4b4   : > { %v1985_v23 = vpop.permute.xlu1 %1984  ;;  %2498 = vrot.lane.b32.xlu1 %v4119_v22, %s4407_s13 }
 0x4b5   : > { %3870 = vmatmul.mubr.msk.bf16.vlgmr.msra.gmra.mxu0 %vm1217_vm11, %v1985_v23 }
 0x4b6   : > { %3880 = vmatpush3.bf16.xpose.msra.mxu0 %v2113_v24  ;;  %3881 = vmatprep.mubr.msk.bf16.mxu0 %vm4396_vm1, %v4395_v8 }
 0x4b7   : > { %3891 = vmatprep.subr.bf16.mxu0 %v4395_v8 }
 0x4bd   : > { %3882 = vmatmul.mubr.msk.bf16.vlgmr.msra.gmra.mxu0 %vm1217_vm11, %v1985_v23 }
 0x4be   : > { %3893 = vmatprep.mubr.msk.bf16.mxu0 %vm4396_vm1, %v4395_v8 }
 0x4d8   : > { %1407 = vadd.xlane.f32.xlu1 %v1406_v28 }
 0x4e6   : > { %v4965_v29 = vpop.xlane.xlu0 %1535 }
 0x4e7   : > { %v1537_v30 = vmax.f32 %v4965_v29, -1e+30 }
 0x4e9   : > { %v1541_v31 = vsub.f32 %v1533_v2, %v1537_v30 }
 0x4ea   : > { %v2247_v38 = vpop.permute.xlu0 %2246 }
 0x4eb   : > { %v1542_v32 = vmul.f32 1.442695, %v1541_v31  ;;  %v2252_v33 = vsel %vm1217_vm11, %v2247_v38, 0 }
 0x4ec   : > { %3892 = vmatpush3.bf16.xpose.msra.mxu0 %v2252_v33 }
 0x4ed   : > { %3903 = vmatprep.subr.bf16.mxu0 %v4395_v8  ;;  %4168 = vpow2.f32 %v1542_v32 }
 0x4ee   : > { %v2242_v35 = vpop.permute.xlu0 %2241 }
 0x4ef   : > { %v4972_v9 = vpop.xlane.xlu1 %1267 }
 0x4f0   : > { %v1269_v34 = vmax.f32 %v4972_v9, -1e+30 }
 0x4f2   : > { %v1273_v36 = vsub.f32 %v1264_v4, %v1269_v34  ;;  %v2504_v3 = vpop.permute.xlu0 %2503  ;;  %v1270_v17 = vsub.f32 -1e+30, %v1269_v34 }
 0x4f3   : > { %3894 = vmatmul.mubr.msk.bf16.vlgmr.msra.gmra.mxu0 %vm1217_vm11, %v2242_v35  ;;  %v1554_v56 = vpop.permute.xlu1 %1553  ;;  %v2509_v4 = vsel %vm1217_vm11, %v2504_v3, 0 }
 0x4f4   : > { %v1274_v39 = vmul.f32 1.442695, %v1273_v36  ;;  %3905 = vmatprep.mubr.msk.bf16.mxu0 %vm4396_vm1, %v4395_v8  ;;  %v1559_v44 = vsel %vm1285_vm12, %v1554_v56, 0 }
 0x4f6   : > { %4170 = vpow2.f32 %v1274_v39  ;;  %v2625_v5 = vpop.permute.xlu0 %2624 }
 0x4f7   : > { %v1693_v60 = vpop.permute.xlu1 %1692  ;;  %v2627_v10 = vsel %vm1217_vm11, %v2625_v5, 0 }
 0x4f8   : > { %v1698_v61 = vsel %vm1285_vm12, %v1693_v60, 0 }
 0x4fa   : > { %v4169_v41 = vpop.eup %4168 }
 0x4fb   : > { %v1545_v42 = vsel %vm1265_vm14, %v4169_v41, 0.0  ;;  %v1549_v45 = vpack.c.bf16 %v4169_v41, %v4169_v41 }
 0x4fc   : > { %1546 = vadd.xlane.f32.xlu0 %v1545_v42 }
 0x501   : > { %v4981_v43 = vpop.f32.mrf.mxu0 }
 0x502   : > { %v1801_v46 = vsel %vm1265_vm14, %v4981_v43, -inf }
 0x503   : > { %v3847_v47 = vpop.f32.mrf.mxu0  ;;  %1802 = vmax.xlane.f32.xlu1 %v1801_v46  ;;  %v4171_v16 = vpop.eup %4170 }
 0x504   : > { %v1281_v49 = vpack.c.bf16 %v4171_v16, %v4171_v16  ;;  %v1277_v14 = vsel %vm1265_vm14, %v4171_v16, 0.0 }
 0x505   : > { %v1798_v48 = vpop.f32.mrf.mxu0 }
 0x506   : > { %3804 = vmatmul.mubr.msk.bf16.vlgmr.msra.gmra.mxu1 %vm1265_vm14, %v1281_v49  ;;  %v1865_v48 = vld [vmem:[#allocation4 + $0x4] sm:$0xf] }
 0x507   : > { %v3848_v51 = vpop.f32.mrf.mxu0  ;;  %3814 = vmatpush3.bf16.msra.mxu1 %v1420_v50  ;;  %3815 = vmatprep.mubr.msk.bf16.mxu1 %vm4396_vm1, %v4395_v8  ;;  %v1931_v49 = vsel %vm1285_vm12, %v1865_v48, 0  ;;  %v1399_v50 = vsub.f32 -1e+30, %v1398_v20  ;;  %v4120_v48 = vld [vmem:[#allocation4] ss:$0 sps:$4 sm:$0xff]  }
 0x508   : > { %3825 = vmatprep.subr.bf16.mxu1 %v4395_v8 }
 0x509   : > { %v1903_v52 = vpop.f32.mrf.mxu0 }
 0x50a   : > { %v4992_v53 = vsel %vm4881_vm13, %v1903_v52, -1e+30  ;;  %v1400_v52 = vmul.f32 1.442695, %v1399_v50 }
 0x50b   : > { %v1910_v54 = vsel %vm1265_vm14, %v4992_v53, -inf  ;;  %v3859_v55 = vpop.f32.mrf.mxu0 }
 0x50c   : > { %1911 = vmax.xlane.f32.xlu1 %v1910_v54  ;;  %v1538_v54 = vsub.f32 -1e+30, %v1537_v30 }
 0x50d   : > { %v1906_v57 = vpop.f32.mrf.mxu0 }
 0x50e   : > { %3816 = vmatmul.mubr.msk.bf16.vlgmr.msra.gmra.mxu1 %vm1265_vm14, %v1410_v58  ;;  %v1539_v55 = vmul.f32 1.442695, %v1538_v54  ;;  %v1271_v58 = vmul.f32 1.442695, %v1270_v17 }
 0x50f   : > { %v3860_v59 = vpop.f32.mrf.mxu0  ;;  %3826 = vmatpush3.bf16.msra.mxu1 %v1559_v44  ;;  %3827 = vmatprep.mubr.msk.bf16.mxu1 %vm4396_vm1, %v4395_v8 }
 0x510   : > { %3837 = vmatprep.subr.bf16.mxu1 %v4395_v8 }
 0x516   : > { %3828 = vmatmul.mubr.msk.bf16.vlgmr.msra.gmra.mxu1 %vm1265_vm14, %v1549_v45 }
 0x517   : > { %3838 = vmatpush3.bf16.msra.mxu1 %v1698_v61  ;;  %3839 = vmatprep.mubr.msk.bf16.mxu1 %vm4396_vm1, %v4395_v8 }
 0x518   : > { %3849 = vmatprep.subr.bf16.mxu1 %v4395_v8 }
 0x528   : > { %v5006_v62 = vpop.xlane.xlu1 %1674 }
 0x529   : > { %v1676_v63 = vmax.f32 %v5006_v62, -1e+30 }
 0x52b   : > { %v1680_v0 = vsub.f32 %v4944_v37, %v1676_v63  ;;  %v1821_v37 = vsel %vm1285_vm12, %v1754_v11, 0 }
 0x52c   : > { %v2368_v40 = vpop.permute.xlu1 %2367 }
 0x52d   : > { %v1681_v1 = vmul.f32 1.442695, %v1680_v0  ;;  %v2370_v2 = vsel %vm1217_vm11, %v2368_v40, 0 }
 0x52e   : > { %3904 = vmatpush3.bf16.xpose.msra.mxu0 %v2370_v2 }
 0x52f   : > { %3915 = vmatprep.subr.bf16.mxu0 %v4395_v8  ;;  %4172 = vpow2.f32 %v1681_v1 }
 0x530   : > { %v2499_v15 = vpop.permute.xlu1 %2498 }
 0x535   : > { %3906 = vmatmul.mubr.msk.bf16.vlgmr.msra.gmra.mxu0 %vm1217_vm11, %v2242_v35 }
 0x536   : > { %3916 = vmatpush3.bf16.xpose.msra.mxu0 %v2509_v4  ;;  %3917 = vmatprep.mubr.msk.bf16.mxu0 %vm4396_vm1, %v4395_v8 }
 0x537   : > { %3927 = vmatprep.subr.bf16.mxu0 %v4395_v8 }
 0x53c   : > { %v4173_v7 = vpop.eup %4172 }
 0x53d   : > { %3918 = vmatmul.mubr.msk.bf16.vlgmr.msra.gmra.mxu0 %vm1217_vm11, %v2499_v15  ;;  %v1684_v12 = vsel %vm1265_vm14, %v4173_v7, 0.0  ;;  %v1688_v13 = vpack.c.bf16 %v4173_v7, %v4173_v7 }
 0x53e   : > { %3928 = vmatpush3.bf16.xpose.msra.mxu0 %v2627_v10  ;;  %3929 = vmatprep.mubr.msk.bf16.mxu0 %vm4396_vm1, %v4395_v8 }
 0x53f   : > { %1685 = vadd.xlane.f32.xlu0 %v1684_v12  ;;  %3939 = vmatprep.subr.bf16.mxu0 %v4395_v8 }
 0x540   : > { %3840 = vmatmul.mubr.msk.bf16.vlgmr.msra.gmra.mxu1 %vm1265_vm14, %v1688_v13 }
 0x541   : > { %3850 = vmatpush3.bf16.msra.mxu1 %v1821_v37  ;;  %3851 = vmatprep.mubr.msk.bf16.mxu1 %vm4396_vm1, %v4395_v8 }
 0x542   : > { %3861 = vmatprep.subr.bf16.mxu1 %v4395_v8 }
 0x543   : > { %1278 = vadd.xlane.f32.xlu0 %v1277_v14 }
 0x545   : > { %3930 = vmatmul.mubr.msk.bf16.vlgmr.msra.gmra.mxu0 %vm1217_vm11, %v2499_v15 }
 0x546   : > { %3947 = vmatprep.mubr.msk.bf16.mxu0 %vm4396_vm1, %v4395_v8 }
 0x561   : > { %v1408_v38 = vpop.xlane.xlu1 %1407 }
 0x575   : > { %v5034_v18 = vpop.f32.mrf.mxu0 }
 0x576   : > { %v2037_v19 = vsel %vm1265_vm14, %v5034_v18, -inf }
 0x577   : > { %v3871_v21 = vpop.f32.mrf.mxu0  ;;  %2038 = vmax.xlane.f32.xlu0 %v2037_v19 }
 0x579   : > { %v2034_v22 = vpop.f32.mrf.mxu0 }
 0x57a   : > { %v1677_v22 = vsub.f32 -1e+30, %v1676_v63 }
 0x57b   : > { %v3872_v23 = vpop.f32.mrf.mxu0 }
 0x57d   : > { %v2149_v24 = vpop.f32.mrf.mxu0 }
 0x57e   : > { %v5040_v25 = vsel %vm4881_vm13, %v2149_v24, -1e+30 }
 0x57f   : > { %v2156_v26 = vsel %vm1265_vm14, %v5040_v25, -inf  ;;  %v3883_v27 = vpop.f32.mrf.mxu0 }
 0x580   : > { %2157 = vmax.xlane.f32.xlu1 %v2156_v26 }
 0x581   : > { %v2152_v28 = vpop.f32.mrf.mxu0 }
 0x583   : > { %v3884_v31 = vpop.f32.mrf.mxu0 }
 0x584   : > { %v1678_v31 = vmul.f32 1.442695, %v1677_v22 }
 0x585   : > { %v1547_v61 = vpop.xlane.xlu0 %1546 }
 0x58c   : > { %v1803_v32 = vpop.xlane.xlu1 %1802 }
 0x58d   : > { %v5044_v33 = vmax.f32 %v1803_v32, -1e+30 }
 0x58f   : > { %v1808_v35 = vsub.f32 %v4981_v43, %v5044_v33 }
 0x591   : > { %v1809_v36 = vmul.f32 1.442695, %v1808_v35 }
 0x593   : > { %4174 = vpow2.f32 %v1809_v36 }
 0x595   : > { %v1912_v39 = vpop.xlane.xlu1 %1911 }
 0x596   : > { %v5049_v41 = vmax.f32 %v5044_v33, %v1912_v39 }
 0x598   : > { %v1914_v42 = vsub.f32 %v5044_v33, %v5049_v41  ;;  %v1917_v46 = vsub.f32 %v4992_v53, %v5049_v41 }
 0x59a   : > { %v1918_v47 = vmul.f32 1.442695, %v1917_v46 }
 0x59c   : > { %4176 = vpow2.f32 %v1918_v47 }
 0x59d   : > { %4178 = vpow2.f32 %v1400_v52  ;;  %v4127_v52 = vld [vmem:[#allocation11 + $0x10] sm:$0xff]  }
 0x59e   : > { %4180 = vpow2.f32 %v1539_v55  ;;  %v4128_v55 = vld [vmem:[#allocation11 + $0x8] sm:$0xff]  }
 0x59f   : > { %4182 = vpow2.f32 %v1271_v58 }
 0x5a0   : > { %v5055_v16 = vpop.eup %4174 }
 0x5a1   : > { %v1816_v43 = vpack.c.bf16 %v5055_v16, %v5055_v16 }
 0x5a3   : > { %3852 = vmatmul.mubr.msk.bf16.vlgmr.msra.gmra.mxu1 %vm1265_vm14, %v1816_v43 }
 0x5a4   : > { %3862 = vmatpush3.bf16.msra.mxu1 %v1931_v49  ;;  %3863 = vmatprep.mubr.msk.bf16.mxu1 %vm4396_vm1, %v4395_v8  ;;  %v4126_v49 = vld [vmem:[#allocation11 + $0x18] sm:$0xff]  }
 0x5a5   : > { %3873 = vmatprep.subr.bf16.mxu1 %v4395_v8  ;;  %3940 = vmatpush3.bf16.msra.mxu0 %v4126_v49 }
 0x5a6   : > { %3941 = vmatprep.subr.bf16.mxu0 %v4395_v8 }
 0x5a9   : > { %v5066_v51 = vpop.eup %4176  ;;  %3942 = vmatpush3.bf16.msra.mxu0 %v4127_v52 }
 0x5aa   : > { %v1926_v53 = vpack.c.bf16 %v5066_v51, %v5066_v51  ;;  %v4179_v29 = vpop.eup %4178  ;;  %3943 = vmatprep.subr.bf16.mxu0 %v4395_v8 }
 0x5ab   : > { %v1405_v30 = vmul.f32 0.0, %v4179_v29  ;;  %v4181_v45 = vpop.eup %4180 }
 0x5ac   : > { %3864 = vmatmul.mubr.msk.bf16.vlgmr.msra.gmra.mxu1 %vm1265_vm14, %v1926_v53  ;;  %v1544_v9 = vmul.f32 0.0, %v4181_v45  ;;  %v4183_v0 = vpop.eup %4182 }
 0x5ad   : > { %3875 = vmatprep.mubr.msk.bf16.mxu1 %vm4396_vm1, %v4395_v8  ;;  %v1409_v60 = vadd.f32 %v1408_v38, %v1405_v30  ;;  %v1276_v3 = vmul.f32 0.0, %v4183_v0  ;;  %3944 = vmatpush3.bf16.msra.mxu0 %v4128_v55 }
 0x5ae   : > { %v1548_v40 = vadd.f32 %v1547_v61, %v1544_v9  ;;  %3945 = vmatprep.subr.bf16.mxu0 %v4395_v8 }
 0x5af   : > { %4184 = vrcp.f32 %v1409_v60 }
 0x5b0   : > { %4186 = vrcp.f32 %v1548_v40 }
 0x5b3   : > { %v5077_v20 = vpop.f32.mrf.mxu0 }
 0x5b4   : > { %v2294_v56 = vsel %vm1265_vm14, %v5077_v20, -inf }
 0x5b5   : > { %v3895_v57 = vpop.f32.mrf.mxu0  ;;  %2295 = vmax.xlane.f32.xlu0 %v2294_v56 }
 0x5b6   : > { %v4129_v57 = vld [vmem:[#allocation11] sm:$0xff]  }
 0x5b7   : > { %v2291_v44 = vpop.f32.mrf.mxu0  ;;  %3946 = vmatpush3.bf16.msra.mxu0 %v4129_v57 }
 0x5b8   : > { %3951 = vmatprep.subr.bf16.mxu0 %v4395_v8 }
 0x5b9   : > { %v3896_v59 = vpop.f32.mrf.mxu0 }
 0x5bc   : > { %v4185_v12 = vpop.eup %4184 }
 0x5bd   : > { %v4187_v26 = vpop.eup %4186 }
 0x5c6   : > { %v1323_v34 = vpop.f32.mrf.mxu1 }
 0x5c7   : > { %v1329_v38 = vadd.f32 %v1323_v34, %v1276_v3 }
 0x5c8   : > { %v1686_v1 = vpop.xlane.xlu0 %1685  ;;  %v3805_v2 = vpop.f32.mrf.mxu1 }
 0x5ca   : > { %v1326_v4 = vpop.f32.mrf.mxu1 }
 0x5cc   : > { %v1279_v5 = vpop.xlane.xlu0 %1278  ;;  %v3806_v7 = vpop.f32.mrf.mxu1 }
 0x5cd   : > { %v1280_v15 = vadd.f32 %v1279_v5, %v1276_v3 }
 0x5ce   : > { %v1456_v10 = vpop.f32.mrf.mxu1 }
 0x5cf   : > { %4188 = vrcp.f32 %v1280_v15  ;;  %v1462_v11 = vadd.f32 %v1456_v10, %v1405_v30 }
 0x5d0   : > { %v3817_v13 = vpop.f32.mrf.mxu1  ;;  %4190 = vpow2.f32 %v1678_v31  ;;  %v1805_v31 = vsub.f32 -1e+30, %v5044_v33 }
 0x5d1   : > { %v1464_v37 = vmul.f32 %v4185_v12, %v1462_v11 }
 0x5d2   : > { %v1459_v14 = vpop.f32.mrf.mxu1 }
 0x5d3   : > { %v3661_v19 = vpack.c.bf16 %v1464_v37, %v1464_v37  ;;  %v4121_v37 = vld [vmem:[#allocation4] ss:$0 sps:$4 sm:$0xff]  }
 0x5d4   : > { %v3818_v21 = vpop.f32.mrf.mxu1 }
 0x5d5   : > { %1469 = vrot.lane.b32.xlu1 %v3661_v19, %s4401_s26 }
 0x5d6   : > { %v1595_v23 = vpop.f32.mrf.mxu1 }
 0x5d7   : > { %v1601_v24 = vadd.f32 %v1595_v23, %v1544_v9 }
 0x5d8   : > { %v3829_v27 = vpop.f32.mrf.mxu1 }
 0x5d9   : > { %v1603_v28 = vmul.f32 %v4187_v26, %v1601_v24  ;;  %v4122_v24 = vld [vmem:[#allocation4 + $0x4] ss:$0 sps:$4 sm:$0xff]  }
 0x5da   : > { %v1598_v32 = vpop.f32.mrf.mxu1  ;;  %v4123_v27 = vld [vmem:[#allocation4 + $0x4] ss:$0 sps:$4 sm:$0xff]  }
 0x5db   : > { %v3662_v36 = vpack.c.bf16 %v1603_v28, %v1603_v28  ;;  %v1806_v32 = vmul.f32 1.442695, %v1805_v31 }
 0x5dc   : > { %v4189_v35 = vpop.eup %4188  ;;  %v3830_v39 = vpop.f32.mrf.mxu1 }
 0x5dd   : > { %v1331_v46 = vmul.f32 %v4189_v35, %v1329_v38  ;;  %1608 = vrot.lane.b32.xlu0 %v3662_v36, %s4402_s14  ;;  %v4191_v62 = vpop.eup %4190 }
 0x5de   : > { %v1683_v63 = vmul.f32 0.0, %v4191_v62 }
 0x5df   : > { %v1332_v47 = vpack.c.bf16 %v1331_v46, %v1331_v46  ;;  %v1915_v46 = vmul.f32 1.442695, %v1914_v42 }
 0x5e0   : > { %v1687_v43 = vadd.f32 %v1686_v1, %v1683_v63 }
 0x5e1   : > { %1334 = vst.msk [vmem:[#allocation5] sm:$0xf] %vm1333_vm15, %v1332_v47  ;;  %2056 = vrot.lane.b32.xlu0 %v4120_v48, %s4405_s24 }
 0x5e2   : > { %4192 = vrcp.f32 %v1687_v43 }
 0x5ef   : > { %v4193_v60 = vpop.eup %4192 }
 0x5f5   : > { %v2406_v50 = vpop.f32.mrf.mxu0 }
 0x5f6   : > { %v5114_v19 = vsel %vm4881_vm13, %v2406_v50, -1e+30 }
 0x5f7   : > { %v3907_v53 = vpop.f32.mrf.mxu0  ;;  %v2413_v22 = vsel %vm1265_vm14, %v5114_v19, -inf }
 0x5f9   : > { %v2409_v54 = vpop.f32.mrf.mxu0 }
 0x5fb   : > { %v3908_v17 = vpop.f32.mrf.mxu0 }
 0x5fd   : > { %v5089_v56 = vpop.f32.mrf.mxu0 }
 0x5fe   : > { %v2551_v58 = vsel %vm1265_vm14, %v5089_v56, -inf }
 0x5ff   : > { %v3919_v44 = vpop.f32.mrf.mxu0 }
 0x600   : > { %v1734_v59 = vpop.f32.mrf.mxu1  ;;  %2552 = vmax.xlane.f32.xlu0 %v2551_v58  ;;  %v2039_v40 = vpop.xlane.xlu0 %2038 }
 0x601   : > { %v1740_v29 = vadd.f32 %v1734_v59, %v1683_v63  ;;  %v2548_v30 = vpop.f32.mrf.mxu0  ;;  %v5102_v15 = vmax.f32 %v2039_v40, -1e+30 }
 0x602   : > { %v3841_v45 = vpop.f32.mrf.mxu1 }
 0x603   : > { %v1742_v61 = vmul.f32 %v4193_v60, %v1740_v29  ;;  %v3920_v9 = vpop.f32.mrf.mxu0  ;;  %v2044_v14 = vsub.f32 %v5034_v18, %v5102_v15  ;;  %v4124_v18 = vld [vmem:[#allocation4] ss:$0 sps:$4 sm:$0xff]  }
 0x604   : > { %v1737_v34 = vpop.f32.mrf.mxu1 }
 0x605   : > { %v3663_v0 = vpack.c.bf16 %v1742_v61, %v1742_v61  ;;  %v2663_v1 = vpop.f32.mrf.mxu0  ;;  %v2045_v21 = vmul.f32 1.442695, %v2044_v14  ;;  %v1812_v14 = vsel %vm1265_vm14, %v5055_v16, 0.0 }
 0x606   : > { %v3842_v2 = vpop.f32.mrf.mxu1  ;;  %v5097_v3 = vsel %vm4881_vm13, %v2663_v1, -1e+30 }
 0x607   : > { %v2670_v4 = vsel %vm1265_vm14, %v5097_v3, -inf  ;;  %1747 = vrot.lane.b32.xlu1 %v3663_v0, %s5491_s15  ;;  %v3931_v5 = vpop.f32.mrf.mxu0  ;;  %4194 = vpow2.f32 %v2045_v21 }
 0x608   : > { %2671 = vmax.xlane.f32.xlu0 %v2670_v4  ;;  %4196 = vpow2.f32 %v1806_v32 }
 0x609   : > { %v2666_v7 = vpop.f32.mrf.mxu0  ;;  %v2158_v10 = vpop.xlane.xlu1 %2157  ;;  %4198 = vpow2.f32 %v1915_v46 }
 0x60a   : > { %v5105_v11 = vmax.f32 %v5102_v15, %v2158_v10 }
 0x60b   : > { %v3932_v12 = vpop.f32.mrf.mxu0 }
 0x60c   : > { %v2160_v13 = vsub.f32 %v5102_v15, %v5105_v11  ;;  %v2163_v45 = vsub.f32 %v5040_v25, %v5105_v11 }
 0x60e   : > { %v2164_v34 = vmul.f32 1.442695, %v2163_v45 }
 0x614   : > { %v4195_v23 = vpop.eup %4194 }
 0x615   : > { %v2048_v26 = vsel %vm1265_vm14, %v4195_v23, 0.0  ;;  %v2052_v63 = vpack.c.bf16 %v4195_v23, %v4195_v23 }
 0x61e   : > { %2313 = vrot.lane.b32.xlu0 %v4121_v37, %s4406_s19 }
 0x62b   : > { %2414 = vmax.xlane.f32.xlu1 %v2413_v22 }
 0x63c   : > { %2176 = vrot.lane.b32.xlu1 %v4122_v24, %s4405_s24  ;;  %v2161_v24 = vmul.f32 1.442695, %v2160_v13  ;;  %s3667_s24 = sshll.u32 %s4492_s21, 8 }
 0x63d   : > { %2049 = vadd.xlane.f32.xlu0 %v2048_v26  ;;  %s5414_s16 = scalar_lea.hbm %s5472_s11, %s3667_s24 }
 0x63e   : > { %v2296_v38 = vpop.xlane.xlu0 %2295 }
 0x63f   : > { %v5125_v35 = vmax.f32 %v2296_v38, -1e+30 }
 0x640   : > { %2433 = vrot.lane.b32.xlu1 %v4123_v27, %s4406_s19 }
 0x641   : > { %v2301_v39 = vsub.f32 %v5077_v20, %v5125_v35  ;;  %v4197_v20 = vpop.eup %4196 }
 0x642   : > { %v5138_v43 = vmul.f32 0.0, %v4197_v20  ;;  %v5141_v42 = vpop.eup %4198 }
 0x643   : > { %v2302_v62 = vmul.f32 1.442695, %v2301_v39 }
 0x644   : > { %2570 = vrot.lane.b32.xlu1 %v4124_v18, %s4407_s13 }
 0x645   : > { %4200 = vpow2.f32 %v2302_v62 }
 0x647   : > { %v1470_v28 = vpop.permute.xlu1 %1469 }
 0x648   : > { %2690 = vrot.lane.b32.xlu1 %v4125_v6, %s4407_s13  ;;  %1473 = vst.msk [vmem:[#allocation5] sm:$0xf] %vm1472_vm2, %v1470_v28 }
 0x64f   : > { %v1609_v36 = vpop.permute.xlu0 %1608 }
 0x650   : > { %1612 = vst.msk [vmem:[#allocation5] sm:$0xf] %vm1611_vm3, %v1609_v36 }
 0x652   : > { %v5144_v53 = vpop.eup %4200 }
 0x653   : > { %v2057_v47 = vpop.permute.xlu0 %2056  ;;  %v2305_v55 = vsel %vm1265_vm14, %v5144_v53, 0.0  ;;  %v2309_v13 = vpack.c.bf16 %v5144_v53, %v5144_v53 }
 0x654   : > { %v2062_v48 = vsel %vm1285_vm12, %v2057_v47, 0 }
 0x655   : > { %3874 = vmatpush3.bf16.msra.mxu1 %v2062_v48 }
 0x656   : > { %3885 = vmatprep.subr.bf16.mxu1 %v4395_v8 }
 0x658   : > { %3876 = vmatmul.mubr.msk.bf16.vlgmr.msra.gmra.mxu1 %vm1265_vm14, %v2052_v63 }
 0x659   : > { %3887 = vmatprep.mubr.msk.bf16.mxu1 %vm4396_vm1, %v4395_v8 }
 0x663   : > { %v1857_v33 = vpop.f32.mrf.mxu1 }
 0x664   : > { %v1863_v41 = vadd.f32 %v1857_v33, %v5138_v43 }
 0x665   : > { %v3853_v49 = vpop.f32.mrf.mxu1 }
 0x666   : > { %v1925_v50 = vmul.f32 %v5141_v42, %v1863_v41 }
 0x667   : > { %v1860_v52 = vpop.f32.mrf.mxu1 }
 0x669   : > { %v3854_v54 = vpop.f32.mrf.mxu1 }
 0x66c   : > { %2306 = vadd.xlane.f32.xlu1 %v2305_v55  ;;  %v1967_v17 = vpop.f32.mrf.mxu1 }
 0x66d   : > { %v5148_v57 = vadd.f32 %v1967_v17, %v1925_v50 }
 0x66e   : > { %v3865_v58 = vpop.f32.mrf.mxu1 }
 0x670   : > { %v1970_v44 = vpop.f32.mrf.mxu1 }
 0x672   : > { %v3866_v59 = vpop.f32.mrf.mxu1 }
 0x679   : > { %v1748_v29 = vpop.permute.xlu1 %1747 }
 0x67a   : > { %1751 = vst.msk [vmem:[#allocation5] sm:$0xf] %vm1750_vm4, %v1748_v29 }
 0x681   : > { %v2749_v30 = vld [vmem:[#allocation5] sm:$0xf] }
 0x682   : > { %3948 = vmatmul.mubr.msk.bf16.vlgmr.msra.gmra.mxu0 %vm438_vm0, %v2749_v30 }
 0x683   : > { %3967 = vmatprep.mubr.msk.bf16.mxu0 %vm4396_vm1, %v4395_v8 }
 0x689   : > { %v2553_v60 = vpop.xlane.xlu0 %2552 }
 0x68a   : > { %v5156_v61 = vmax.f32 %v2553_v60, -1e+30 }
 0x68c   : > { %v2558_v9 = vsub.f32 %v5089_v56, %v5156_v61  ;;  %v2555_v52 = vsub.f32 -1e+30, %v5156_v61 }
 0x68e   : > { %v2559_v0 = vmul.f32 1.442695, %v2558_v9  ;;  %v2556_v53 = vmul.f32 1.442695, %v2555_v52 }
 0x690   : > { %4202 = vpow2.f32 %v2559_v0 }
 0x691   : > { %v2672_v40 = vpop.xlane.xlu0 %2671  ;;  %4204 = vpow2.f32 %v2164_v34 }
 0x692   : > { %v5161_v1 = vmax.f32 %v5156_v61, %v2672_v40 }
 0x694   : > { %v2674_v2 = vsub.f32 %v5156_v61, %v5161_v1  ;;  %v2677_v4 = vsub.f32 %v5097_v3, %v5161_v1  ;;  %v2041_v3 = vsub.f32 -1e+30, %v5102_v15 }
 0x695   : > { %v2314_v6 = vpop.permute.xlu0 %2313 }
 0x696   : > { %v2678_v25 = vmul.f32 1.442695, %v2677_v4  ;;  %v2042_v21 = vmul.f32 1.442695, %v2041_v3  ;;  %v2319_v31 = vsel %vm1285_vm12, %v2314_v6, 0  ;;  %v1921_v3 = vsel %vm1265_vm14, %v5066_v51, 0.0 }
 0x697   : > { %v2675_v55 = vmul.f32 1.442695, %v2674_v2  ;;  %v5254_v51 = vld [vmem:[%s5468_s7 + $0x20] ss:$8 sps:$4 sm:$0xff]  }
 0x698   : > { %4206 = vpow2.f32 %v2678_v25  ;;  %v2825_v25 = vld [vmem:[%s4573_s22] sm:$0xff] }
 0x699   : > { %4208 = vpow2.f32 %v2042_v21  ;;  %v5247_v21 = vld [vmem:[%s5468_s7 + $0x24] ss:$8 sps:$4 sm:$0xff]   ;;  %v5280_v6 = vld [vmem:[%s5468_s7] ss:$8 sps:$4 sm:$0xff]  }
 0x69a   : > { %4210 = vpow2.f32 %v2161_v24  ;;  %v5261_v24 = vld [vmem:[%s5468_s7 + $0x14] ss:$8 sps:$4 sm:$0xff]  }
 0x69d   : > { %v4203_v5 = vpop.eup %4202 }
 0x69e   : > { %v2562_v7 = vsel %vm1265_vm14, %v4203_v5, 0.0  ;;  %v4205_v56 = vpop.eup %4204  ;;  %v2566_v41 = vpack.c.bf16 %v4203_v5, %v4203_v5 }
 0x69f   : > { %2563 = vadd.xlane.f32.xlu0 %v2562_v7  ;;  %v2167_v10 = vsel %vm1265_vm14, %v4205_v56, 0.0  ;;  %v2172_v28 = vpack.c.bf16 %v4205_v56, %v4205_v56 }
 0x6a3   : > { %2168 = vadd.xlane.f32.xlu0 %v2167_v10 }
 0x6a5   : > { %v4207_v12 = vpop.eup %4206 }
 0x6a6   : > { %v2681_v37 = vsel %vm1265_vm14, %v4207_v12, 0.0  ;;  %v4209_v15 = vpop.eup %4208  ;;  %v2686_v50 = vpack.c.bf16 %v4207_v12, %v4207_v12 }
 0x6a7   : > { %2682 = vadd.xlane.f32.xlu0 %v2681_v37  ;;  %v2047_v38 = vmul.f32 0.0, %v4209_v15  ;;  %v4211_v39 = vpop.eup %4210 }
 0x6ab   : > { %1813 = vadd.xlane.f32.xlu0 %v1812_v14 }
 0x6b4   : > { %v2415_v22 = vpop.xlane.xlu1 %2414 }
 0x6b5   : > { %v5174_v23 = vmax.f32 %v5125_v35, %v2415_v22  ;;  %v4408_v22 = vmov 0  }
 0x6b7   : > { %v2420_v26 = vsub.f32 %v5114_v19, %v5174_v23 }
 0x6b8   : > { %v2177_v27 = vpop.permute.xlu1 %2176 }
 0x6b9   : > { %v2421_v18 = vmul.f32 1.442695, %v2420_v26  ;;  %v2182_v16 = vsel %vm1285_vm12, %v2177_v27, 0  ;;  %v2298_v26 = vsub.f32 -1e+30, %v5125_v35 }
 0x6ba   : > { %3886 = vmatpush3.bf16.msra.mxu1 %v2182_v16  ;;  %v5268_v27 = vld [vmem:[%s5468_s7 + $0x10] ss:$8 sps:$4 sm:$0xff]  }
 0x6bb   : > { %3897 = vmatprep.subr.bf16.mxu1 %v4395_v8  ;;  %4212 = vpow2.f32 %v2421_v18  ;;  %v5274_v18 = vld [vmem:[%s5468_s7 + $0x4] ss:$8 sps:$4 sm:$0xff]   ;;  %v2299_v16 = vmul.f32 1.442695, %v2298_v26 }
 0x6bc   : > { %v2434_v11 = vpop.permute.xlu1 %2433  ;;  %4214 = vpow2.f32 %v2556_v53 }
 0x6bd   : > { %3888 = vmatmul.mubr.msk.bf16.vlgmr.msra.gmra.mxu1 %vm1265_vm14, %v2172_v28  ;;  %v2439_v19 = vsel %vm1285_vm12, %v2434_v11, 0  ;;  %4216 = vpow2.f32 %v2675_v55  ;;  %v2417_v28 = vsub.f32 %v5125_v35, %v5174_v23 }
 0x6be   : > { %3898 = vmatpush3.bf16.msra.mxu1 %v2319_v31  ;;  %3899 = vmatprep.mubr.msk.bf16.mxu1 %vm4396_vm1, %v4395_v8  ;;  %4218 = vpow2.f32 %v2299_v16 }
 0x6bf   : > { %3909 = vmatprep.subr.bf16.mxu1 %v4395_v8  ;;  %v2418_v31 = vmul.f32 1.442695, %v2417_v28 }
 0x6c0   : > { %v2571_v48 = vpop.permute.xlu1 %2570 }
 0x6c1   : > { %v2576_v20 = vsel %vm1285_vm12, %v2571_v48, 0  ;;  %4220 = vpow2.f32 %v2418_v31 }
 0x6c4   : > { %v2691_v33 = vpop.permute.xlu1 %2690 }
 0x6c5   : > { %3900 = vmatmul.mubr.msk.bf16.vlgmr.msra.gmra.mxu1 %vm1265_vm14, %v2309_v13  ;;  %v2696_v49 = vsel %vm1285_vm12, %v2691_v33, 0 }
 0x6c6   : > { %3910 = vmatpush3.bf16.msra.mxu1 %v2439_v19  ;;  %v2050_v32 = vpop.xlane.xlu0 %2049  ;;  %3911 = vmatprep.mubr.msk.bf16.mxu1 %vm4396_vm1, %v4395_v8 }
 0x6c7   : > { %v2051_v36 = vadd.f32 %v2050_v32, %v2047_v38  ;;  %3921 = vmatprep.subr.bf16.mxu1 %v4395_v8 }
 0x6c8   : > { %v4213_v46 = vpop.eup %4212 }
 0x6c9   : > { %v5195_v47 = vmul.f32 %v4211_v39, %v2051_v36  ;;  %v2424_v62 = vsel %vm1265_vm14, %v4213_v46, 0.0  ;;  %v2429_v63 = vpack.c.bf16 %v4213_v46, %v4213_v46  ;;  %v4215_v30 = vpop.eup %4214 }
 0x6ca   : > { %2425 = vadd.xlane.f32.xlu1 %v2424_v62  ;;  %v5212_v60 = vmul.f32 0.0, %v4215_v30  ;;  %v5215_v34 = vpop.eup %4216 }
 0x6cb   : > { %v4219_v11 = vpop.eup %4218 }
 0x6cc   : > { %v2304_v19 = vmul.f32 0.0, %v4219_v11  ;;  %v5299_v11 = vld [vmem:[%s5467_s6] ss:$0 sm:$0xff] }
 0x6cd   : > { %3912 = vmatmul.mubr.msk.bf16.vlgmr.msra.gmra.mxu1 %vm1265_vm14, %v2429_v63 }
 0x6ce   : > { %3922 = vmatpush3.bf16.msra.mxu1 %v2576_v20  ;;  %3923 = vmatprep.mubr.msk.bf16.mxu1 %vm4396_vm1, %v4395_v8  ;;  %v4221_v32 = vpop.eup %4220 }
 0x6cf   : > { %3933 = vmatprep.subr.bf16.mxu1 %v4395_v8 }
 0x6d5   : > { %3924 = vmatmul.mubr.msk.bf16.vlgmr.msra.gmra.mxu1 %vm1265_vm14, %v2566_v41 }
 0x6d6   : > { %3934 = vmatpush3.bf16.msra.mxu1 %v2696_v49  ;;  %3935 = vmatprep.mubr.msk.bf16.mxu1 %vm4396_vm1, %v4395_v8 }
 0x6dd   : > { %3936 = vmatmul.mubr.msk.bf16.vlgmr.msra.gmra.mxu1 %vm1265_vm14, %v2686_v50 }
 0x6de   : > { %2927 = vmatprep.mubr.bf16.mxu1 %v4408_v22 }
 0x6f5   : > { %v2307_v13 = vpop.xlane.xlu1 %2306 }
 0x718   : > { %v2098_v54 = vpop.f32.mrf.mxu1 }
 0x719   : > { %v2104_v17 = vadd.f32 %v2098_v54, %v2047_v38  ;;  %v2308_v38 = vadd.f32 %v2307_v13, %v2304_v19 }
 0x71a   : > { %v3877_v58 = vpop.f32.mrf.mxu1 }
 0x71b   : > { %v2171_v44 = vmul.f32 %v4211_v39, %v2104_v17  ;;  %v2423_v39 = vmul.f32 %v4221_v32, %v2308_v38 }
 0x71c   : > { %v2101_v59 = vpop.f32.mrf.mxu1 }
 0x71e   : > { %v3878_v29 = vpop.f32.mrf.mxu1 }
 0x728   : > { %v2564_v45 = vpop.xlane.xlu0 %2563 }
 0x729   : > { %v2565_v9 = vadd.f32 %v2564_v45, %v5212_v60 }
 0x72b   : > { %v5218_v0 = vmul.f32 %v5215_v34, %v2565_v9 }
 0x72c   : > { %v2169_v61 = vpop.xlane.xlu0 %2168 }
 0x72d   : > { %v2170_v15 = vadd.f32 %v2169_v61, %v5195_v47 }
 0x72f   : > { %4222 = vrcp.f32 %v2170_v15 }
 0x730   : > { %v5220_v40 = vpop.xlane.xlu0 %2682 }
 0x731   : > { %v2684_v17 = vadd.f32 %v5220_v40, %v5218_v0 }
 0x734   : > { %v1814_v1 = vpop.xlane.xlu0 %1813 }
 0x735   : > { %v1815_v2 = vadd.f32 %v1814_v1, %v5138_v43  ;;  %v5237_v43 = vld [vmem:[%s5468_s7 + $0x30] ss:$8 sps:$4 sm:$0xff]  }
 0x737   : > { %v5224_v4 = vmul.f32 %v5141_v42, %v1815_v2  ;;  %v5242_v42 = vld [vmem:[%s5468_s7 + $0x34] ss:$8 sps:$4 sm:$0xff]  }
 0x738   : > { %2903 = vmatprep.subr.bf16.mxu1 %v5242_v42 }
 0x739   : > { %2904 = vmatpush1.bf16.msra.mxu1 %v5237_v43 }
 0x73a   : > { %2905 = vmatprep.subr.bf16.mxu1 %v5247_v21 }
 0x73c   : > { %v4223_v23 = vpop.eup %4222 }
 0x73d   : > { %2906 = vmatpush1.bf16.msra.mxu1 %v5254_v51 }
 0x73e   : > { %2907 = vmatprep.subr.bf16.mxu1 %v5261_v24 }
 0x741   : > { %2908 = vmatpush1.bf16.msra.mxu1 %v5268_v27 }
 0x742   : > { %v2819_v5 = vpop.f32.mrf.mxu0  ;;  %2909 = vmatprep.subr.bf16.mxu1 %v5274_v18 }
 0x743   : > { %v5227_v7 = vadd.f32 %v2825_v25, %v2819_v5 }
 0x744   : > { %v3949_v56 = vpop.f32.mrf.mxu0 }
 0x745   : > { %v2827_v10 = vmul.f32 %v5227_v7, %v5227_v7  ;;  %2910 = vmatpush1.bf16.msra.mxu1 %v5280_v6 }
 0x746   : > { %v2822_v12 = vpop.f32.mrf.mxu0  ;;  %3971 = vmatprep.subr.bf16.mxu1 %v4395_v8 }
 0x747   : > { %v2828_v37 = vsel %vm438_vm0, %v2827_v10, 0.0 }
 0x748   : > { %v3950_v14 = vpop.f32.mrf.mxu0  ;;  %2829 = vadd.xlane.f32.xlu1 %v2828_v37 }
 0x74c   : > { %1922 = vadd.xlane.f32.xlu1 %v1921_v3 }
 0x753   : > { %v2426_v36 = vpop.xlane.xlu1 %2425 }
 0x754   : > { %v2427_v48 = vadd.f32 %v2426_v36, %v2423_v39  ;;  %v4142_v36 = vld [vmem:[#allocation11 + $0x18] sm:$0xff]  }
 0x756   : > { %4224 = vrcp.f32 %v2427_v48  ;;  %v4144_v48 = vld [vmem:[#allocation11 + $0x8] sm:$0xff]  }
 0x757   : > { %4226 = vrcp.f32 %v2684_v17 }
 0x77d   : > { %v2218_v46 = vpop.f32.mrf.mxu1 }
 0x77e   : > { %v2224_v35 = vadd.f32 %v2218_v46, %v2171_v44  ;;  %v4225_v44 = vpop.eup %4224 }
 0x77f   : > { %v3889_v62 = vpop.f32.mrf.mxu1  ;;  %v4227_v40 = vpop.eup %4226 }
 0x780   : > { %v2226_v63 = vmul.f32 %v4223_v23, %v2224_v35 }
 0x781   : > { %v2221_v20 = vpop.f32.mrf.mxu1 }
 0x782   : > { %v3664_v33 = vpack.c.bf16 %v2226_v63, %v2226_v63 }
 0x783   : > { %v3890_v41 = vpop.f32.mrf.mxu1 }
 0x784   : > { %2231 = vrot.lane.b32.xlu0 %v3664_v33, %s4401_s26  ;;  %s4409_s26 = smov [#allocation12]  }
 0x785   : > { %v2355_v47 = vpop.f32.mrf.mxu1 }
 0x786   : > { %v2361_v50 = vadd.f32 %v2355_v47, %v2304_v19 }
 0x787   : > { %v3901_v49 = vpop.f32.mrf.mxu1 }
 0x788   : > { %v2428_v54 = vmul.f32 %v4221_v32, %v2361_v50 }
 0x789   : > { %v2358_v52 = vpop.f32.mrf.mxu1 }
 0x78b   : > { %v3902_v53 = vpop.f32.mrf.mxu1 }
 0x78d   : > { %v2475_v55 = vpop.f32.mrf.mxu1 }
 0x78e   : > { %v2481_v58 = vadd.f32 %v2475_v55, %v2428_v54 }
 0x78f   : > { %v3913_v59 = vpop.f32.mrf.mxu1 }
 0x790   : > { %v2483_v29 = vmul.f32 %v4225_v44, %v2481_v58  ;;  %v3126_v58 = vld [vmem:[%s4573_s22 + $0x8] sm:$0xff]  ;;  %s421_s22 = sand.u32 1, %s4380_s18  }
 0x791   : > { %v2478_v30 = vpop.f32.mrf.mxu1  ;;  %s3468_s29 = sshll.u32 %s421_s22, 4  ;;  %s5420_s25 = scalar_lea.sflag [#allocation8], %s421_s22 }
 0x792   : > { %v3665_v45 = vpack.c.bf16 %v2483_v29, %v2483_v29  ;;  %s5371_s13 = scalar_lea.vmem [#allocation12], %s3468_s29 }
 0x793   : > { %v3914_v9 = vpop.f32.mrf.mxu1  ;;  %s3365_s12 = sshll.u32 %s5371_s13, 4  ;;  %s5408_s12 = int_to_ptr.vmem [resolvable:$true] %s3365_s12 }
 0x794   : > { %2488 = vrot.lane.b32.xlu1 %v3665_v45, %s4402_s14  ;;  %s4320_s21 = scalar_lea.vmem %s5408_s12, 256  ;;  %s4324_s14 = sshll.u32 %s4409_s26, 4  ;;  %s4325_s14 = int_to_ptr.vmem [resolvable:$false] %s4324_s14 }
 0x795   : > { %v2612_v61 = vpop.f32.mrf.mxu1  ;;  %p4321_p10 = scmp.ne.s32.totalorder %s5408_s12, %s4320_s21  ;;  %p4327_p7 = scmp.lt.s32.totalorder %s5408_s12, %s4325_s14 }
 0x796   : > { %v2618_v1 = vadd.f32 %v2612_v61, %v5212_v60 }
 0x797   : > { %v3925_v2 = vpop.f32.mrf.mxu1  ;;  %p4322_p2 = pnand %p4321_p10, %p5495_p12 }
 0x798   : > { %v2685_v25 = vmul.f32 %v5215_v34, %v2618_v1 }
 0x799   : > { %v2615_v5 = vpop.f32.mrf.mxu1  ;;  %p4323_p4 = pneg %p4322_p2 }
 0x79b   : > { %v3926_v56 = vpop.f32.mrf.mxu1 }
 0x79d   : > { %v2732_v10 = vpop.f32.mrf.mxu1 }
 0x79e   : > { %v2738_v0 = vadd.f32 %v2732_v10, %v2685_v25 }
 0x79f   : > { %v3937_v12 = vpop.f32.mrf.mxu1 }
 0x7a0   : > { %v2740_v37 = vmul.f32 %v4227_v40, %v2738_v0 }
 0x7a1   : > { %v2735_v14 = vpop.f32.mrf.mxu1 }
 0x7a2   : > { %v3666_v3 = vpack.c.bf16 %v2740_v37, %v2740_v37 }
 0x7a3   : > { %v3938_v26 = vpop.f32.mrf.mxu1 }
 0x7a4   : > { %2745 = vrot.lane.b32.xlu1 %v3666_v3, %s5491_s15  ;;  %v4154_v26 = vld [vmem:[%s5469_s8 + $0x38] sm:$0xff]   ;;  %s4326_s15 = scalar_lea.vmem %s4325_s14, 512 }
 0x7a5   : > { %p4328_p8 = scmp.lt.s32.totalorder %s4326_s15, %s4320_s21 }
 0x7a7   : > { %p4329_p11 = por %p4328_p8, %p4327_p7 }
 0x7a9   : > { %p4330_p0 = pnand %p4329_p11, %p4323_p4 }
 0x7d1   : > { %v2830_v16 = vpop.xlane.xlu1 %2829 }
 0x7d2   : > { %v2831_v28 = vmul.f32 0.015625, %v2830_v16  ;;  %v4155_v16 = vld [vmem:[%s5469_s8 + $0x30] sm:$0xff]  }
 0x7d4   : > { %v2832_v31 = vadd.f32 1e-05, %v2831_v28  ;;  %v4157_v28 = vld [vmem:[%s5469_s8 + $0x20] sm:$0xff]  }
 0x7d5   : > { %v1923_v15 = vpop.xlane.xlu1 %1922 }
 0x7d6   : > { %4228 = vrsqrt.f32 %v2832_v31  ;;  %v1924_v60 = vadd.f32 %v1923_v15, %v5224_v4  ;;  %v4143_v4 = vld [vmem:[#allocation11 + $0x10] sm:$0xff]   ;;  %v4158_v31 = vld [vmem:[%s5469_s8 + $0x18] sm:$0xff]  }
 0x7d7   : > { %v4159_v15 = vld [vmem:[%s5469_s8 + $0x10] sm:$0xff]  }
 0x7d8   : > { %4230 = vrcp.f32 %v1924_v60  ;;  %v4160_v60 = vld [vmem:[%s5469_s8 + $0x8] sm:$0xff]  }
 0x7e3   : > { %v4229_v34 = vpop.eup %4228 }
 0x7e4   : > { %v2834_v13 = vmul.f32 %v4229_v34, %v5227_v7  ;;  %v4161_v34 = vld [vmem:[%s5469_s8] sm:$0xff]  }
 0x7e5   : > { %v4231_v19 = vpop.eup %4230 }
 0x7e6   : > { %v2842_v38 = vmul.f32 %v5299_v11, %v2834_v13  ;;  %v1975_v32 = vmul.f32 %v4231_v19, %v5148_v57  ;;  %v4145_v57 = vld [vmem:[#allocation11] sm:$0xff]  }
 0x7e8   : > { %v2843_v39 = vpack.c.bf16 %v2842_v38, %v2842_v38  ;;  %v1976_v46 = vpack.c.bf16 %v1975_v32, %v1975_v32 }
 0x7ea   : > { %3589 = vmatmul.mubr.msk.bf16.vlgmr.msra.gmra.mxu1 %vm438_vm0, %v2843_v39  ;;  %1977 = vst.msk [vmem:[#allocation5 + $0x4] sm:$0xf] %vm1333_vm15, %v1976_v46 }
 0x7eb   : > { %3972 = vmatpush3.bf16.msra.mxu1 %v4142_v36  ;;  %3979 = vmatprep.mubr.msk.bf16.mxu1 %vm4396_vm1, %v4395_v8 }
 0x7ec   : > { %3973 = vmatprep.subr.bf16.mxu1 %v4395_v8 }
 0x7ef   : > { %3974 = vmatpush3.bf16.msra.mxu1 %v4143_v4 }
 0x7f0   : > { %3975 = vmatprep.subr.bf16.mxu1 %v4395_v8 }
 0x7f3   : > { %3976 = vmatpush3.bf16.msra.mxu1 %v4144_v48 }
 0x7f4   : > { %3977 = vmatprep.subr.bf16.mxu1 %v4395_v8 }
 0x7f6   : > { %v2232_v35 = vpop.permute.xlu0 %2231 }
 0x7f7   : > { %2234 = vst.msk [vmem:[#allocation5 + $0x4] sm:$0xf] %vm1472_vm2, %v2232_v35  ;;  %3978 = vmatpush3.bf16.msra.mxu1 %v4145_v57 }
 0x7f8   : > { %3204 = vmatprep.subr.bf16.mxu1 %v5242_v42  ;;  %v4146_v42 = vld [vmem:[%s5469_s8 + $0x38] sm:$0xff]  }
 0x7f9   : > { %3952 = vmatpush3.bf16.msra.mxu0 %v4146_v42 }
 0x7fa   : > { %3953 = vmatprep.subr.bf16.mxu0 %v4395_v8 }
 0x806   : > { %v2489_v23 = vpop.permute.xlu1 %2488 }
 0x807   : > { %2491 = vst.msk [vmem:[#allocation5 + $0x4] sm:$0xf] %vm1611_vm3, %v2489_v23 }
 0x816   : > { %v2746_v62 = vpop.permute.xlu1 %2745 }
 0x817   : > { %2748 = vst.msk [vmem:[#allocation5 + $0x4] sm:$0xf] %vm1750_vm4, %v2746_v62 }
 0x81e   : > { %v3050_v63 = vld [vmem:[#allocation5 + $0x4] sm:$0xf] }
 0x81f   : > { %3980 = vmatmul.mubr.msk.bf16.vlgmr.msra.gmra.mxu1 %vm438_vm0, %v3050_v63 }
 0x820   : > { %3205 = vmatpush1.bf16.msra.mxu1 %v5237_v43  ;;  %3228 = vmatprep.mubr.bf16.mxu1 %v4408_v22  ;;  %v4147_v43 = vld [vmem:[%s5469_s8 + $0x30] sm:$0xff]   ;;  %v4150_v22 = vld [vmem:[%s5469_s8 + $0x18] sm:$0xff]  }
 0x821   : > { %3206 = vmatprep.subr.bf16.mxu1 %v5247_v21  ;;  %3954 = vmatpush3.bf16.msra.mxu0 %v4147_v43  ;;  %v4148_v21 = vld [vmem:[%s5469_s8 + $0x28] sm:$0xff]  }
 0x822   : > { %3955 = vmatprep.subr.bf16.mxu0 %v4395_v8 }
 0x824   : > { %3207 = vmatpush1.bf16.msra.mxu1 %v5254_v51  ;;  %v4149_v51 = vld [vmem:[%s5469_s8 + $0x20] sm:$0xff]  }
 0x825   : > { %3208 = vmatprep.subr.bf16.mxu1 %v5261_v24  ;;  %3956 = vmatpush3.bf16.msra.mxu0 %v4148_v21  ;;  %v4151_v24 = vld [vmem:[%s5469_s8 + $0x10] sm:$0xff]  }
 0x826   : > { %3957 = vmatprep.subr.bf16.mxu0 %v4395_v8 }
 0x828   : > { %3209 = vmatpush1.bf16.msra.mxu1 %v5268_v27  ;;  %v4152_v27 = vld [vmem:[%s5469_s8 + $0x8] sm:$0xff]  }
 0x829   : > { %3210 = vmatprep.subr.bf16.mxu1 %v5274_v18  ;;  %3958 = vmatpush3.bf16.msra.mxu0 %v4149_v51  ;;  %v4153_v18 = vld [vmem:[%s5469_s8] sm:$0xff]  }
 0x82a   : > { %3959 = vmatprep.subr.bf16.mxu0 %v4395_v8 }
 0x82c   : > { %3211 = vmatpush1.bf16.msra.mxu1 %v5280_v6 }
 0x82d   : > { %3960 = vmatpush3.bf16.msra.mxu0 %v4150_v22 }
 0x82e   : > { %3961 = vmatprep.subr.bf16.mxu0 %v4395_v8 }
 0x831   : > { %3962 = vmatpush3.bf16.msra.mxu0 %v4151_v24 }
 0x832   : > { %3963 = vmatprep.subr.bf16.mxu0 %v4395_v8 }
 0x835   : > { %3964 = vmatpush3.bf16.msra.mxu0 %v4152_v27 }
 0x836   : > { %3965 = vmatprep.subr.bf16.mxu0 %v4395_v8 }
 0x839   : > { %3966 = vmatpush3.bf16.msra.mxu0 %v4153_v18 }
 0x83a   : > { %3983 = vmatprep.subr.bf16.mxu0 %v4395_v8 }
 0x8aa   : > { %v2929_v6 = vpop.f32.mrf.mxu1 }
 0x8ab   : > { %v2936_v20 = vsub.f32 0.0, %v2929_v6 }
 0x8ac   : > { %v2931_v33 = vpop.f32.mrf.mxu1 }
 0x8ad   : > { %v2937_v41 = vmul.f32 1.442695, %v2936_v20 }
 0x8ae   : > { %v2933_v47 = vpop.f32.mrf.mxu1 }
 0x8af   : > { %4232 = vpow2.f32 %v2937_v41 }
 0x8b0   : > { %v2934_v49 = vpop.f32.mrf.mxu1 }
 0x8bc   : > { %v4233_v50 = vpop.eup %4232 }
 0x8bd   : > { %v2939_v52 = vadd.f32 1.0, %v4233_v50 }
 0x8bf   : > { %4234 = vrcp.f32 %v2939_v52 }
 0x8cc   : > { %v4235_v53 = vpop.eup %4234 }
 0x8cd   : > { %v2941_v54 = vmul.f32 %v4235_v53, %v2929_v6 }
 0x8cf   : > { %v2942_v55 = vmul.f32 %v2941_v54, %v2931_v33 }
 0x8d1   : > { %v2943_v17 = vpack.c.bf16 %v2942_v55, %v2942_v55 }
 0x8d3   : > { %3968 = vmatmul.mubr.bf16.vlgmr.msra.gmra.mxu0 %v2943_v17 }
 0x8d4   : > { %3999 = vmatprep.mubr.msk.bf16.mxu0 %vm4396_vm1, %v4395_v8  ;;  %3984 = vmatpush3.bf16.msra.mxu0 %v4154_v26 }
 0x8d5   : > { %3985 = vmatprep.subr.bf16.mxu0 %v4395_v8 }
 0x8d8   : > { %3986 = vmatpush3.bf16.msra.mxu0 %v4155_v16 }
 0x8d9   : > { %3987 = vmatprep.subr.bf16.mxu0 %v4395_v8 }
 0x8df   : > { %v3120_v44 = vpop.f32.mrf.mxu1 }
 0x8e0   : > { %v5359_v59 = vadd.f32 %v3126_v58, %v3120_v44 }
 0x8e1   : > { %v3981_v29 = vpop.f32.mrf.mxu1 }
 0x8e2   : > { %v3128_v30 = vmul.f32 %v5359_v59, %v5359_v59 }
 0x8e3   : > { %v3123_v45 = vpop.f32.mrf.mxu1 }
 0x8e4   : > { %v3129_v9 = vsel %vm438_vm0, %v3128_v30, 0.0 }
 0x8e5   : > { %3130 = vadd.xlane.f32.xlu0 %v3129_v9  ;;  %v3982_v61 = vpop.f32.mrf.mxu1 }
 0x96e   : > { %v3131_v1 = vpop.xlane.xlu0 %3130 }
 0x96f   : > { %v3132_v2 = vmul.f32 0.015625, %v3131_v1 }
 0x971   : > { %v3133_v25 = vadd.f32 1e-05, %v3132_v2 }
 0x973   : > { %4236 = vrsqrt.f32 %v3133_v25 }
 0x980   : > { %v4237_v5 = vpop.eup %4236 }
 0x981   : > { %v3135_v56 = vmul.f32 %v4237_v5, %v5359_v59 }
 0x983   : > { %v3143_v10 = vmul.f32 %v5299_v11, %v3135_v56 }
 0x985   : > { %v3144_v0 = vpack.c.bf16 %v3143_v10, %v3143_v10 }
 0x987   : > { %3612 = vmatmul.mubr.msk.bf16.vlgmr.msra.gmra.mxu1 %vm438_vm0, %v3144_v0 }
 0x993   : > { %v3042_v40 = vpop.f32.mrf.mxu0 }
 0x994   : > { %v3048_v12 = vadd.f32 %v3042_v40, %v5227_v7  ;;  %v4156_v7 = vld [vmem:[%s5469_s8 + $0x28] sm:$0xff]  }
 0x995   : > { %v3969_v37 = vpop.f32.mrf.mxu0  ;;  %3988 = vmatpush3.bf16.msra.mxu0 %v4156_v7 }
 0x996   : > { %3049 = vst.msk [vmem:[%s5371_s13] sm:$0xff] %vm438_vm0, %v3048_v12  ;;  %3989 = vmatprep.subr.bf16.mxu0 %v4395_v8 }
 0x997   : > { %v3045_v14 = vpop.f32.mrf.mxu0 }
 0x999   : > { %v3970_v3 = vpop.f32.mrf.mxu0  ;;  %3990 = vmatpush3.bf16.msra.mxu0 %v4157_v28 }
 0x99a   : > { %3991 = vmatprep.subr.bf16.mxu0 %v4395_v8 }
 0x99d   : > { %3992 = vmatpush3.bf16.msra.mxu0 %v4158_v31 }
 0x99e   : > { %3993 = vmatprep.subr.bf16.mxu0 %v4395_v8 }
 0x9a1   : > { %3994 = vmatpush3.bf16.msra.mxu0 %v4159_v15 }
 0x9a2   : > { %3995 = vmatprep.subr.bf16.mxu0 %v4395_v8 }
 0x9a5   : > { %3996 = vmatpush3.bf16.msra.mxu0 %v4160_v60 }
 0x9a6   : > { %3997 = vmatprep.subr.bf16.mxu0 %v4395_v8 }
 0x9a9   : > { %3998 = vmatpush3.bf16.msra.mxu0 %v4161_v34 }
 0xa47   : > { %v3230_v11 = vpop.f32.mrf.mxu1 }
 0xa48   : > { %v3237_v13 = vsub.f32 0.0, %v3230_v11 }
 0xa49   : > { %v3232_v19 = vpop.f32.mrf.mxu1 }
 0xa4a   : > { %v3238_v38 = vmul.f32 1.442695, %v3237_v13 }
 0xa4b   : > { %v3234_v32 = vpop.f32.mrf.mxu1 }
 0xa4c   : > { %4238 = vpow2.f32 %v3238_v38 }
 0xa4d   : > { %v3235_v36 = vpop.f32.mrf.mxu1 }
 0xa59   : > { %v4239_v39 = vpop.eup %4238 }
 0xa5a   : > { %v3240_v46 = vadd.f32 1.0, %v4239_v39 }
 0xa5c   : > { %4240 = vrcp.f32 %v3240_v46 }
 0xa69   : > { %v4241_v4 = vpop.eup %4240 }
 0xa6a   : > { %v3242_v48 = vmul.f32 %v4241_v4, %v3230_v11 }
 0xa6c   : > { %v3243_v57 = vmul.f32 %v3242_v48, %v3232_v19 }
 0xa6e   : > { %v3244_v8 = vpack.c.bf16 %v3243_v57, %v3243_v57 }
 0xa70   : > { %4000 = vmatmul.mubr.bf16.vlgmr.msra.gmra.mxu0 %v3244_v8 }
 0xb30   : > { %v3343_v35 = vpop.f32.mrf.mxu0 }
 0xb31   : > { %v3349_v23 = vadd.f32 %v3343_v35, %v5359_v59 }
 0xb32   : > { %v4001_v62 = vpop.f32.mrf.mxu0 }
 0xb33   : > { %3350 = vst.msk [vmem:[%s5371_s13 + $0x8] sm:$0xff] %vm438_vm0, %v3349_v23 }
 0xb34   : > { %v3346_v63 = vpop.f32.mrf.mxu0 }
 0xb35   : > { %4333 = shalt.err (!%p4330_p0)
}
 0xb36   : > { %s4334_s22 = scalar_lea.hbm %s5414_s16, 256  ;;  %s4338_s24 = scalar_lea.hbm %s5472_s11, 512 }
 0xb37   : > { %p4335_p6 = scmp.ne.s32.totalorder %s5414_s16, %s4334_s22  ;;  %p4339_p1 = scmp.lt.s32.totalorder %s5414_s16, %s5472_s11 }
 0xb38   : > { %p4340_p5 = scmp.lt.s32.totalorder %s4338_s24, %s4334_s22 }
 0xb39   : > { %p4336_p9 = pnand %p4335_p6, %p5495_p12 }
 0xb3a   : > { %p4341_p3 = por %p4340_p5, %p4339_p1 }
 0xb3b   : > { %p4337_p13 = pneg %p4336_p9 }
 0xb3d   : > { %p4342_p10 = pnand %p4341_p3, %p4337_p13 }
 0xb3f   : > { %4345 = shalt.err (!%p4342_p10)
}
 0xb40   : > { %s4410_s21 = smov 128   ;;  %s5496_s26 = smov 8   ;;  %v4002_v42 = vpop.f32.mrf.mxu0 }
 0xb41   : > { %4015 = dma.vmem_to_hbm [thread:$0]  (%p5495_p12), %s5408_s12, 256, %s5414_s16, %s5420_s25, %s4410_s21, %s4410_s21, %s5496_s26  }
 0xb42 PF: > { %p4037_p2 = scmp.ge.s32.totalorder %s4388_s20, 2  ;;  %s3380_s14 = sand.u32 1, %s4376_s17  }
 0xb43   : > { %p5497_p4 = scmp.ne.s32.totalorder %s5484_s28, 0  ;;  %s3381_s15 = scalar_lea.sflag [#allocation8], %s3380_s14 }
 0xb45   : > { %p4028_p7 = pnand %p4037_p2, %p5497_p4 }
 0xb47   : > { %p4029_p8 = pneg %p4028_p7 }
 0xb49   : > { %4371 = dma.done.wait (%p4029_p8), %s3381_s15, 256  }
 0xb4a   : > { %4373 = vsyncadd (%p4029_p8), %s3381_s15, 4294967040  ;;  %s5498_s27 = sld [smem:[#allocation16_spill]]  ;;  %p23_p11 = scmp.ge.s32.totalorder %s4496_s23, 4  }
 0xb4b   : > { %s5499_s19 = sld [smem:[#allocation17_spill]]  ;;  %s5500_s17 = smov %s4380_s18 }
 0xb4c   : > { %s5502_s20 = smov %s4496_s23  ;;  %25 = sbr.rel (!%p23_p11) target bundleno = 5 (0x5), region = 112 }
 0xb50   : > { %s5501_s18 = smov %s5498_s27 }
 0xb51   :  { %3386 = vsyncpa [#allocation7], 1 }
 0xb52   :  { %3388 = vsyncpa [#allocation7 + $0x1], 1 }
 0xb53   :  { %3389 = vsyncpa [#allocation10], 1 }
 0xb54   :  { %3390 = vsyncpa [#allocation8], 1 }
 0xb55   :  { %3392 = vsyncpa [#allocation8 + $0x1], 1 }

</bundles_post_ra>
